<compile_context>
chip_gen: v7x
topology: tpu7x:2x2x1
jax: 0.10.0
libtpu: 0.0.40
codegen_flags: <defaults>
</compile_context>

<pallas_src>
import math
from functools import partial

import numpy as np
import jax
import jax.numpy as jnp
from jax.experimental import pallas as pl
from jax.experimental.pallas import tpu as pltpu

MAX_ROW_TILE = 1024
HIDDEN = 128
VMEM_LIMIT = 32 * 1024 * 1024


# ----------------------------- small helpers --------------------------------
def _act(x, kind):
    if kind == "none":
        return x
    if kind == "relu":
        return jnp.maximum(x, 0.0)
    if kind == "silu":
        return x * jax.nn.sigmoid(x)
    if kind == "sigmoid":
        return jax.nn.sigmoid(x)
    raise ValueError(kind)


def _mm(x, w):
    # Cast activations to the weight's dtype (bf16 on the hot path), f32 accum.
    return jnp.dot(x.astype(w.dtype), w, preferred_element_type=jnp.float32)


# ----------------------------- Pallas kernels -------------------------------
def _linear_kernel(x_ref, w_ref, b_ref, o_ref, *, act):
    o_ref[...] = _act(_mm(x_ref[...], w_ref[...]) + b_ref[...], act).astype(o_ref.dtype)


def _header_kernel(ne_ref, ts_ref, qe_ref,
                   nw_ref, nb_ref, tw1_ref, tb1_ref, tw2_ref, tb2_ref,
                   qw_ref, qb_ref, o_ref):
    # node: Embedding -> SiLU -> Linear(64,64)
    nh = _mm(_act(ne_ref[...], "silu"), nw_ref[...]) + nb_ref[...]
    # time: Sinusoidal -> Linear(32,32) -> SiLU -> Linear(32,32)
    t1 = _mm(ts_ref[...], tw1_ref[...]) + tb1_ref[...]
    th = _mm(_act(t1, "silu"), tw2_ref[...]) + tb2_ref[...]
    # query: Embedding(2,32) -> SiLU -> Linear(32,32)
    qh = _mm(_act(qe_ref[...], "silu"), qw_ref[...]) + qb_ref[...]
    o_ref[...] = jnp.concatenate([nh, th, qh], axis=-1).astype(o_ref.dtype)


def _edge_enc_kernel(len_ref, bond_ref, w1_ref, b1_ref, w2_ref, b2_ref, o_ref):
    # d = ReLU(len * w1_row + b1)  (VPU broadcast, no K=1 matmul)
    # out = (d @ W2 + b2) * bond_emb[edge_type]   (bond rows fused in)
    d = jnp.maximum(len_ref[...] * w1_ref[...] + b1_ref[...], 0.0)
    o_ref[...] = ((_mm(d, w2_ref[...]) + b2_ref[...]) * bond_ref[...]).astype(o_ref.dtype)


def _edge_coord_kernel(hs_ref, hd_ref, cd_ref, ea_ref,
                       w1_ref, w1r_ref, w1e_ref, b1_ref,
                       w2_ref, b2_ref, wa_ref, ba_ref,
                       cw1_ref, cb1_ref, cw2_ref,
                       m_ref, trans_ref, *, edge_k1):
    # Fused EGNN edge model (2-layer MLP + attention gate) + coord MLP.
    cd = cd_ref[...]                                             # (T, 3) f32
    radial = jnp.sum(cd * cd, axis=-1, keepdims=True)            # (T, 1) f32
    # K=256 fused dot over [h_src ‖ h_dst] (single 256-deep MXU pass)
    hcat = jnp.concatenate([hs_ref[...], hd_ref[...]], axis=-1)  # (T, 256)
    pre = _mm(hcat, w1_ref[...]) + radial * w1r_ref[...] + b1_ref[...]
    if edge_k1:
        pre = pre + ea_ref[...] * w1e_ref[...]                   # (T,1)*(1,H) VPU
    else:
        pre = pre + _mm(ea_ref[...], w1e_ref[...])
    h1 = _act(pre, "silu")
    m = _act(_mm(h1, w2_ref[...]) + b2_ref[...], "silu")
    # attention gate: VPU broadcast-mul + XLU lane reduce (no N=1 matmul)
    att = jax.nn.sigmoid(jnp.sum(m * wa_ref[...], axis=-1, keepdims=True)
                         + ba_ref[...])
    m_out = m * att
    m_ref[...] = m_out.astype(m_ref.dtype)                       # bf16 stream
    # coord MLP (last layer bias-free, tiny init); scale via lane reduction
    t = _act(_mm(m_out, cw1_ref[...]) + cb1_ref[...], "silu")
    scale = jnp.sum(t * cw2_ref[...], axis=-1, keepdims=True)    # (T, 1)
    # EGNN coord2radial normalization: coord_diff / (sqrt(radial)+norm_constant)
    # with norm_constant = 0 (reference model argument), eps for stability.
    inv_norm = jax.lax.rsqrt(radial + 1e-8)
    trans_ref[...] = (cd * (inv_norm * scale)).astype(trans_ref.dtype)


def _node_kernel(h_ref, agg_ref, w1_ref, b1_ref, w2_ref, b2_ref, o_ref):
    # out = h + (SiLU([h ‖ agg] @ W1 + b1) @ W2 + b2)   (residual, f32)
    hcat = jnp.concatenate([h_ref[...], agg_ref[...]], axis=-1)  # (T, 256)
    t = _act(_mm(hcat, w1_ref[...]) + b1_ref[...], "silu")
    o_ref[...] = (h_ref[...] + _mm(t, w2_ref[...]) + b2_ref[...]).astype(o_ref.dtype)


# ----------------------------- call helper ----------------------------------
def _row_call(kernel, row_inputs, params, out_defs, *, max_tile=MAX_ROW_TILE):
    """Row-tiled pallas_call.

    row_inputs are tiled over rows, params are whole-array (constant index map).
    out_defs: list of (n_cols, dtype).  No row padding: small inputs use a single
    full-array block; large inputs use cdiv(R, tile) with a partial last block
    (OOB rows only feed rows whose writes are dropped).
    """
    R = int(row_inputs[0].shape[0])
    tile = R if R <= max_tile else max_tile
    grid = (pl.cdiv(R, tile),)
    in_specs = [pl.BlockSpec((tile, int(a.shape[1])), lambda i: (i, 0))
                for a in row_inputs]
    in_specs += [pl.BlockSpec(tuple(int(s) for s in p.shape), lambda i: (0, 0))
                 for p in params]
    out_shape = tuple(jax.ShapeDtypeStruct((R, d), dt) for d, dt in out_defs)
    out_specs = tuple(pl.BlockSpec((tile, d), lambda i: (i, 0))
                      for d, _ in out_defs)
    single = len(out_defs) == 1
    outs = pl.pallas_call(
        kernel,
        out_shape=out_shape[0] if single else out_shape,
        grid=grid,
        in_specs=in_specs,
        out_specs=out_specs[0] if single else out_specs,
        compiler_params=pltpu.CompilerParams(
            dimension_semantics=("parallel",),
            vmem_limit_bytes=VMEM_LIMIT),
    )(*row_inputs, *params)
    return (outs,) if single else outs


# ----------------------------- wrappers --------------------------------------
def pallas_linear(x, w, b, act="none"):
    return _row_call(partial(_linear_kernel, act=act), [x], [w, b],
                     [(int(w.shape[1]), jnp.float32)])[0]


def node_header_forward(params, node_emb_rows, time_sin, query_emb_rows):
    return _row_call(
        _header_kernel, [node_emb_rows, time_sin, query_emb_rows],
        [params["node_w"], params["node_b"],
         params["time_w1"], params["time_b1"],
         params["time_w2"], params["time_b2"],
         params["query_w"], params["query_b"]],
        [(HIDDEN, jnp.float32)])[0]


def edge_encoder_forward(edge_length, edge_type, ep):
    bond = ep["bond_emb"][edge_type]                    # (E,128) gather (XLA)
    return _row_call(_edge_enc_kernel, [edge_length, bond],
                     [ep["w1"], ep["b1"], ep["w2"], ep["b2"]],
                     [(HIDDEN, jnp.bfloat16)])[0]


def pallas_edge_coord(h_src, h_dst, coord_diff, edge_attr, lp):
    ep, cp = lp["edge"], lp["coord"]
    edge_k1 = int(edge_attr.shape[1]) == 1
    params = [ep["w1"], ep["w1_r"], ep["w1_e"], ep["b1"],
              ep["w2"], ep["b2"], ep["wa"], ep["ba"],
              cp["w1"], cp["b1"], cp["w2"]]
    m, trans = _row_call(partial(_edge_coord_kernel, edge_k1=edge_k1),
                         [h_src, h_dst, coord_diff, edge_attr], params,
                         [(HIDDEN, jnp.bfloat16), (3, jnp.float32)])
    return m, trans


def pallas_node_model(h, agg_h, npar):
    return _row_call(_node_kernel, [h, agg_h],
                     [npar["w1"], npar["b1"], npar["w2"], npar["b2"]],
                     [(HIDDEN, jnp.float32)])[0]


# ----------------------------- parameters -----------------------------------
def _keygen(key):
    while True:
        key, sub = jax.random.split(key)
        yield sub


def init_params(key):
    kg = _keygen(key)

    def w_init(din, dout, std=None, dtype=jnp.float32):
        s = (1.0 / math.sqrt(3.0 * din)) if std is None else std
        return (jax.random.normal(next(kg), (din, dout)) * s).astype(dtype)

    def dense(din, dout, dtype=jnp.float32):
        return w_init(din, dout, dtype=dtype), jnp.zeros((1, dout), jnp.float32)

    p = {}
    # node encoder: Embedding(100,64) -> SiLU -> Linear(64,64)
    p["node_emb"] = (jax.random.normal(next(kg), (100, 64)) * 0.02).astype(jnp.float32)
    p["node_w"], p["node_b"] = dense(64, 64)
    # time encoder: Sinusoidal(32) -> Linear(32,32) -> SiLU -> Linear(32,32)
    p["time_w1"], p["time_b1"] = dense(32, 32)
    p["time_w2"], p["time_b2"] = dense(32, 32)
    # query encoder: Embedding(2,32) -> SiLU -> Linear(32,32)
    p["query_emb"] = (jax.random.normal(next(kg), (2, 32)) * 0.02).astype(jnp.float32)
    p["query_w"], p["query_b"] = dense(32, 32)

    # MLPEdgeEncoder(128,'relu'): bond Embedding(100,128), Linear(1,128)->ReLU->Linear(128,128)
    def edge_encoder():
        d = {"bond_emb": (jax.random.normal(next(kg), (100, 128)) * 0.02).astype(jnp.float32)}
        d["w1"], d["b1"] = dense(1, 128)                       # f32 broadcast row
        d["w2"], d["b2"] = dense(128, 128, jnp.bfloat16)
        return d

    p["edge_enc"] = edge_encoder()
    p["edge_enc2"] = edge_encoder()

    # EGNN (E_GCL, attention=True, residual, coord_mask gating, norm_constant=0)
    def egnn(n_layers, edge_nf, hidden=HIDDEN):
        g = {}
        g["emb_in_w"], g["emb_in_b"] = dense(128, hidden, jnp.bfloat16)
        g["emb_out_w"], g["emb_out_b"] = dense(hidden, 128, jnp.bfloat16)
        layers = []
        din_e = 2 * hidden + 1 + edge_nf          # [h_src | h_dst | radial | e]
        std_e = 1.0 / math.sqrt(3.0 * din_e)
        for _ in range(n_layers):
            e = {"w1": w_init(2 * hidden, hidden, std=std_e, dtype=jnp.bfloat16),
                 "w1_r": w_init(1, hidden, std=std_e, dtype=jnp.float32),
                 "b1": jnp.zeros((1, hidden), jnp.float32)}
            if edge_nf == 1:
                e["w1_e"] = w_init(1, hidden, std=std_e, dtype=jnp.float32)
            else:
                e["w1_e"] = w_init(edge_nf, hidden, std=std_e, dtype=jnp.bfloat16)
            e["w2"], e["b2"] = dense(hidden, hidden, jnp.bfloat16)
            # attention gate weight stored as a (1,H) row (VPU + lane reduction)
            e["wa"] = w_init(1, hidden, std=1.0 / math.sqrt(3.0 * hidden),
                             dtype=jnp.float32)
            e["ba"] = jnp.zeros((1, 1), jnp.float32)
            n = {"w1": w_init(2 * hidden, hidden,
                              std=1.0 / math.sqrt(3.0 * 2 * hidden),
                              dtype=jnp.bfloat16),
                 "b1": jnp.zeros((1, hidden), jnp.float32)}
            n["w2"], n["b2"] = dense(hidden, hidden, jnp.bfloat16)
            c = {}
            c["w1"], c["b1"] = dense(hidden, hidden, jnp.bfloat16)
            # reference: xavier_uniform(gain=0.001) on the (H,1) output layer
            c["w2"] = w_init(1, hidden, std=0.001 * math.sqrt(2.0 / (hidden + 1)),
                             dtype=jnp.float32)       # stored as a (1,H) row
            layers.append({"edge": e, "node": n, "coord": c})
        g["layers"] = layers
        return g

    p["encoder"] = egnn(12, 128)        # in_edge_nf=128, 12 layers
    p["encoder_cross"] = egnn(8, 1)     # in_edge_nf=1,   8 layers
    p["encoder2"] = egnn(4, 128)        # in_edge_nf=128, 4 layers
    return p


# ----------------------------- model pieces ---------------------------------
def sinusoidal_time_embedding(t, out_dim=32):
    half = out_dim // 2
    scale = math.log(10000.0) / (half - 1)
    freqs = jnp.exp(jnp.arange(half, dtype=jnp.float32) * -scale)
    args = t.astype(jnp.float32)[:, None] * freqs[None, :]
    return jnp.concatenate([jnp.sin(args), jnp.cos(args)], axis=-1)


def get_distance(pos, edge_index):
    d = pos[edge_index[0]] - pos[edge_index[1]]
    return jnp.sqrt(jnp.sum(d * d, axis=-1))


def e_gcl(h, x, src, dst, edge_attr, coord_mask_f, lp):
    N = h.shape[0]
    coord_diff = x[src] - x[dst]
    # TODO(synk): the h[src]/h[dst] gathers and the segment_sum scatter-adds stay
    # in XLA; moving them in-kernel (scalar-prefetched edge indices + in-kernel
    # per-src partial sums) is the remaining large structural win.
    m, trans = pallas_edge_coord(h[src], h[dst], coord_diff, edge_attr, lp)
    # coordinate update, gated by coord_mask (only query nodes move)
    agg_x = jax.ops.segment_sum(trans, src, num_segments=N)
    x = x + coord_mask_f[:, None] * agg_x
    # node update (residual inside the kernel); f32 accumulation of bf16 m
    agg_h = jax.ops.segment_sum(m.astype(jnp.float32), src, num_segments=N)
    h = pallas_node_model(h, agg_h, lp["node"])
    return h, x


def egnn_forward(h, x, edge_index, edge_attr, coord_mask_f, gp):
    h = pallas_linear(h, gp["emb_in_w"], gp["emb_in_b"])
    src, dst = edge_index[0], edge_index[1]
    for lp in gp["layers"]:
        h, x = e_gcl(h, x, src, dst, edge_attr, coord_mask_f, lp)
    h = pallas_linear(h, gp["emb_out_w"], gp["emb_out_b"])
    return h, x


def diffalign_forward(params, atom_type, pos, time_step, batch, query_mask_f,
                      edge_index, edge_type, edge_index_2, edge_type_2,
                      edge_index_a, query_idx):
    # h = [node_enc(atom_type) | time_enc(t[batch]) | query_enc(query_mask)]
    # fused into one kernel that emits the concatenated (N,128) directly.
    t_node = time_step[batch]
    q_ids = query_mask_f.astype(jnp.int32)
    h = node_header_forward(params,
                            params["node_emb"][atom_type],
                            sinusoidal_time_embedding(t_node, 32),
                            params["query_emb"][q_ids])                     # (N,128)
    x = pos

    edge_length = get_distance(pos, edge_index)[:, None]
    e = edge_encoder_forward(edge_length, edge_type, params["edge_enc"])
    h, x = egnn_forward(h, x, edge_index, e, query_mask_f, params["encoder"])

    edge_length_a = get_distance(x, edge_index_a)[:, None]
    h, x = egnn_forward(h, x, edge_index_a, edge_length_a, query_mask_f,
                        params["encoder_cross"])

    edge_length_2 = get_distance(x, edge_index_2)[:, None]
    e_2 = edge_encoder_forward(edge_length_2, edge_type_2, params["edge_enc2"])
    h, x = egnn_forward(h, x, edge_index_2, e_2, query_mask_f, params["encoder2"])

    return x[query_idx] - pos[query_idx]


# ----------------------------- host-side graph glue --------------------------
def build_merged_graph(nodes_per_graph=4, num_batches=2):
    """Mimics merge_graphs_in_batch node ordering: [q0, r0, q1, r1, ...]."""
    graph_idx, batch = [], []
    for b in range(num_batches):
        for which in range(2):  # 0 = query, 1 = reference
            graph_idx += [2 * b + which] * nodes_per_graph
            batch += [b] * nodes_per_graph
    graph_idx = np.array(graph_idx, np.int32)
    batch = np.array(batch, np.int32)
    N = len(graph_idx)
    # TODO(synk): extend_graph_order_radius / extend_to_cross_attention are host
    # graph-construction routines; simplified here to full intra-graph / cross-pair
    # connectivity (pure index preprocessing, no Pallas equivalent).
    src, dst = [], []
    for i in range(N):
        for j in range(N):
            if i != j and graph_idx[i] == graph_idx[j]:
                src.append(i); dst.append(j)
    edge_index = np.array([src, dst], np.int32)
    sa, da = [], []
    for i in range(N):
        for j in range(N):
            if batch[i] == batch[j] and graph_idx[i] != graph_idx[j]:
                sa.append(i); da.append(j)
    edge_index_a = np.array([sa, da], np.int32)
    return graph_idx, batch, edge_index, edge_index_a


# ----------------------------- main ------------------------------------------
if __name__ == "__main__":
    key = jax.random.PRNGKey(0)
    k_par, k_pos, k_atom, k_time, k_et1, k_et2 = jax.random.split(key, 6)

    params = init_params(k_par)

    nodes_per_graph, num_batches = 4, 2
    graph_idx, batch_np, edge_index_np, edge_index_a_np = build_merged_graph(
        nodes_per_graph, num_batches)
    N = graph_idx.shape[0]
    E = edge_index_np.shape[1]

    pos = jax.random.normal(k_pos, (N, 3), jnp.float32)
    atom_type = jax.random.randint(k_atom, (N,), 0, 65, dtype=jnp.int32)
    time_step = jax.random.randint(k_time, (num_batches,), 0, 1000, dtype=jnp.int32)
    edge_type = jax.random.randint(k_et1, (E,), 0, 4, dtype=jnp.int32)
    edge_type_2 = jax.random.randint(k_et2, (E,), 0, 4, dtype=jnp.int32)

    query_mask = (graph_idx % 2 == 0)
    query_idx = jnp.asarray(np.nonzero(query_mask)[0].astype(np.int32))
    query_mask_f = jnp.asarray(query_mask.astype(np.float32))
    batch = jnp.asarray(batch_np)
    edge_index = jnp.asarray(edge_index_np)
    edge_index_2 = edge_index  # simplified: same connectivity as edge_index
    edge_index_a = jnp.asarray(edge_index_a_np)

    @jax.jit
    def run(params, atom_type, pos, time_step, edge_type, edge_type_2):
        return diffalign_forward(params, atom_type, pos, time_step, batch,
                                 query_mask_f, edge_index, edge_type,
                                 edge_index_2, edge_type_2, edge_index_a,
                                 query_idx)

    out = run(params, atom_type, pos, time_step, edge_type, edge_type_2)
    out = jax.block_until_ready(out)
    assert out.shape == (int(query_idx.shape[0]), 3)
    assert bool(jnp.all(jnp.isfinite(out)))
    print("KERNEL_OK")
</pallas_src>

<mosaic_0001>
module attributes {stable_mosaic.version = 11 : i64} {
  func.func @_edge_enc_kernel(%arg0: i32, %arg1: memref<48x1xf32, #tpu.memory_space<vmem>>, %arg2: memref<48x128xf32, #tpu.memory_space<vmem>>, %arg3: memref<1x128xf32, #tpu.memory_space<vmem>>, %arg4: memref<1x128xf32, #tpu.memory_space<vmem>>, %arg5: memref<128x128xbf16, #tpu.memory_space<vmem>>, %arg6: memref<1x128xf32, #tpu.memory_space<vmem>>, %arg7: memref<48x128xbf16, #tpu.memory_space<vmem>>) attributes {dimension_semantics = [#tpu.dimension_semantics<parallel>], iteration_bounds = array<i64: 1>, scalar_prefetch = 0 : i64, scratch_operands = 0 : i64, tpu.core_type = #tpu.core_type<tc>, window_params = [{transform_indices = @transform_0, window_bounds = array<i64: 48, 1>}, {transform_indices = @transform_1, window_bounds = array<i64: 48, 128>}, {pipeline_mode = #tpu.pipeline_mode<synchronous>, transform_indices = @transform_2, window_bounds = array<i64: 1, 128>}, {pipeline_mode = #tpu.pipeline_mode<synchronous>, transform_indices = @transform_3, window_bounds = array<i64: 1, 128>}, {pipeline_mode = #tpu.pipeline_mode<synchronous>, transform_indices = @transform_4, window_bounds = array<i64: 128, 128>}, {pipeline_mode = #tpu.pipeline_mode<synchronous>, transform_indices = @transform_5, window_bounds = array<i64: 1, 128>}, {transform_indices = @transform_6, window_bounds = array<i64: 48, 128>}]} {
    %c0 = arith.constant 0 : index
    %c0_0 = arith.constant 0 : index
    %0 = vector.load %arg1[%c0, %c0_0] : memref<48x1xf32, #tpu.memory_space<vmem>>, vector<48x1xf32>
    %c0_1 = arith.constant 0 : index
    %c0_2 = arith.constant 0 : index
    %1 = vector.load %arg3[%c0_1, %c0_2] : memref<1x128xf32, #tpu.memory_space<vmem>>, vector<1x128xf32>
    %2 = vector.broadcast %0 : vector<48x1xf32> to vector<48x128xf32>
    %3 = vector.broadcast %1 : vector<1x128xf32> to vector<48x128xf32>
    %4 = arith.mulf %2, %3 : vector<48x128xf32>
    %c0_3 = arith.constant 0 : index
    %c0_4 = arith.constant 0 : index
    %5 = vector.load %arg4[%c0_3, %c0_4] : memref<1x128xf32, #tpu.memory_space<vmem>>, vector<1x128xf32>
    %6 = vector.broadcast %5 : vector<1x128xf32> to vector<48x128xf32>
    %7 = arith.addf %4, %6 : vector<48x128xf32>
    %cst = arith.constant 0.000000e+00 : f32
    %8 = vector.broadcast %cst : f32 to vector<48x128xf32>
    %9 = arith.maximumf %7, %8 : vector<48x128xf32>
    %c0_5 = arith.constant 0 : index
    %c0_6 = arith.constant 0 : index
    %10 = vector.load %arg5[%c0_5, %c0_6] : memref<128x128xbf16, #tpu.memory_space<vmem>>, vector<128x128xbf16>
    %11 = arith.truncf %9 : vector<48x128xf32> to vector<48x128xbf16>
    %cst_7 = arith.constant dense<0.000000e+00> : vector<48x128xf32>
    %12 = tpu.matmul %11, %10, %cst_7 {dimension_numbers = #tpu.dot_dimension_numbers<[1], [0], [0], [1], [0, 0, 1, 1], [], []>} : vector<48x128xbf16>, vector<128x128xbf16>, vector<48x128xf32> -> vector<48x128xf32>
    %c0_8 = arith.constant 0 : index
    %c0_9 = arith.constant 0 : index
    %13 = vector.load %arg6[%c0_8, %c0_9] : memref<1x128xf32, #tpu.memory_space<vmem>>, vector<1x128xf32>
    %14 = vector.broadcast %13 : vector<1x128xf32> to vector<48x128xf32>
    %15 = arith.addf %12, %14 : vector<48x128xf32>
    %c0_10 = arith.constant 0 : index
    %c0_11 = arith.constant 0 : index
    %16 = vector.load %arg2[%c0_10, %c0_11] : memref<48x128xf32, #tpu.memory_space<vmem>>, vector<48x128xf32>
    %17 = arith.mulf %15, %16 : vector<48x128xf32>
    %18 = arith.truncf %17 : vector<48x128xf32> to vector<48x128xbf16>
    %c0_12 = arith.constant 0 : index
    %c0_13 = arith.constant 0 : index
    %19 = vector.load %arg7[%c0_12, %c0_13] : memref<48x128xbf16, #tpu.memory_space<vmem>>, vector<48x128xbf16>
    tpu.vector_store %arg7[%c0_12, %c0_13], %18 {strides = array<i32>} : memref<48x128xbf16, #tpu.memory_space<vmem>>, vector<48x128xbf16>,
    return
  }
  func.func @transform_0(%arg0: i32) -> (i32, i32) {
    %c0_i32 = arith.constant 0 : i32
    %c0_i32_0 = arith.constant 0 : i32
    return %arg0, %c0_i32 : i32, i32
  }
  func.func @transform_1(%arg0: i32) -> (i32, i32) {
    %c0_i32 = arith.constant 0 : i32
    %c0_i32_0 = arith.constant 0 : i32
    return %arg0, %c0_i32 : i32, i32
  }
  func.func @transform_2(%arg0: i32) -> (i32, i32) {
    %c0_i32 = arith.constant 0 : i32
    %c0_i32_0 = arith.constant 0 : i32
    %c0_i32_1 = arith.constant 0 : i32
    return %c0_i32, %c0_i32_0 : i32, i32
  }
  func.func @transform_3(%arg0: i32) -> (i32, i32) {
    %c0_i32 = arith.constant 0 : i32
    %c0_i32_0 = arith.constant 0 : i32
    %c0_i32_1 = arith.constant 0 : i32
    return %c0_i32, %c0_i32_0 : i32, i32
  }
  func.func @transform_4(%arg0: i32) -> (i32, i32) {
    %c0_i32 = arith.constant 0 : i32
    %c0_i32_0 = arith.constant 0 : i32
    %c0_i32_1 = arith.constant 0 : i32
    return %c0_i32, %c0_i32_0 : i32, i32
  }
  func.func @transform_5(%arg0: i32) -> (i32, i32) {
    %c0_i32 = arith.constant 0 : i32
    %c0_i32_0 = arith.constant 0 : i32
    %c0_i32_1 = arith.constant 0 : i32
    return %c0_i32, %c0_i32_0 : i32, i32
  }
  func.func @transform_6(%arg0: i32) -> (i32, i32) {
    %c0_i32 = arith.constant 0 : i32
    %c0_i32_0 = arith.constant 0 : i32
    return %arg0, %c0_i32 : i32, i32
  }
}

module attributes {stable_mosaic.version = 11 : i64} {
  func.func @_linear_kernel(%arg0: i32, %arg1: memref<16x128xf32, #tpu.memory_space<vmem>>, %arg2: memref<128x128xbf16, #tpu.memory_space<vmem>>, %arg3: memref<1x128xf32, #tpu.memory_space<vmem>>, %arg4: memref<16x128xf32, #tpu.memory_space<vmem>>) attributes {dimension_semantics = [#tpu.dimension_semantics<parallel>], iteration_bounds = array<i64: 1>, scalar_prefetch = 0 : i64, scratch_operands = 0 : i64, tpu.core_type = #tpu.core_type<tc>, window_params = [{transform_indices = @transform_0, window_bounds = array<i64: 16, 128>}, {pipeline_mode = #tpu.pipeline_mode<synchronous>, transform_indices = @transform_1, window_bounds = array<i64: 128, 128>}, {pipeline_mode = #tpu.pipeline_mode<synchronous>, transform_indices = @transform_2, window_bounds = array<i64: 1, 128>}, {transform_indices = @transform_3, window_bounds = array<i64: 16, 128>}]} {
    %c0 = arith.constant 0 : index
    %c0_0 = arith.constant 0 : index
    %0 = vector.load %arg1[%c0, %c0_0] : memref<16x128xf32, #tpu.memory_space<vmem>>, vector<16x128xf32>
    %c0_1 = arith.constant 0 : index
    %c0_2 = arith.constant 0 : index
    %1 = vector.load %arg2[%c0_1, %c0_2] : memref<128x128xbf16, #tpu.memory_space<vmem>>, vector<128x128xbf16>
    %2 = arith.truncf %0 : vector<16x128xf32> to vector<16x128xbf16>
    %cst = arith.constant dense<0.000000e+00> : vector<16x128xf32>
    %3 = tpu.matmul %2, %1, %cst {dimension_numbers = #tpu.dot_dimension_numbers<[1], [0], [0], [1], [0, 0, 1, 1], [], []>} : vector<16x128xbf16>, vector<128x128xbf16>, vector<16x128xf32> -> vector<16x128xf32>
    %c0_3 = arith.constant 0 : index
    %c0_4 = arith.constant 0 : index
    %4 = vector.load %arg3[%c0_3, %c0_4] : memref<1x128xf32, #tpu.memory_space<vmem>>, vector<1x128xf32>
    %5 = vector.broadcast %4 : vector<1x128xf32> to vector<16x128xf32>
    %6 = arith.addf %3, %5 : vector<16x128xf32>
    %c0_5 = arith.constant 0 : index
    %c0_6 = arith.constant 0 : index
    %7 = vector.load %arg4[%c0_5, %c0_6] : memref<16x128xf32, #tpu.memory_space<vmem>>, vector<16x128xf32>
    tpu.vector_store %arg4[%c0_5, %c0_6], %6 {strides = array<i32>} : memref<16x128xf32, #tpu.memory_space<vmem>>, vector<16x128xf32>,
    return
  }
  func.func @transform_0(%arg0: i32) -> (i32, i32) {
    %c0_i32 = arith.constant 0 : i32
    %c0_i32_0 = arith.constant 0 : i32
    return %arg0, %c0_i32 : i32, i32
  }
  func.func @transform_1(%arg0: i32) -> (i32, i32) {
    %c0_i32 = arith.constant 0 : i32
    %c0_i32_0 = arith.constant 0 : i32
    %c0_i32_1 = arith.constant 0 : i32
    return %c0_i32, %c0_i32_0 : i32, i32
  }
  func.func @transform_2(%arg0: i32) -> (i32, i32) {
    %c0_i32 = arith.constant 0 : i32
    %c0_i32_0 = arith.constant 0 : i32
    %c0_i32_1 = arith.constant 0 : i32
    return %c0_i32, %c0_i32_0 : i32, i32
  }
  func.func @transform_3(%arg0: i32) -> (i32, i32) {
    %c0_i32 = arith.constant 0 : i32
    %c0_i32_0 = arith.constant 0 : i32
    return %arg0, %c0_i32 : i32, i32
  }
}

module attributes {stable_mosaic.version = 11 : i64} {
  func.func @_header_kernel(%arg0: i32, %arg1: memref<16x64xf32, #tpu.memory_space<vmem>>, %arg2: memref<16x32xf32, #tpu.memory_space<vmem>>, %arg3: memref<16x32xf32, #tpu.memory_space<vmem>>, %arg4: memref<64x64xf32, #tpu.memory_space<vmem>>, %arg5: memref<1x64xf32, #tpu.memory_space<vmem>>, %arg6: memref<32x32xf32, #tpu.memory_space<vmem>>, %arg7: memref<1x32xf32, #tpu.memory_space<vmem>>, %arg8: memref<32x32xf32, #tpu.memory_space<vmem>>, %arg9: memref<1x32xf32, #tpu.memory_space<vmem>>, %arg10: memref<32x32xf32, #tpu.memory_space<vmem>>, %arg11: memref<1x32xf32, #tpu.memory_space<vmem>>, %arg12: memref<16x128xf32, #tpu.memory_space<vmem>>) attributes {dimension_semantics = [#tpu.dimension_semantics<parallel>], iteration_bounds = array<i64: 1>, scalar_prefetch = 0 : i64, scratch_operands = 0 : i64, tpu.core_type = #tpu.core_type<tc>, window_params = [{transform_indices = @transform_0, window_bounds = array<i64: 16, 64>}, {transform_indices = @transform_1, window_bounds = array<i64: 16, 32>}, {transform_indices = @transform_2, window_bounds = array<i64: 16, 32>}, {pipeline_mode = #tpu.pipeline_mode<synchronous>, transform_indices = @transform_3, window_bounds = array<i64: 64, 64>}, {pipeline_mode = #tpu.pipeline_mode<synchronous>, transform_indices = @transform_4, window_bounds = array<i64: 1, 64>}, {pipeline_mode = #tpu.pipeline_mode<synchronous>, transform_indices = @transform_5, window_bounds = array<i64: 32, 32>}, {pipeline_mode = #tpu.pipeline_mode<synchronous>, transform_indices = @transform_6, window_bounds = array<i64: 1, 32>}, {pipeline_mode = #tpu.pipeline_mode<synchronous>, transform_indices = @transform_7, window_bounds = array<i64: 32, 32>}, {pipeline_mode = #tpu.pipeline_mode<synchronous>, transform_indices = @transform_8, window_bounds = array<i64: 1, 32>}, {pipeline_mode = #tpu.pipeline_mode<synchronous>, transform_indices = @transform_9, window_bounds = array<i64: 32, 32>}, {pipeline_mode = #tpu.pipeline_mode<synchronous>, transform_indices = @transform_10, window_bounds = array<i64: 1, 32>}, {transform_indices = @transform_11, window_bounds = array<i64: 16, 128>}]} {
    %c0 = arith.constant 0 : index
    %c0_0 = arith.constant 0 : index
    %0 = vector.load %arg1[%c0, %c0_0] : memref<16x64xf32, #tpu.memory_space<vmem>>, vector<16x64xf32>
    %1 = arith.negf %0 : vector<16x64xf32>
    %2 = math.exp %1 : vector<16x64xf32>
    %cst = arith.constant 1.000000e+00 : f32
    %3 = vector.broadcast %cst : f32 to vector<16x64xf32>
    %4 = arith.addf %3, %2 : vector<16x64xf32>
    %5 = arith.divf %3, %4 : vector<16x64xf32>
    %6 = arith.mulf %0, %5 : vector<16x64xf32>
    %c0_1 = arith.constant 0 : index
    %c0_2 = arith.constant 0 : index
    %7 = vector.load %arg4[%c0_1, %c0_2] : memref<64x64xf32, #tpu.memory_space<vmem>>, vector<64x64xf32>
    %cst_3 = arith.constant dense<0.000000e+00> : vector<16x64xf32>
    %8 = tpu.matmul %6, %7, %cst_3 {dimension_numbers = #tpu.dot_dimension_numbers<[1], [0], [0], [1], [0, 0, 1, 1], [], []>} : vector<16x64xf32>, vector<64x64xf32>, vector<16x64xf32> -> vector<16x64xf32>
    %c0_4 = arith.constant 0 : index
    %c0_5 = arith.constant 0 : index
    %9 = vector.load %arg5[%c0_4, %c0_5] : memref<1x64xf32, #tpu.memory_space<vmem>>, vector<1x64xf32>
    %10 = vector.broadcast %9 : vector<1x64xf32> to vector<16x64xf32>
    %11 = arith.addf %8, %10 : vector<16x64xf32>
    %c0_6 = arith.constant 0 : index
    %c0_7 = arith.constant 0 : index
    %12 = vector.load %arg2[%c0_6, %c0_7] : memref<16x32xf32, #tpu.memory_space<vmem>>, vector<16x32xf32>
    %c0_8 = arith.constant 0 : index
    %c0_9 = arith.constant 0 : index
    %13 = vector.load %arg6[%c0_8, %c0_9] : memref<32x32xf32, #tpu.memory_space<vmem>>, vector<32x32xf32>
    %cst_10 = arith.constant dense<0.000000e+00> : vector<16x32xf32>
    %14 = tpu.matmul %12, %13, %cst_10 {dimension_numbers = #tpu.dot_dimension_numbers<[1], [0], [0], [1], [0, 0, 1, 1], [], []>} : vector<16x32xf32>, vector<32x32xf32>, vector<16x32xf32> -> vector<16x32xf32>
    %c0_11 = arith.constant 0 : index
    %c0_12 = arith.constant 0 : index
    %15 = vector.load %arg7[%c0_11, %c0_12] : memref<1x32xf32, #tpu.memory_space<vmem>>, vector<1x32xf32>
    %16 = vector.broadcast %15 : vector<1x32xf32> to vector<16x32xf32>
    %17 = arith.addf %14, %16 : vector<16x32xf32>
    %18 = arith.negf %17 : vector<16x32xf32>
    %19 = math.exp %18 : vector<16x32xf32>
    %cst_13 = arith.constant 1.000000e+00 : f32
    %20 = vector.broadcast %cst_13 : f32 to vector<16x32xf32>
    %21 = arith.addf %20, %19 : vector<16x32xf32>
    %22 = arith.divf %20, %21 : vector<16x32xf32>
    %23 = arith.mulf %17, %22 : vector<16x32xf32>
    %c0_14 = arith.constant 0 : index
    %c0_15 = arith.constant 0 : index
    %24 = vector.load %arg8[%c0_14, %c0_15] : memref<32x32xf32, #tpu.memory_space<vmem>>, vector<32x32xf32>
    %cst_16 = arith.constant dense<0.000000e+00> : vector<16x32xf32>
    %25 = tpu.matmul %23, %24, %cst_16 {dimension_numbers = #tpu.dot_dimension_numbers<[1], [0], [0], [1], [0, 0, 1, 1], [], []>} : vector<16x32xf32>, vector<32x32xf32>, vector<16x32xf32> -> vector<16x32xf32>
    %c0_17 = arith.constant 0 : index
    %c0_18 = arith.constant 0 : index
    %26 = vector.load %arg9[%c0_17, %c0_18] : memref<1x32xf32, #tpu.memory_space<vmem>>, vector<1x32xf32>
    %27 = vector.broadcast %26 : vector<1x32xf32> to vector<16x32xf32>
    %28 = arith.addf %25, %27 : vector<16x32xf32>
    %c0_19 = arith.constant 0 : index
    %c0_20 = arith.constant 0 : index
    %29 = vector.load %arg3[%c0_19, %c0_20] : memref<16x32xf32, #tpu.memory_space<vmem>>, vector<16x32xf32>
    %30 = arith.negf %29 : vector<16x32xf32>
    %31 = math.exp %30 : vector<16x32xf32>
    %cst_21 = arith.constant 1.000000e+00 : f32
    %32 = vector.broadcast %cst_21 : f32 to vector<16x32xf32>
    %33 = arith.addf %32, %31 : vector<16x32xf32>
    %34 = arith.divf %32, %33 : vector<16x32xf32>
    %35 = arith.mulf %29, %34 : vector<16x32xf32>
    %c0_22 = arith.constant 0 : index
    %c0_23 = arith.constant 0 : index
    %36 = vector.load %arg10[%c0_22, %c0_23] : memref<32x32xf32, #tpu.memory_space<vmem>>, vector<32x32xf32>
    %cst_24 = arith.constant dense<0.000000e+00> : vector<16x32xf32>
    %37 = tpu.matmul %35, %36, %cst_24 {dimension_numbers = #tpu.dot_dimension_numbers<[1], [0], [0], [1], [0, 0, 1, 1], [], []>} : vector<16x32xf32>, vector<32x32xf32>, vector<16x32xf32> -> vector<16x32xf32>
    %c0_25 = arith.constant 0 : index
    %c0_26 = arith.constant 0 : index
    %38 = vector.load %arg11[%c0_25, %c0_26] : memref<1x32xf32, #tpu.memory_space<vmem>>, vector<1x32xf32>
    %39 = vector.broadcast %38 : vector<1x32xf32> to vector<16x32xf32>
    %40 = arith.addf %37, %39 : vector<16x32xf32>
    %41 = tpu.concatenate %11, %28, %40 in 1 : vector<16x64xf32>, vector<16x32xf32>, vector<16x32xf32> -> vector<16x128xf32>
    %c0_27 = arith.constant 0 : index
    %c0_28 = arith.constant 0 : index
    %42 = vector.load %arg12[%c0_27, %c0_28] : memref<16x128xf32, #tpu.memory_space<vmem>>, vector<16x128xf32>
    tpu.vector_store %arg12[%c0_27, %c0_28], %41 {strides = array<i32>} : memref<16x128xf32, #tpu.memory_space<vmem>>, vector<16x128xf32>,
    return
  }
  func.func @transform_0(%arg0: i32) -> (i32, i32) {
    %c0_i32 = arith.constant 0 : i32
    %c0_i32_0 = arith.constant 0 : i32
    return %arg0, %c0_i32 : i32, i32
  }
  func.func @transform_1(%arg0: i32) -> (i32, i32) {
    %c0_i32 = arith.constant 0 : i32
    %c0_i32_0 = arith.constant 0 : i32
    return %arg0, %c0_i32 : i32, i32
  }
  func.func @transform_2(%arg0: i32) -> (i32, i32) {
    %c0_i32 = arith.constant 0 : i32
    %c0_i32_0 = arith.constant 0 : i32
    return %arg0, %c0_i32 : i32, i32
  }
  func.func @transform_3(%arg0: i32) -> (i32, i32) {
    %c0_i32 = arith.constant 0 : i32
    %c0_i32_0 = arith.constant 0 : i32
    %c0_i32_1 = arith.constant 0 : i32
    return %c0_i32, %c0_i32_0 : i32, i32
  }
  func.func @transform_4(%arg0: i32) -> (i32, i32) {
    %c0_i32 = arith.constant 0 : i32
    %c0_i32_0 = arith.constant 0 : i32
    %c0_i32_1 = arith.constant 0 : i32
    return %c0_i32, %c0_i32_0 : i32, i32
  }
  func.func @transform_5(%arg0: i32) -> (i32, i32) {
    %c0_i32 = arith.constant 0 : i32
    %c0_i32_0 = arith.constant 0 : i32
    %c0_i32_1 = arith.constant 0 : i32
    return %c0_i32, %c0_i32_0 : i32, i32
  }
  func.func @transform_6(%arg0: i32) -> (i32, i32) {
    %c0_i32 = arith.constant 0 : i32
    %c0_i32_0 = arith.constant 0 : i32
    %c0_i32_1 = arith.constant 0 : i32
    return %c0_i32, %c0_i32_0 : i32, i32
  }
  func.func @transform_7(%arg0: i32) -> (i32, i32) {
    %c0_i32 = arith.constant 0 : i32
    %c0_i32_0 = arith.constant 0 : i32
    %c0_i32_1 = arith.constant 0 : i32
    return %c0_i32, %c0_i32_0 : i32, i32
  }
  func.func @transform_8(%arg0: i32) -> (i32, i32) {
    %c0_i32 = arith.constant 0 : i32
    %c0_i32_0 = arith.constant 0 : i32
    %c0_i32_1 = arith.constant 0 : i32
    return %c0_i32, %c0_i32_0 : i32, i32
  }
  func.func @transform_9(%arg0: i32) -> (i32, i32) {
    %c0_i32 = arith.constant 0 : i32
    %c0_i32_0 = arith.constant 0 : i32
    %c0_i32_1 = arith.constant 0 : i32
    return %c0_i32, %c0_i32_0 : i32, i32
  }
  func.func @transform_10(%arg0: i32) -> (i32, i32) {
    %c0_i32 = arith.constant 0 : i32
    %c0_i32_0 = arith.constant 0 : i32
    %c0_i32_1 = arith.constant 0 : i32
    return %c0_i32, %c0_i32_0 : i32, i32
  }
  func.func @transform_11(%arg0: i32) -> (i32, i32) {
    %c0_i32 = arith.constant 0 : i32
    %c0_i32_0 = arith.constant 0 : i32
    return %arg0, %c0_i32 : i32, i32
  }
}

module attributes {stable_mosaic.version = 11 : i64} {
  func.func @_edge_coord_kernel(%arg0: i32, %arg1: memref<48x128xf32, #tpu.memory_space<vmem>>, %arg2: memref<48x128xf32, #tpu.memory_space<vmem>>, %arg3: memref<48x3xf32, #tpu.memory_space<vmem>>, %arg4: memref<48x128xbf16, #tpu.memory_space<vmem>>, %arg5: memref<256x128xbf16, #tpu.memory_space<vmem>>, %arg6: memref<1x128xf32, #tpu.memory_space<vmem>>, %arg7: memref<128x128xbf16, #tpu.memory_space<vmem>>, %arg8: memref<1x128xf32, #tpu.memory_space<vmem>>, %arg9: memref<128x128xbf16, #tpu.memory_space<vmem>>, %arg10: memref<1x128xf32, #tpu.memory_space<vmem>>, %arg11: memref<1x128xf32, #tpu.memory_space<vmem>>, %arg12: memref<1x1xf32, #tpu.memory_space<vmem>>, %arg13: memref<128x128xbf16, #tpu.memory_space<vmem>>, %arg14: memref<1x128xf32, #tpu.memory_space<vmem>>, %arg15: memref<1x128xf32, #tpu.memory_space<vmem>>, %arg16: memref<48x128xbf16, #tpu.memory_space<vmem>>, %arg17: memref<48x3xf32, #tpu.memory_space<vmem>>) attributes {dimension_semantics = [#tpu.dimension_semantics<parallel>], iteration_bounds = array<i64: 1>, scalar_prefetch = 0 : i64, scratch_operands = 0 : i64, tpu.core_type = #tpu.core_type<tc>, window_params = [{transform_indices = @transform_0, window_bounds = array<i64: 48, 128>}, {transform_indices = @transform_1, window_bounds = array<i64: 48, 128>}, {transform_indices = @transform_2, window_bounds = array<i64: 48, 3>}, {transform_indices = @transform_3, window_bounds = array<i64: 48, 128>}, {pipeline_mode = #tpu.pipeline_mode<synchronous>, transform_indices = @transform_4, window_bounds = array<i64: 256, 128>}, {pipeline_mode = #tpu.pipeline_mode<synchronous>, transform_indices = @transform_5, window_bounds = array<i64: 1, 128>}, {pipeline_mode = #tpu.pipeline_mode<synchronous>, transform_indices = @transform_6, window_bounds = array<i64: 128, 128>}, {pipeline_mode = #tpu.pipeline_mode<synchronous>, transform_indices = @transform_7, window_bounds = array<i64: 1, 128>}, {pipeline_mode = #tpu.pipeline_mode<synchronous>, transform_indices = @transform_8, window_bounds = array<i64: 128, 128>}, {pipeline_mode = #tpu.pipeline_mode<synchronous>, transform_indices = @transform_9, window_bounds = array<i64: 1, 128>}, {pipeline_mode = #tpu.pipeline_mode<synchronous>, transform_indices = @transform_10, window_bounds = array<i64: 1, 128>}, {pipeline_mode = #tpu.pipeline_mode<synchronous>, transform_indices = @transform_11, window_bounds = array<i64: 1, 1>}, {pipeline_mode = #tpu.pipeline_mode<synchronous>, transform_indices = @transform_12, window_bounds = array<i64: 128, 128>}, {pipeline_mode = #tpu.pipeline_mode<synchronous>, transform_indices = @transform_13, window_bounds = array<i64: 1, 128>}, {pipeline_mode = #tpu.pipeline_mode<synchronous>, transform_indices = @transform_14, window_bounds = array<i64: 1, 128>}, {transform_indices = @transform_15, window_bounds = array<i64: 48, 128>}, {transform_indices = @transform_16, window_bounds = array<i64: 48, 3>}]} {
    %c0 = arith.constant 0 : index
    %c0_0 = arith.constant 0 : index
    %0 = vector.load %arg3[%c0, %c0_0] : memref<48x3xf32, #tpu.memory_space<vmem>>, vector<48x3xf32>
    %1 = arith.mulf %0, %0 : vector<48x3xf32>
    %cst = arith.constant dense<0.000000e+00> : vector<48xf32>
    %2 = vector.multi_reduction <add>, %1, %cst [1] : vector<48x3xf32> to vector<48xf32>
    %3 = vector.shape_cast %2 : vector<48xf32> to vector<48x1xf32>
    %c0_1 = arith.constant 0 : index
    %c0_2 = arith.constant 0 : index
    %4 = vector.load %arg1[%c0_1, %c0_2] : memref<48x128xf32, #tpu.memory_space<vmem>>, vector<48x128xf32>
    %c0_3 = arith.constant 0 : index
    %c0_4 = arith.constant 0 : index
    %5 = vector.load %arg2[%c0_3, %c0_4] : memref<48x128xf32, #tpu.memory_space<vmem>>, vector<48x128xf32>
    %6 = tpu.concatenate %4, %5 in 1 : vector<48x128xf32>, vector<48x128xf32> -> vector<48x256xf32>
    %c0_5 = arith.constant 0 : index
    %c0_6 = arith.constant 0 : index
    %7 = vector.load %arg5[%c0_5, %c0_6] : memref<256x128xbf16, #tpu.memory_space<vmem>>, vector<256x128xbf16>
    %8 = arith.truncf %6 : vector<48x256xf32> to vector<48x256xbf16>
    %cst_7 = arith.constant dense<0.000000e+00> : vector<48x128xf32>
    %9 = tpu.matmul %8, %7, %cst_7 {dimension_numbers = #tpu.dot_dimension_numbers<[1], [0], [0], [1], [0, 0, 1, 1], [], []>} : vector<48x256xbf16>, vector<256x128xbf16>, vector<48x128xf32> -> vector<48x128xf32>
    %c0_8 = arith.constant 0 : index
    %c0_9 = arith.constant 0 : index
    %10 = vector.load %arg6[%c0_8, %c0_9] : memref<1x128xf32, #tpu.memory_space<vmem>>, vector<1x128xf32>
    %11 = vector.broadcast %3 : vector<48x1xf32> to vector<48x128xf32>
    %12 = vector.broadcast %10 : vector<1x128xf32> to vector<48x128xf32>
    %13 = arith.mulf %11, %12 : vector<48x128xf32>
    %14 = arith.addf %9, %13 : vector<48x128xf32>
    %c0_10 = arith.constant 0 : index
    %c0_11 = arith.constant 0 : index
    %15 = vector.load %arg8[%c0_10, %c0_11] : memref<1x128xf32, #tpu.memory_space<vmem>>, vector<1x128xf32>
    %16 = vector.broadcast %15 : vector<1x128xf32> to vector<48x128xf32>
    %17 = arith.addf %14, %16 : vector<48x128xf32>
    %c0_12 = arith.constant 0 : index
    %c0_13 = arith.constant 0 : index
    %18 = vector.load %arg4[%c0_12, %c0_13] : memref<48x128xbf16, #tpu.memory_space<vmem>>, vector<48x128xbf16>
    %c0_14 = arith.constant 0 : index
    %c0_15 = arith.constant 0 : index
    %19 = vector.load %arg7[%c0_14, %c0_15] : memref<128x128xbf16, #tpu.memory_space<vmem>>, vector<128x128xbf16>
    %cst_16 = arith.constant dense<0.000000e+00> : vector<48x128xf32>
    %20 = tpu.matmul %18, %19, %cst_16 {dimension_numbers = #tpu.dot_dimension_numbers<[1], [0], [0], [1], [0, 0, 1, 1], [], []>} : vector<48x128xbf16>, vector<128x128xbf16>, vector<48x128xf32> -> vector<48x128xf32>
    %21 = arith.addf %17, %20 : vector<48x128xf32>
    %22 = arith.negf %21 : vector<48x128xf32>
    %23 = math.exp %22 : vector<48x128xf32>
    %cst_17 = arith.constant 1.000000e+00 : f32
    %24 = vector.broadcast %cst_17 : f32 to vector<48x128xf32>
    %25 = arith.addf %24, %23 : vector<48x128xf32>
    %26 = arith.divf %24, %25 : vector<48x128xf32>
    %27 = arith.mulf %21, %26 : vector<48x128xf32>
    %c0_18 = arith.constant 0 : index
    %c0_19 = arith.constant 0 : index
    %28 = vector.load %arg9[%c0_18, %c0_19] : memref<128x128xbf16, #tpu.memory_space<vmem>>, vector<128x128xbf16>
    %29 = arith.truncf %27 : vector<48x128xf32> to vector<48x128xbf16>
    %cst_20 = arith.constant dense<0.000000e+00> : vector<48x128xf32>
    %30 = tpu.matmul %29, %28, %cst_20 {dimension_numbers = #tpu.dot_dimension_numbers<[1], [0], [0], [1], [0, 0, 1, 1], [], []>} : vector<48x128xbf16>, vector<128x128xbf16>, vector<48x128xf32> -> vector<48x128xf32>
    %c0_21 = arith.constant 0 : index
    %c0_22 = arith.constant 0 : index
    %31 = vector.load %arg10[%c0_21, %c0_22] : memref<1x128xf32, #tpu.memory_space<vmem>>, vector<1x128xf32>
    %32 = vector.broadcast %31 : vector<1x128xf32> to vector<48x128xf32>
    %33 = arith.addf %30, %32 : vector<48x128xf32>
    %34 = arith.negf %33 : vector<48x128xf32>
    %35 = math.exp %34 : vector<48x128xf32>
    %cst_23 = arith.constant 1.000000e+00 : f32
    %36 = vector.broadcast %cst_23 : f32 to vector<48x128xf32>
    %37 = arith.addf %36, %35 : vector<48x128xf32>
    %38 = arith.divf %36, %37 : vector<48x128xf32>
    %39 = arith.mulf %33, %38 : vector<48x128xf32>
    %c0_24 = arith.constant 0 : index
    %c0_25 = arith.constant 0 : index
    %40 = vector.load %arg11[%c0_24, %c0_25] : memref<1x128xf32, #tpu.memory_space<vmem>>, vector<1x128xf32>
    %41 = vector.broadcast %40 : vector<1x128xf32> to vector<48x128xf32>
    %42 = arith.mulf %39, %41 : vector<48x128xf32>
    %cst_26 = arith.constant dense<0.000000e+00> : vector<48xf32>
    %43 = vector.multi_reduction <add>, %42, %cst_26 [1] : vector<48x128xf32> to vector<48xf32>
    %44 = vector.shape_cast %43 : vector<48xf32> to vector<48x1xf32>
    %c0_27 = arith.constant 0 : index
    %c0_28 = arith.constant 0 : index
    %45 = vector.load %arg12[%c0_27, %c0_28] : memref<1x1xf32, #tpu.memory_space<vmem>>, vector<1x1xf32>
    %46 = vector.broadcast %45 : vector<1x1xf32> to vector<48x1xf32>
    %47 = arith.addf %44, %46 : vector<48x1xf32>
    %48 = arith.negf %47 : vector<48x1xf32>
    %49 = math.exp %48 : vector<48x1xf32>
    %cst_29 = arith.constant 1.000000e+00 : f32
    %50 = vector.broadcast %cst_29 : f32 to vector<48x1xf32>
    %51 = arith.addf %50, %49 : vector<48x1xf32>
    %52 = arith.divf %50, %51 : vector<48x1xf32>
    %53 = vector.broadcast %52 : vector<48x1xf32> to vector<48x128xf32>
    %54 = arith.mulf %39, %53 : vector<48x128xf32>
    %55 = arith.truncf %54 : vector<48x128xf32> to vector<48x128xbf16>
    %c0_30 = arith.constant 0 : index
    %c0_31 = arith.constant 0 : index
    %56 = vector.load %arg16[%c0_30, %c0_31] : memref<48x128xbf16, #tpu.memory_space<vmem>>, vector<48x128xbf16>
    tpu.vector_store %arg16[%c0_30, %c0_31], %55 {strides = array<i32>} : memref<48x128xbf16, #tpu.memory_space<vmem>>, vector<48x128xbf16>,
    %c0_32 = arith.constant 0 : index
    %c0_33 = arith.constant 0 : index
    %57 = vector.load %arg13[%c0_32, %c0_33] : memref<128x128xbf16, #tpu.memory_space<vmem>>, vector<128x128xbf16>
    %58 = arith.truncf %54 : vector<48x128xf32> to vector<48x128xbf16>
    %cst_34 = arith.constant dense<0.000000e+00> : vector<48x128xf32>
    %59 = tpu.matmul %58, %57, %cst_34 {dimension_numbers = #tpu.dot_dimension_numbers<[1], [0], [0], [1], [0, 0, 1, 1], [], []>} : vector<48x128xbf16>, vector<128x128xbf16>, vector<48x128xf32> -> vector<48x128xf32>
    %c0_35 = arith.constant 0 : index
    %c0_36 = arith.constant 0 : index
    %60 = vector.load %arg14[%c0_35, %c0_36] : memref<1x128xf32, #tpu.memory_space<vmem>>, vector<1x128xf32>
    %61 = vector.broadcast %60 : vector<1x128xf32> to vector<48x128xf32>
    %62 = arith.addf %59, %61 : vector<48x128xf32>
    %63 = arith.negf %62 : vector<48x128xf32>
    %64 = math.exp %63 : vector<48x128xf32>
    %cst_37 = arith.constant 1.000000e+00 : f32
    %65 = vector.broadcast %cst_37 : f32 to vector<48x128xf32>
    %66 = arith.addf %65, %64 : vector<48x128xf32>
    %67 = arith.divf %65, %66 : vector<48x128xf32>
    %68 = arith.mulf %62, %67 : vector<48x128xf32>
    %c0_38 = arith.constant 0 : index
    %c0_39 = arith.constant 0 : index
    %69 = vector.load %arg15[%c0_38, %c0_39] : memref<1x128xf32, #tpu.memory_space<vmem>>, vector<1x128xf32>
    %70 = vector.broadcast %69 : vector<1x128xf32> to vector<48x128xf32>
    %71 = arith.mulf %68, %70 : vector<48x128xf32>
    %cst_40 = arith.constant dense<0.000000e+00> : vector<48xf32>
    %72 = vector.multi_reduction <add>, %71, %cst_40 [1] : vector<48x128xf32> to vector<48xf32>
    %73 = vector.shape_cast %72 : vector<48xf32> to vector<48x1xf32>
    %cst_41 = arith.constant 9.99999993E-9 : f32
    %74 = vector.broadcast %cst_41 : f32 to vector<48x1xf32>
    %75 = arith.addf %3, %74 : vector<48x1xf32>
    %76 = math.rsqrt %75 : vector<48x1xf32>
    %77 = arith.mulf %76, %73 : vector<48x1xf32>
    %78 = vector.broadcast %77 : vector<48x1xf32> to vector<48x3xf32>
    %79 = arith.mulf %0, %78 : vector<48x3xf32>
    %c0_42 = arith.constant 0 : index
    %c0_43 = arith.constant 0 : index
    %80 = vector.load %arg17[%c0_42, %c0_43] : memref<48x3xf32, #tpu.memory_space<vmem>>, vector<48x3xf32>
    tpu.vector_store %arg17[%c0_42, %c0_43], %79 {strides = array<i32>} : memref<48x3xf32, #tpu.memory_space<vmem>>, vector<48x3xf32>,
    return
  }
  func.func @transform_0(%arg0: i32) -> (i32, i32) {
    %c0_i32 = arith.constant 0 : i32
    %c0_i32_0 = arith.constant 0 : i32
    return %arg0, %c0_i32 : i32, i32
  }
  func.func @transform_1(%arg0: i32) -> (i32, i32) {
    %c0_i32 = arith.constant 0 : i32
    %c0_i32_0 = arith.constant 0 : i32
    return %arg0, %c0_i32 : i32, i32
  }
  func.func @transform_2(%arg0: i32) -> (i32, i32) {
    %c0_i32 = arith.constant 0 : i32
    %c0_i32_0 = arith.constant 0 : i32
    return %arg0, %c0_i32 : i32, i32
  }
  func.func @transform_3(%arg0: i32) -> (i32, i32) {
    %c0_i32 = arith.constant 0 : i32
    %c0_i32_0 = arith.constant 0 : i32
    return %arg0, %c0_i32 : i32, i32
  }
  func.func @transform_4(%arg0: i32) -> (i32, i32) {
    %c0_i32 = arith.constant 0 : i32
    %c0_i32_0 = arith.constant 0 : i32
    %c0_i32_1 = arith.constant 0 : i32
    return %c0_i32, %c0_i32_0 : i32, i32
  }
  func.func @transform_5(%arg0: i32) -> (i32, i32) {
    %c0_i32 = arith.constant 0 : i32
    %c0_i32_0 = arith.constant 0 : i32
    %c0_i32_1 = arith.constant 0 : i32
    return %c0_i32, %c0_i32_0 : i32, i32
  }
  func.func @transform_6(%arg0: i32) -> (i32, i32) {
    %c0_i32 = arith.constant 0 : i32
    %c0_i32_0 = arith.constant 0 : i32
    %c0_i32_1 = arith.constant 0 : i32
    return %c0_i32, %c0_i32_0 : i32, i32
  }
  func.func @transform_7(%arg0: i32) -> (i32, i32) {
    %c0_i32 = arith.constant 0 : i32
    %c0_i32_0 = arith.constant 0 : i32
    %c0_i32_1 = arith.constant 0 : i32
    return %c0_i32, %c0_i32_0 : i32, i32
  }
  func.func @transform_8(%arg0: i32) -> (i32, i32) {
    %c0_i32 = arith.constant 0 : i32
    %c0_i32_0 = arith.constant 0 : i32
    %c0_i32_1 = arith.constant 0 : i32
    return %c0_i32, %c0_i32_0 : i32, i32
  }
  func.func @transform_9(%arg0: i32) -> (i32, i32) {
    %c0_i32 = arith.constant 0 : i32
    %c0_i32_0 = arith.constant 0 : i32
    %c0_i32_1 = arith.constant 0 : i32
    return %c0_i32, %c0_i32_0 : i32, i32
  }
  func.func @transform_10(%arg0: i32) -> (i32, i32) {
    %c0_i32 = arith.constant 0 : i32
    %c0_i32_0 = arith.constant 0 : i32
    %c0_i32_1 = arith.constant 0 : i32
    return %c0_i32, %c0_i32_0 : i32, i32
  }
  func.func @transform_11(%arg0: i32) -> (i32, i32) {
    %c0_i32 = arith.constant 0 : i32
    %c0_i32_0 = arith.constant 0 : i32
    %c0_i32_1 = arith.constant 0 : i32
    return %c0_i32, %c0_i32_0 : i32, i32
  }
  func.func @transform_12(%arg0: i32) -> (i32, i32) {
    %c0_i32 = arith.constant 0 : i32
    %c0_i32_0 = arith.constant 0 : i32
    %c0_i32_1 = arith.constant 0 : i32
    return %c0_i32, %c0_i32_0 : i32, i32
  }
  func.func @transform_13(%arg0: i32) -> (i32, i32) {
    %c0_i32 = arith.constant 0 : i32
    %c0_i32_0 = arith.constant 0 : i32
    %c0_i32_1 = arith.constant 0 : i32
    return %c0_i32, %c0_i32_0 : i32, i32
  }
  func.func @transform_14(%arg0: i32) -> (i32, i32) {
    %c0_i32 = arith.constant 0 : i32
    %c0_i32_0 = arith.constant 0 : i32
    %c0_i32_1 = arith.constant 0 : i32
    return %c0_i32, %c0_i32_0 : i32, i32
  }
  func.func @transform_15(%arg0: i32) -> (i32, i32) {
    %c0_i32 = arith.constant 0 : i32
    %c0_i32_0 = arith.constant 0 : i32
    return %arg0, %c0_i32 : i32, i32
  }
  func.func @transform_16(%arg0: i32) -> (i32, i32) {
    %c0_i32 = arith.constant 0 : i32
    %c0_i32_0 = arith.constant 0 : i32
    return %arg0, %c0_i32 : i32, i32
  }
}

module attributes {stable_mosaic.version = 11 : i64} {
  func.func @_node_kernel(%arg0: i32, %arg1: memref<16x128xf32, #tpu.memory_space<vmem>>, %arg2: memref<16x128xf32, #tpu.memory_space<vmem>>, %arg3: memref<256x128xbf16, #tpu.memory_space<vmem>>, %arg4: memref<1x128xf32, #tpu.memory_space<vmem>>, %arg5: memref<128x128xbf16, #tpu.memory_space<vmem>>, %arg6: memref<1x128xf32, #tpu.memory_space<vmem>>, %arg7: memref<16x128xf32, #tpu.memory_space<vmem>>) attributes {dimension_semantics = [#tpu.dimension_semantics<parallel>], iteration_bounds = array<i64: 1>, scalar_prefetch = 0 : i64, scratch_operands = 0 : i64, tpu.core_type = #tpu.core_type<tc>, window_params = [{transform_indices = @transform_0, window_bounds = array<i64: 16, 128>}, {transform_indices = @transform_1, window_bounds = array<i64: 16, 128>}, {pipeline_mode = #tpu.pipeline_mode<synchronous>, transform_indices = @transform_2, window_bounds = array<i64: 256, 128>}, {pipeline_mode = #tpu.pipeline_mode<synchronous>, transform_indices = @transform_3, window_bounds = array<i64: 1, 128>}, {pipeline_mode = #tpu.pipeline_mode<synchronous>, transform_indices = @transform_4, window_bounds = array<i64: 128, 128>}, {pipeline_mode = #tpu.pipeline_mode<synchronous>, transform_indices = @transform_5, window_bounds = array<i64: 1, 128>}, {transform_indices = @transform_6, window_bounds = array<i64: 16, 128>}]} {
    %c0 = arith.constant 0 : index
    %c0_0 = arith.constant 0 : index
    %0 = vector.load %arg1[%c0, %c0_0] : memref<16x128xf32, #tpu.memory_space<vmem>>, vector<16x128xf32>
    %c0_1 = arith.constant 0 : index
    %c0_2 = arith.constant 0 : index
    %1 = vector.load %arg2[%c0_1, %c0_2] : memref<16x128xf32, #tpu.memory_space<vmem>>, vector<16x128xf32>
    %2 = tpu.concatenate %0, %1 in 1 : vector<16x128xf32>, vector<16x128xf32> -> vector<16x256xf32>
    %c0_3 = arith.constant 0 : index
    %c0_4 = arith.constant 0 : index
    %3 = vector.load %arg3[%c0_3, %c0_4] : memref<256x128xbf16, #tpu.memory_space<vmem>>, vector<256x128xbf16>
    %4 = arith.truncf %2 : vector<16x256xf32> to vector<16x256xbf16>
    %cst = arith.constant dense<0.000000e+00> : vector<16x128xf32>
    %5 = tpu.matmul %4, %3, %cst {dimension_numbers = #tpu.dot_dimension_numbers<[1], [0], [0], [1], [0, 0, 1, 1], [], []>} : vector<16x256xbf16>, vector<256x128xbf16>, vector<16x128xf32> -> vector<16x128xf32>
    %c0_5 = arith.constant 0 : index
    %c0_6 = arith.constant 0 : index
    %6 = vector.load %arg4[%c0_5, %c0_6] : memref<1x128xf32, #tpu.memory_space<vmem>>, vector<1x128xf32>
    %7 = vector.broadcast %6 : vector<1x128xf32> to vector<16x128xf32>
    %8 = arith.addf %5, %7 : vector<16x128xf32>
    %9 = arith.negf %8 : vector<16x128xf32>
    %10 = math.exp %9 : vector<16x128xf32>
    %cst_7 = arith.constant 1.000000e+00 : f32
    %11 = vector.broadcast %cst_7 : f32 to vector<16x128xf32>
    %12 = arith.addf %11, %10 : vector<16x128xf32>
    %13 = arith.divf %11, %12 : vector<16x128xf32>
    %14 = arith.mulf %8, %13 : vector<16x128xf32>
    %c0_8 = arith.constant 0 : index
    %c0_9 = arith.constant 0 : index
    %15 = vector.load %arg1[%c0_8, %c0_9] : memref<16x128xf32, #tpu.memory_space<vmem>>, vector<16x128xf32>
    %c0_10 = arith.constant 0 : index
    %c0_11 = arith.constant 0 : index
    %16 = vector.load %arg5[%c0_10, %c0_11] : memref<128x128xbf16, #tpu.memory_space<vmem>>, vector<128x128xbf16>
    %17 = arith.truncf %14 : vector<16x128xf32> to vector<16x128xbf16>
    %cst_12 = arith.constant dense<0.000000e+00> : vector<16x128xf32>
    %18 = tpu.matmul %17, %16, %cst_12 {dimension_numbers = #tpu.dot_dimension_numbers<[1], [0], [0], [1], [0, 0, 1, 1], [], []>} : vector<16x128xbf16>, vector<128x128xbf16>, vector<16x128xf32> -> vector<16x128xf32>
    %19 = arith.addf %15, %18 : vector<16x128xf32>
    %c0_13 = arith.constant 0 : index
    %c0_14 = arith.constant 0 : index
    %20 = vector.load %arg6[%c0_13, %c0_14] : memref<1x128xf32, #tpu.memory_space<vmem>>, vector<1x128xf32>
    %21 = vector.broadcast %20 : vector<1x128xf32> to vector<16x128xf32>
    %22 = arith.addf %19, %21 : vector<16x128xf32>
    %c0_15 = arith.constant 0 : index
    %c0_16 = arith.constant 0 : index
    %23 = vector.load %arg7[%c0_15, %c0_16] : memref<16x128xf32, #tpu.memory_space<vmem>>, vector<16x128xf32>
    tpu.vector_store %arg7[%c0_15, %c0_16], %22 {strides = array<i32>} : memref<16x128xf32, #tpu.memory_space<vmem>>, vector<16x128xf32>,
    return
  }
  func.func @transform_0(%arg0: i32) -> (i32, i32) {
    %c0_i32 = arith.constant 0 : i32
    %c0_i32_0 = arith.constant 0 : i32
    return %arg0, %c0_i32 : i32, i32
  }
  func.func @transform_1(%arg0: i32) -> (i32, i32) {
    %c0_i32 = arith.constant 0 : i32
    %c0_i32_0 = arith.constant 0 : i32
    return %arg0, %c0_i32 : i32, i32
  }
  func.func @transform_2(%arg0: i32) -> (i32, i32) {
    %c0_i32 = arith.constant 0 : i32
    %c0_i32_0 = arith.constant 0 : i32
    %c0_i32_1 = arith.constant 0 : i32
    return %c0_i32, %c0_i32_0 : i32, i32
  }
  func.func @transform_3(%arg0: i32) -> (i32, i32) {
    %c0_i32 = arith.constant 0 : i32
    %c0_i32_0 = arith.constant 0 : i32
    %c0_i32_1 = arith.constant 0 : i32
    return %c0_i32, %c0_i32_0 : i32, i32
  }
  func.func @transform_4(%arg0: i32) -> (i32, i32) {
    %c0_i32 = arith.constant 0 : i32
    %c0_i32_0 = arith.constant 0 : i32
    %c0_i32_1 = arith.constant 0 : i32
    return %c0_i32, %c0_i32_0 : i32, i32
  }
  func.func @transform_5(%arg0: i32) -> (i32, i32) {
    %c0_i32 = arith.constant 0 : i32
    %c0_i32_0 = arith.constant 0 : i32
    %c0_i32_1 = arith.constant 0 : i32
    return %c0_i32, %c0_i32_0 : i32, i32
  }
  func.func @transform_6(%arg0: i32) -> (i32, i32) {
    %c0_i32 = arith.constant 0 : i32
    %c0_i32_0 = arith.constant 0 : i32
    return %arg0, %c0_i32 : i32, i32
  }
}

module attributes {stable_mosaic.version = 11 : i64} {
  func.func @_edge_coord_kernel(%arg0: i32, %arg1: memref<64x128xf32, #tpu.memory_space<vmem>>, %arg2: memref<64x128xf32, #tpu.memory_space<vmem>>, %arg3: memref<64x3xf32, #tpu.memory_space<vmem>>, %arg4: memref<64x1xf32, #tpu.memory_space<vmem>>, %arg5: memref<256x128xbf16, #tpu.memory_space<vmem>>, %arg6: memref<1x128xf32, #tpu.memory_space<vmem>>, %arg7: memref<1x128xf32, #tpu.memory_space<vmem>>, %arg8: memref<1x128xf32, #tpu.memory_space<vmem>>, %arg9: memref<128x128xbf16, #tpu.memory_space<vmem>>, %arg10: memref<1x128xf32, #tpu.memory_space<vmem>>, %arg11: memref<1x128xf32, #tpu.memory_space<vmem>>, %arg12: memref<1x1xf32, #tpu.memory_space<vmem>>, %arg13: memref<128x128xbf16, #tpu.memory_space<vmem>>, %arg14: memref<1x128xf32, #tpu.memory_space<vmem>>, %arg15: memref<1x128xf32, #tpu.memory_space<vmem>>, %arg16: memref<64x128xbf16, #tpu.memory_space<vmem>>, %arg17: memref<64x3xf32, #tpu.memory_space<vmem>>) attributes {dimension_semantics = [#tpu.dimension_semantics<parallel>], iteration_bounds = array<i64: 1>, scalar_prefetch = 0 : i64, scratch_operands = 0 : i64, tpu.core_type = #tpu.core_type<tc>, window_params = [{transform_indices = @transform_0, window_bounds = array<i64: 64, 128>}, {transform_indices = @transform_1, window_bounds = array<i64: 64, 128>}, {transform_indices = @transform_2, window_bounds = array<i64: 64, 3>}, {transform_indices = @transform_3, window_bounds = array<i64: 64, 1>}, {pipeline_mode = #tpu.pipeline_mode<synchronous>, transform_indices = @transform_4, window_bounds = array<i64: 256, 128>}, {pipeline_mode = #tpu.pipeline_mode<synchronous>, transform_indices = @transform_5, window_bounds = array<i64: 1, 128>}, {pipeline_mode = #tpu.pipeline_mode<synchronous>, transform_indices = @transform_6, window_bounds = array<i64: 1, 128>}, {pipeline_mode = #tpu.pipeline_mode<synchronous>, transform_indices = @transform_7, window_bounds = array<i64: 1, 128>}, {pipeline_mode = #tpu.pipeline_mode<synchronous>, transform_indices = @transform_8, window_bounds = array<i64: 128, 128>}, {pipeline_mode = #tpu.pipeline_mode<synchronous>, transform_indices = @transform_9, window_bounds = array<i64: 1, 128>}, {pipeline_mode = #tpu.pipeline_mode<synchronous>, transform_indices = @transform_10, window_bounds = array<i64: 1, 128>}, {pipeline_mode = #tpu.pipeline_mode<synchronous>, transform_indices = @transform_11, window_bounds = array<i64: 1, 1>}, {pipeline_mode = #tpu.pipeline_mode<synchronous>, transform_indices = @transform_12, window_bounds = array<i64: 128, 128>}, {pipeline_mode = #tpu.pipeline_mode<synchronous>, transform_indices = @transform_13, window_bounds = array<i64: 1, 128>}, {pipeline_mode = #tpu.pipeline_mode<synchronous>, transform_indices = @transform_14, window_bounds = array<i64: 1, 128>}, {transform_indices = @transform_15, window_bounds = array<i64: 64, 128>}, {transform_indices = @transform_16, window_bounds = array<i64: 64, 3>}]} {
    %c0 = arith.constant 0 : index
    %c0_0 = arith.constant 0 : index
    %0 = vector.load %arg3[%c0, %c0_0] : memref<64x3xf32, #tpu.memory_space<vmem>>, vector<64x3xf32>
    %1 = arith.mulf %0, %0 : vector<64x3xf32>
    %cst = arith.constant dense<0.000000e+00> : vector<64xf32>
    %2 = vector.multi_reduction <add>, %1, %cst [1] : vector<64x3xf32> to vector<64xf32>
    %3 = vector.shape_cast %2 : vector<64xf32> to vector<64x1xf32>
    %c0_1 = arith.constant 0 : index
    %c0_2 = arith.constant 0 : index
    %4 = vector.load %arg1[%c0_1, %c0_2] : memref<64x128xf32, #tpu.memory_space<vmem>>, vector<64x128xf32>
    %c0_3 = arith.constant 0 : index
    %c0_4 = arith.constant 0 : index
    %5 = vector.load %arg2[%c0_3, %c0_4] : memref<64x128xf32, #tpu.memory_space<vmem>>, vector<64x128xf32>
    %6 = tpu.concatenate %4, %5 in 1 : vector<64x128xf32>, vector<64x128xf32> -> vector<64x256xf32>
    %c0_5 = arith.constant 0 : index
    %c0_6 = arith.constant 0 : index
    %7 = vector.load %arg5[%c0_5, %c0_6] : memref<256x128xbf16, #tpu.memory_space<vmem>>, vector<256x128xbf16>
    %8 = arith.truncf %6 : vector<64x256xf32> to vector<64x256xbf16>
    %cst_7 = arith.constant dense<0.000000e+00> : vector<64x128xf32>
    %9 = tpu.matmul %8, %7, %cst_7 {dimension_numbers = #tpu.dot_dimension_numbers<[1], [0], [0], [1], [0, 0, 1, 1], [], []>} : vector<64x256xbf16>, vector<256x128xbf16>, vector<64x128xf32> -> vector<64x128xf32>
    %c0_8 = arith.constant 0 : index
    %c0_9 = arith.constant 0 : index
    %10 = vector.load %arg6[%c0_8, %c0_9] : memref<1x128xf32, #tpu.memory_space<vmem>>, vector<1x128xf32>
    %11 = vector.broadcast %3 : vector<64x1xf32> to vector<64x128xf32>
    %12 = vector.broadcast %10 : vector<1x128xf32> to vector<64x128xf32>
    %13 = arith.mulf %11, %12 : vector<64x128xf32>
    %14 = arith.addf %9, %13 : vector<64x128xf32>
    %c0_10 = arith.constant 0 : index
    %c0_11 = arith.constant 0 : index
    %15 = vector.load %arg8[%c0_10, %c0_11] : memref<1x128xf32, #tpu.memory_space<vmem>>, vector<1x128xf32>
    %16 = vector.broadcast %15 : vector<1x128xf32> to vector<64x128xf32>
    %17 = arith.addf %14, %16 : vector<64x128xf32>
    %c0_12 = arith.constant 0 : index
    %c0_13 = arith.constant 0 : index
    %18 = vector.load %arg4[%c0_12, %c0_13] : memref<64x1xf32, #tpu.memory_space<vmem>>, vector<64x1xf32>
    %c0_14 = arith.constant 0 : index
    %c0_15 = arith.constant 0 : index
    %19 = vector.load %arg7[%c0_14, %c0_15] : memref<1x128xf32, #tpu.memory_space<vmem>>, vector<1x128xf32>
    %20 = vector.broadcast %18 : vector<64x1xf32> to vector<64x128xf32>
    %21 = vector.broadcast %19 : vector<1x128xf32> to vector<64x128xf32>
    %22 = arith.mulf %20, %21 : vector<64x128xf32>
    %23 = arith.addf %17, %22 : vector<64x128xf32>
    %24 = arith.negf %23 : vector<64x128xf32>
    %25 = math.exp %24 : vector<64x128xf32>
    %cst_16 = arith.constant 1.000000e+00 : f32
    %26 = vector.broadcast %cst_16 : f32 to vector<64x128xf32>
    %27 = arith.addf %26, %25 : vector<64x128xf32>
    %28 = arith.divf %26, %27 : vector<64x128xf32>
    %29 = arith.mulf %23, %28 : vector<64x128xf32>
    %c0_17 = arith.constant 0 : index
    %c0_18 = arith.constant 0 : index
    %30 = vector.load %arg9[%c0_17, %c0_18] : memref<128x128xbf16, #tpu.memory_space<vmem>>, vector<128x128xbf16>
    %31 = arith.truncf %29 : vector<64x128xf32> to vector<64x128xbf16>
    %cst_19 = arith.constant dense<0.000000e+00> : vector<64x128xf32>
    %32 = tpu.matmul %31, %30, %cst_19 {dimension_numbers = #tpu.dot_dimension_numbers<[1], [0], [0], [1], [0, 0, 1, 1], [], []>} : vector<64x128xbf16>, vector<128x128xbf16>, vector<64x128xf32> -> vector<64x128xf32>
    %c0_20 = arith.constant 0 : index
    %c0_21 = arith.constant 0 : index
    %33 = vector.load %arg10[%c0_20, %c0_21] : memref<1x128xf32, #tpu.memory_space<vmem>>, vector<1x128xf32>
    %34 = vector.broadcast %33 : vector<1x128xf32> to vector<64x128xf32>
    %35 = arith.addf %32, %34 : vector<64x128xf32>
    %36 = arith.negf %35 : vector<64x128xf32>
    %37 = math.exp %36 : vector<64x128xf32>
    %cst_22 = arith.constant 1.000000e+00 : f32
    %38 = vector.broadcast %cst_22 : f32 to vector<64x128xf32>
    %39 = arith.addf %38, %37 : vector<64x128xf32>
    %40 = arith.divf %38, %39 : vector<64x128xf32>
    %41 = arith.mulf %35, %40 : vector<64x128xf32>
    %c0_23 = arith.constant 0 : index
    %c0_24 = arith.constant 0 : index
    %42 = vector.load %arg11[%c0_23, %c0_24] : memref<1x128xf32, #tpu.memory_space<vmem>>, vector<1x128xf32>
    %43 = vector.broadcast %42 : vector<1x128xf32> to vector<64x128xf32>
    %44 = arith.mulf %41, %43 : vector<64x128xf32>
    %cst_25 = arith.constant dense<0.000000e+00> : vector<64xf32>
    %45 = vector.multi_reduction <add>, %44, %cst_25 [1] : vector<64x128xf32> to vector<64xf32>
    %46 = vector.shape_cast %45 : vector<64xf32> to vector<64x1xf32>
    %c0_26 = arith.constant 0 : index
    %c0_27 = arith.constant 0 : index
    %47 = vector.load %arg12[%c0_26, %c0_27] : memref<1x1xf32, #tpu.memory_space<vmem>>, vector<1x1xf32>
    %48 = vector.broadcast %47 : vector<1x1xf32> to vector<64x1xf32>
    %49 = arith.addf %46, %48 : vector<64x1xf32>
    %50 = arith.negf %49 : vector<64x1xf32>
    %51 = math.exp %50 : vector<64x1xf32>
    %cst_28 = arith.constant 1.000000e+00 : f32
    %52 = vector.broadcast %cst_28 : f32 to vector<64x1xf32>
    %53 = arith.addf %52, %51 : vector<64x1xf32>
    %54 = arith.divf %52, %53 : vector<64x1xf32>
    %55 = vector.broadcast %54 : vector<64x1xf32> to vector<64x128xf32>
    %56 = arith.mulf %41, %55 : vector<64x128xf32>
    %57 = arith.truncf %56 : vector<64x128xf32> to vector<64x128xbf16>
    %c0_29 = arith.constant 0 : index
    %c0_30 = arith.constant 0 : index
    %58 = vector.load %arg16[%c0_29, %c0_30] : memref<64x128xbf16, #tpu.memory_space<vmem>>, vector<64x128xbf16>
    tpu.vector_store %arg16[%c0_29, %c0_30], %57 {strides = array<i32>} : memref<64x128xbf16, #tpu.memory_space<vmem>>, vector<64x128xbf16>,
    %c0_31 = arith.constant 0 : index
    %c0_32 = arith.constant 0 : index
    %59 = vector.load %arg13[%c0_31, %c0_32] : memref<128x128xbf16, #tpu.memory_space<vmem>>, vector<128x128xbf16>
    %60 = arith.truncf %56 : vector<64x128xf32> to vector<64x128xbf16>
    %cst_33 = arith.constant dense<0.000000e+00> : vector<64x128xf32>
    %61 = tpu.matmul %60, %59, %cst_33 {dimension_numbers = #tpu.dot_dimension_numbers<[1], [0], [0], [1], [0, 0, 1, 1], [], []>} : vector<64x128xbf16>, vector<128x128xbf16>, vector<64x128xf32> -> vector<64x128xf32>
    %c0_34 = arith.constant 0 : index
    %c0_35 = arith.constant 0 : index
    %62 = vector.load %arg14[%c0_34, %c0_35] : memref<1x128xf32, #tpu.memory_space<vmem>>, vector<1x128xf32>
    %63 = vector.broadcast %62 : vector<1x128xf32> to vector<64x128xf32>
    %64 = arith.addf %61, %63 : vector<64x128xf32>
    %65 = arith.negf %64 : vector<64x128xf32>
    %66 = math.exp %65 : vector<64x128xf32>
    %cst_36 = arith.constant 1.000000e+00 : f32
    %67 = vector.broadcast %cst_36 : f32 to vector<64x128xf32>
    %68 = arith.addf %67, %66 : vector<64x128xf32>
    %69 = arith.divf %67, %68 : vector<64x128xf32>
    %70 = arith.mulf %64, %69 : vector<64x128xf32>
    %c0_37 = arith.constant 0 : index
    %c0_38 = arith.constant 0 : index
    %71 = vector.load %arg15[%c0_37, %c0_38] : memref<1x128xf32, #tpu.memory_space<vmem>>, vector<1x128xf32>
    %72 = vector.broadcast %71 : vector<1x128xf32> to vector<64x128xf32>
    %73 = arith.mulf %70, %72 : vector<64x128xf32>
    %cst_39 = arith.constant dense<0.000000e+00> : vector<64xf32>
    %74 = vector.multi_reduction <add>, %73, %cst_39 [1] : vector<64x128xf32> to vector<64xf32>
    %75 = vector.shape_cast %74 : vector<64xf32> to vector<64x1xf32>
    %cst_40 = arith.constant 9.99999993E-9 : f32
    %76 = vector.broadcast %cst_40 : f32 to vector<64x1xf32>
    %77 = arith.addf %3, %76 : vector<64x1xf32>
    %78 = math.rsqrt %77 : vector<64x1xf32>
    %79 = arith.mulf %78, %75 : vector<64x1xf32>
    %80 = vector.broadcast %79 : vector<64x1xf32> to vector<64x3xf32>
    %81 = arith.mulf %0, %80 : vector<64x3xf32>
    %c0_41 = arith.constant 0 : index
    %c0_42 = arith.constant 0 : index
    %82 = vector.load %arg17[%c0_41, %c0_42] : memref<64x3xf32, #tpu.memory_space<vmem>>, vector<64x3xf32>
    tpu.vector_store %arg17[%c0_41, %c0_42], %81 {strides = array<i32>} : memref<64x3xf32, #tpu.memory_space<vmem>>, vector<64x3xf32>,
    return
  }
  func.func @transform_0(%arg0: i32) -> (i32, i32) {
    %c0_i32 = arith.constant 0 : i32
    %c0_i32_0 = arith.constant 0 : i32
    return %arg0, %c0_i32 : i32, i32
  }
  func.func @transform_1(%arg0: i32) -> (i32, i32) {
    %c0_i32 = arith.constant 0 : i32
    %c0_i32_0 = arith.constant 0 : i32
    return %arg0, %c0_i32 : i32, i32
  }
  func.func @transform_2(%arg0: i32) -> (i32, i32) {
    %c0_i32 = arith.constant 0 : i32
    %c0_i32_0 = arith.constant 0 : i32
    return %arg0, %c0_i32 : i32, i32
  }
  func.func @transform_3(%arg0: i32) -> (i32, i32) {
    %c0_i32 = arith.constant 0 : i32
    %c0_i32_0 = arith.constant 0 : i32
    return %arg0, %c0_i32 : i32, i32
  }
  func.func @transform_4(%arg0: i32) -> (i32, i32) {
    %c0_i32 = arith.constant 0 : i32
    %c0_i32_0 = arith.constant 0 : i32
    %c0_i32_1 = arith.constant 0 : i32
    return %c0_i32, %c0_i32_0 : i32, i32
  }
  func.func @transform_5(%arg0: i32) -> (i32, i32) {
    %c0_i32 = arith.constant 0 : i32
    %c0_i32_0 = arith.constant 0 : i32
    %c0_i32_1 = arith.constant 0 : i32
    return %c0_i32, %c0_i32_0 : i32, i32
  }
  func.func @transform_6(%arg0: i32) -> (i32, i32) {
    %c0_i32 = arith.constant 0 : i32
    %c0_i32_0 = arith.constant 0 : i32
    %c0_i32_1 = arith.constant 0 : i32
    return %c0_i32, %c0_i32_0 : i32, i32
  }
  func.func @transform_7(%arg0: i32) -> (i32, i32) {
    %c0_i32 = arith.constant 0 : i32
    %c0_i32_0 = arith.constant 0 : i32
    %c0_i32_1 = arith.constant 0 : i32
    return %c0_i32, %c0_i32_0 : i32, i32
  }
  func.func @transform_8(%arg0: i32) -> (i32, i32) {
    %c0_i32 = arith.constant 0 : i32
    %c0_i32_0 = arith.constant 0 : i32
    %c0_i32_1 = arith.constant 0 : i32
    return %c0_i32, %c0_i32_0 : i32, i32
  }
  func.func @transform_9(%arg0: i32) -> (i32, i32) {
    %c0_i32 = arith.constant 0 : i32
    %c0_i32_0 = arith.constant 0 : i32
    %c0_i32_1 = arith.constant 0 : i32
    return %c0_i32, %c0_i32_0 : i32, i32
  }
  func.func @transform_10(%arg0: i32) -> (i32, i32) {
    %c0_i32 = arith.constant 0 : i32
    %c0_i32_0 = arith.constant 0 : i32
    %c0_i32_1 = arith.constant 0 : i32
    return %c0_i32, %c0_i32_0 : i32, i32
  }
  func.func @transform_11(%arg0: i32) -> (i32, i32) {
    %c0_i32 = arith.constant 0 : i32
    %c0_i32_0 = arith.constant 0 : i32
    %c0_i32_1 = arith.constant 0 : i32
    return %c0_i32, %c0_i32_0 : i32, i32
  }
  func.func @transform_12(%arg0: i32) -> (i32, i32) {
    %c0_i32 = arith.constant 0 : i32
    %c0_i32_0 = arith.constant 0 : i32
    %c0_i32_1 = arith.constant 0 : i32
    return %c0_i32, %c0_i32_0 : i32, i32
  }
  func.func @transform_13(%arg0: i32) -> (i32, i32) {
    %c0_i32 = arith.constant 0 : i32
    %c0_i32_0 = arith.constant 0 : i32
    %c0_i32_1 = arith.constant 0 : i32
    return %c0_i32, %c0_i32_0 : i32, i32
  }
  func.func @transform_14(%arg0: i32) -> (i32, i32) {
    %c0_i32 = arith.constant 0 : i32
    %c0_i32_0 = arith.constant 0 : i32
    %c0_i32_1 = arith.constant 0 : i32
    return %c0_i32, %c0_i32_0 : i32, i32
  }
  func.func @transform_15(%arg0: i32) -> (i32, i32) {
    %c0_i32 = arith.constant 0 : i32
    %c0_i32_0 = arith.constant 0 : i32
    return %arg0, %c0_i32 : i32, i32
  }
  func.func @transform_16(%arg0: i32) -> (i32, i32) {
    %c0_i32 = arith.constant 0 : i32
    %c0_i32_0 = arith.constant 0 : i32
    return %arg0, %c0_i32 : i32, i32
  }
}

module attributes {stable_mosaic.version = 11 : i64} {
  func.func @_edge_coord_kernel(%arg0: i32, %arg1: memref<48x128xf32, #tpu.memory_space<vmem>>, %arg2: memref<48x128xf32, #tpu.memory_space<vmem>>, %arg3: memref<48x3xf32, #tpu.memory_space<vmem>>, %arg4: memref<48x128xbf16, #tpu.memory_space<vmem>>, %arg5: memref<256x128xbf16, #tpu.memory_space<vmem>>, %arg6: memref<1x128xf32, #tpu.memory_space<vmem>>, %arg7: memref<128x128xbf16, #tpu.memory_space<vmem>>, %arg8: memref<1x128xf32, #tpu.memory_space<vmem>>, %arg9: memref<128x128xbf16, #tpu.memory_space<vmem>>, %arg10: memref<1x128xf32, #tpu.memory_space<vmem>>, %arg11: memref<1x128xf32, #tpu.memory_space<vmem>>, %arg12: memref<1x1xf32, #tpu.memory_space<vmem>>, %arg13: memref<128x128xbf16, #tpu.memory_space<vmem>>, %arg14: memref<1x128xf32, #tpu.memory_space<vmem>>, %arg15: memref<1x128xf32, #tpu.memory_space<vmem>>, %arg16: memref<48x128xbf16, #tpu.memory_space<vmem>>, %arg17: memref<48x3xf32, #tpu.memory_space<vmem>>) attributes {dimension_semantics = [#tpu.dimension_semantics<parallel>], iteration_bounds = array<i64: 1>, scalar_prefetch = 0 : i64, scratch_operands = 0 : i64, tpu.core_type = #tpu.core_type<tc>, window_params = [{transform_indices = @transform_0, window_bounds = array<i64: 48, 128>}, {transform_indices = @transform_1, window_bounds = array<i64: 48, 128>}, {transform_indices = @transform_2, window_bounds = array<i64: 48, 3>}, {transform_indices = @transform_3, window_bounds = array<i64: 48, 128>}, {pipeline_mode = #tpu.pipeline_mode<synchronous>, transform_indices = @transform_4, window_bounds = array<i64: 256, 128>}, {pipeline_mode = #tpu.pipeline_mode<synchronous>, transform_indices = @transform_5, window_bounds = array<i64: 1, 128>}, {pipeline_mode = #tpu.pipeline_mode<synchronous>, transform_indices = @transform_6, window_bounds = array<i64: 128, 128>}, {pipeline_mode = #tpu.pipeline_mode<synchronous>, transform_indices = @transform_7, window_bounds = array<i64: 1, 128>}, {pipeline_mode = #tpu.pipeline_mode<synchronous>, transform_indices = @transform_8, window_bounds = array<i64: 128, 128>}, {pipeline_mode = #tpu.pipeline_mode<synchronous>, transform_indices = @transform_9, window_bounds = array<i64: 1, 128>}, {pipeline_mode = #tpu.pipeline_mode<synchronous>, transform_indices = @transform_10, window_bounds = array<i64: 1, 128>}, {pipeline_mode = #tpu.pipeline_mode<synchronous>, transform_indices = @transform_11, window_bounds = array<i64: 1, 1>}, {pipeline_mode = #tpu.pipeline_mode<synchronous>, transform_indices = @transform_12, window_bounds = array<i64: 128, 128>}, {pipeline_mode = #tpu.pipeline_mode<synchronous>, transform_indices = @transform_13, window_bounds = array<i64: 1, 128>}, {pipeline_mode = #tpu.pipeline_mode<synchronous>, transform_indices = @transform_14, window_bounds = array<i64: 1, 128>}, {transform_indices = @transform_15, window_bounds = array<i64: 48, 128>}, {transform_indices = @transform_16, window_bounds = array<i64: 48, 3>}]} {
    %c0 = arith.constant 0 : index
    %c0_0 = arith.constant 0 : index
    %0 = vector.load %arg3[%c0, %c0_0] : memref<48x3xf32, #tpu.memory_space<vmem>>, vector<48x3xf32>
    %1 = arith.mulf %0, %0 : vector<48x3xf32>
    %cst = arith.constant dense<0.000000e+00> : vector<48xf32>
    %2 = vector.multi_reduction <add>, %1, %cst [1] : vector<48x3xf32> to vector<48xf32>
    %3 = vector.shape_cast %2 : vector<48xf32> to vector<48x1xf32>
    %c0_1 = arith.constant 0 : index
    %c0_2 = arith.constant 0 : index
    %4 = vector.load %arg1[%c0_1, %c0_2] : memref<48x128xf32, #tpu.memory_space<vmem>>, vector<48x128xf32>
    %c0_3 = arith.constant 0 : index
    %c0_4 = arith.constant 0 : index
    %5 = vector.load %arg2[%c0_3, %c0_4] : memref<48x128xf32, #tpu.memory_space<vmem>>, vector<48x128xf32>
    %6 = tpu.concatenate %4, %5 in 1 : vector<48x128xf32>, vector<48x128xf32> -> vector<48x256xf32>
    %c0_5 = arith.constant 0 : index
    %c0_6 = arith.constant 0 : index
    %7 = vector.load %arg5[%c0_5, %c0_6] : memref<256x128xbf16, #tpu.memory_space<vmem>>, vector<256x128xbf16>
    %8 = arith.truncf %6 : vector<48x256xf32> to vector<48x256xbf16>
    %cst_7 = arith.constant dense<0.000000e+00> : vector<48x128xf32>
    %9 = tpu.matmul %8, %7, %cst_7 {dimension_numbers = #tpu.dot_dimension_numbers<[1], [0], [0], [1], [0, 0, 1, 1], [], []>} : vector<48x256xbf16>, vector<256x128xbf16>, vector<48x128xf32> -> vector<48x128xf32>
    %c0_8 = arith.constant 0 : index
    %c0_9 = arith.constant 0 : index
    %10 = vector.load %arg6[%c0_8, %c0_9] : memref<1x128xf32, #tpu.memory_space<vmem>>, vector<1x128xf32>
    %11 = vector.broadcast %3 : vector<48x1xf32> to vector<48x128xf32>
    %12 = vector.broadcast %10 : vector<1x128xf32> to vector<48x128xf32>
    %13 = arith.mulf %11, %12 : vector<48x128xf32>
    %14 = arith.addf %9, %13 : vector<48x128xf32>
    %c0_10 = arith.constant 0 : index
    %c0_11 = arith.constant 0 : index
    %15 = vector.load %arg8[%c0_10, %c0_11] : memref<1x128xf32, #tpu.memory_space<vmem>>, vector<1x128xf32>
    %16 = vector.broadcast %15 : vector<1x128xf32> to vector<48x128xf32>
    %17 = arith.addf %14, %16 : vector<48x128xf32>
    %c0_12 = arith.constant 0 : index
    %c0_13 = arith.constant 0 : index
    %18 = vector.load %arg4[%c0_12, %c0_13] : memref<48x128xbf16, #tpu.memory_space<vmem>>, vector<48x128xbf16>
    %c0_14 = arith.constant 0 : index
    %c0_15 = arith.constant 0 : index
    %19 = vector.load %arg7[%c0_14, %c0_15] : memref<128x128xbf16, #tpu.memory_space<vmem>>, vector<128x128xbf16>
    %cst_16 = arith.constant dense<0.000000e+00> : vector<48x128xf32>
    %20 = tpu.matmul %18, %19, %cst_16 {dimension_numbers = #tpu.dot_dimension_numbers<[1], [0], [0], [1], [0, 0, 1, 1], [], []>} : vector<48x128xbf16>, vector<128x128xbf16>, vector<48x128xf32> -> vector<48x128xf32>
    %21 = arith.addf %17, %20 : vector<48x128xf32>
    %22 = arith.negf %21 : vector<48x128xf32>
    %23 = math.exp %22 : vector<48x128xf32>
    %cst_17 = arith.constant 1.000000e+00 : f32
    %24 = vector.broadcast %cst_17 : f32 to vector<48x128xf32>
    %25 = arith.addf %24, %23 : vector<48x128xf32>
    %26 = arith.divf %24, %25 : vector<48x128xf32>
    %27 = arith.mulf %21, %26 : vector<48x128xf32>
    %c0_18 = arith.constant 0 : index
    %c0_19 = arith.constant 0 : index
    %28 = vector.load %arg9[%c0_18, %c0_19] : memref<128x128xbf16, #tpu.memory_space<vmem>>, vector<128x128xbf16>
    %29 = arith.truncf %27 : vector<48x128xf32> to vector<48x128xbf16>
    %cst_20 = arith.constant dense<0.000000e+00> : vector<48x128xf32>
    %30 = tpu.matmul %29, %28, %cst_20 {dimension_numbers = #tpu.dot_dimension_numbers<[1], [0], [0], [1], [0, 0, 1, 1], [], []>} : vector<48x128xbf16>, vector<128x128xbf16>, vector<48x128xf32> -> vector<48x128xf32>
    %c0_21 = arith.constant 0 : index
    %c0_22 = arith.constant 0 : index
    %31 = vector.load %arg10[%c0_21, %c0_22] : memref<1x128xf32, #tpu.memory_space<vmem>>, vector<1x128xf32>
    %32 = vector.broadcast %31 : vector<1x128xf32> to vector<48x128xf32>
    %33 = arith.addf %30, %32 : vector<48x128xf32>
    %34 = arith.negf %33 : vector<48x128xf32>
    %35 = math.exp %34 : vector<48x128xf32>
    %cst_23 = arith.constant 1.000000e+00 : f32
    %36 = vector.broadcast %cst_23 : f32 to vector<48x128xf32>
    %37 = arith.addf %36, %35 : vector<48x128xf32>
    %38 = arith.divf %36, %37 : vector<48x128xf32>
    %39 = arith.mulf %33, %38 : vector<48x128xf32>
    %c0_24 = arith.constant 0 : index
    %c0_25 = arith.constant 0 : index
    %40 = vector.load %arg11[%c0_24, %c0_25] : memref<1x128xf32, #tpu.memory_space<vmem>>, vector<1x128xf32>
    %41 = vector.broadcast %40 : vector<1x128xf32> to vector<48x128xf32>
    %42 = arith.mulf %39, %41 : vector<48x128xf32>
    %cst_26 = arith.constant dense<0.000000e+00> : vector<48xf32>
    %43 = vector.multi_reduction <add>, %42, %cst_26 [1] : vector<48x128xf32> to vector<48xf32>
    %44 = vector.shape_cast %43 : vector<48xf32> to vector<48x1xf32>
    %c0_27 = arith.constant 0 : index
    %c0_28 = arith.constant 0 : index
    %45 = vector.load %arg12[%c0_27, %c0_28] : memref<1x1xf32, #tpu.memory_space<vmem>>, vector<1x1xf32>
    %46 = vector.broadcast %45 : vector<1x1xf32> to vector<48x1xf32>
    %47 = arith.addf %44, %46 : vector<48x1xf32>
    %48 = arith.negf %47 : vector<48x1xf32>
    %49 = math.exp %48 : vector<48x1xf32>
    %cst_29 = arith.constant 1.000000e+00 : f32
    %50 = vector.broadcast %cst_29 : f32 to vector<48x1xf32>
    %51 = arith.addf %50, %49 : vector<48x1xf32>
    %52 = arith.divf %50, %51 : vector<48x1xf32>
    %53 = vector.broadcast %52 : vector<48x1xf32> to vector<48x128xf32>
    %54 = arith.mulf %39, %53 : vector<48x128xf32>
    %55 = arith.truncf %54 : vector<48x128xf32> to vector<48x128xbf16>
    %c0_30 = arith.constant 0 : index
    %c0_31 = arith.constant 0 : index
    %56 = vector.load %arg16[%c0_30, %c0_31] : memref<48x128xbf16, #tpu.memory_space<vmem>>, vector<48x128xbf16>
    tpu.vector_store %arg16[%c0_30, %c0_31], %55 {strides = array<i32>} : memref<48x128xbf16, #tpu.memory_space<vmem>>, vector<48x128xbf16>,
    %c0_32 = arith.constant 0 : index
    %c0_33 = arith.constant 0 : index
    %57 = vector.load %arg13[%c0_32, %c0_33] : memref<128x128xbf16, #tpu.memory_space<vmem>>, vector<128x128xbf16>
    %58 = arith.truncf %54 : vector<48x128xf32> to vector<48x128xbf16>
    %cst_34 = arith.constant dense<0.000000e+00> : vector<48x128xf32>
    %59 = tpu.matmul %58, %57, %cst_34 {dimension_numbers = #tpu.dot_dimension_numbers<[1], [0], [0], [1], [0, 0, 1, 1], [], []>} : vector<48x128xbf16>, vector<128x128xbf16>, vector<48x128xf32> -> vector<48x128xf32>
    %c0_35 = arith.constant 0 : index
    %c0_36 = arith.constant 0 : index
    %60 = vector.load %arg14[%c0_35, %c0_36] : memref<1x128xf32, #tpu.memory_space<vmem>>, vector<1x128xf32>
    %61 = vector.broadcast %60 : vector<1x128xf32> to vector<48x128xf32>
    %62 = arith.addf %59, %61 : vector<48x128xf32>
    %63 = arith.negf %62 : vector<48x128xf32>
    %64 = math.exp %63 : vector<48x128xf32>
    %cst_37 = arith.constant 1.000000e+00 : f32
    %65 = vector.broadcast %cst_37 : f32 to vector<48x128xf32>
    %66 = arith.addf %65, %64 : vector<48x128xf32>
    %67 = arith.divf %65, %66 : vector<48x128xf32>
    %68 = arith.mulf %62, %67 : vector<48x128xf32>
    %c0_38 = arith.constant 0 : index
    %c0_39 = arith.constant 0 : index
    %69 = vector.load %arg15[%c0_38, %c0_39] : memref<1x128xf32, #tpu.memory_space<vmem>>, vector<1x128xf32>
    %70 = vector.broadcast %69 : vector<1x128xf32> to vector<48x128xf32>
    %71 = arith.mulf %68, %70 : vector<48x128xf32>
    %cst_40 = arith.constant dense<0.000000e+00> : vector<48xf32>
    %72 = vector.multi_reduction <add>, %71, %cst_40 [1] : vector<48x128xf32> to vector<48xf32>
    %73 = vector.shape_cast %72 : vector<48xf32> to vector<48x1xf32>
    %cst_41 = arith.constant 9.99999993E-9 : f32
    %74 = vector.broadcast %cst_41 : f32 to vector<48x1xf32>
    %75 = arith.addf %3, %74 : vector<48x1xf32>
    %76 = math.rsqrt %75 : vector<48x1xf32>
    %77 = arith.mulf %76, %73 : vector<48x1xf32>
    %78 = vector.broadcast %77 : vector<48x1xf32> to vector<48x3xf32>
    %79 = arith.mulf %0, %78 : vector<48x3xf32>
    %c0_42 = arith.constant 0 : index
    %c0_43 = arith.constant 0 : index
    %80 = vector.load %arg17[%c0_42, %c0_43] : memref<48x3xf32, #tpu.memory_space<vmem>>, vector<48x3xf32>
    tpu.vector_store %arg17[%c0_42, %c0_43], %79 {strides = array<i32>} : memref<48x3xf32, #tpu.memory_space<vmem>>, vector<48x3xf32>,
    return
  }
  func.func @transform_0(%arg0: i32) -> (i32, i32) {
    %c0_i32 = arith.constant 0 : i32
    %c0_i32_0 = arith.constant 0 : i32
    return %arg0, %c0_i32 : i32, i32
  }
  func.func @transform_1(%arg0: i32) -> (i32, i32) {
    %c0_i32 = arith.constant 0 : i32
    %c0_i32_0 = arith.constant 0 : i32
    return %arg0, %c0_i32 : i32, i32
  }
  func.func @transform_2(%arg0: i32) -> (i32, i32) {
    %c0_i32 = arith.constant 0 : i32
    %c0_i32_0 = arith.constant 0 : i32
    return %arg0, %c0_i32 : i32, i32
  }
  func.func @transform_3(%arg0: i32) -> (i32, i32) {
    %c0_i32 = arith.constant 0 : i32
    %c0_i32_0 = arith.constant 0 : i32
    return %arg0, %c0_i32 : i32, i32
  }
  func.func @transform_4(%arg0: i32) -> (i32, i32) {
    %c0_i32 = arith.constant 0 : i32
    %c0_i32_0 = arith.constant 0 : i32
    %c0_i32_1 = arith.constant 0 : i32
    return %c0_i32, %c0_i32_0 : i32, i32
  }
  func.func @transform_5(%arg0: i32) -> (i32, i32) {
    %c0_i32 = arith.constant 0 : i32
    %c0_i32_0 = arith.constant 0 : i32
    %c0_i32_1 = arith.constant 0 : i32
    return %c0_i32, %c0_i32_0 : i32, i32
  }
  func.func @transform_6(%arg0: i32) -> (i32, i32) {
    %c0_i32 = arith.constant 0 : i32
    %c0_i32_0 = arith.constant 0 : i32
    %c0_i32_1 = arith.constant 0 : i32
    return %c0_i32, %c0_i32_0 : i32, i32
  }
  func.func @transform_7(%arg0: i32) -> (i32, i32) {
    %c0_i32 = arith.constant 0 : i32
    %c0_i32_0 = arith.constant 0 : i32
    %c0_i32_1 = arith.constant 0 : i32
    return %c0_i32, %c0_i32_0 : i32, i32
  }
  func.func @transform_8(%arg0: i32) -> (i32, i32) {
    %c0_i32 = arith.constant 0 : i32
    %c0_i32_0 = arith.constant 0 : i32
    %c0_i32_1 = arith.constant 0 : i32
    return %c0_i32, %c0_i32_0 : i32, i32
  }
  func.func @transform_9(%arg0: i32) -> (i32, i32) {
    %c0_i32 = arith.constant 0 : i32
    %c0_i32_0 = arith.constant 0 : i32
    %c0_i32_1 = arith.constant 0 : i32
    return %c0_i32, %c0_i32_0 : i32, i32
  }
  func.func @transform_10(%arg0: i32) -> (i32, i32) {
    %c0_i32 = arith.constant 0 : i32
    %c0_i32_0 = arith.constant 0 : i32
    %c0_i32_1 = arith.constant 0 : i32
    return %c0_i32, %c0_i32_0 : i32, i32
  }
  func.func @transform_11(%arg0: i32) -> (i32, i32) {
    %c0_i32 = arith.constant 0 : i32
    %c0_i32_0 = arith.constant 0 : i32
    %c0_i32_1 = arith.constant 0 : i32
    return %c0_i32, %c0_i32_0 : i32, i32
  }
  func.func @transform_12(%arg0: i32) -> (i32, i32) {
    %c0_i32 = arith.constant 0 : i32
    %c0_i32_0 = arith.constant 0 : i32
    %c0_i32_1 = arith.constant 0 : i32
    return %c0_i32, %c0_i32_0 : i32, i32
  }
  func.func @transform_13(%arg0: i32) -> (i32, i32) {
    %c0_i32 = arith.constant 0 : i32
    %c0_i32_0 = arith.constant 0 : i32
    %c0_i32_1 = arith.constant 0 : i32
    return %c0_i32, %c0_i32_0 : i32, i32
  }
  func.func @transform_14(%arg0: i32) -> (i32, i32) {
    %c0_i32 = arith.constant 0 : i32
    %c0_i32_0 = arith.constant 0 : i32
    %c0_i32_1 = arith.constant 0 : i32
    return %c0_i32, %c0_i32_0 : i32, i32
  }
  func.func @transform_15(%arg0: i32) -> (i32, i32) {
    %c0_i32 = arith.constant 0 : i32
    %c0_i32_0 = arith.constant 0 : i32
    return %arg0, %c0_i32 : i32, i32
  }
  func.func @transform_16(%arg0: i32) -> (i32, i32) {
    %c0_i32 = arith.constant 0 : i32
    %c0_i32_0 = arith.constant 0 : i32
    return %arg0, %c0_i32 : i32, i32
  }
}

</mosaic_0001>

<bundles_post_ra>
// kernel: run.57
= control target key start
LH: loop header
LB: loop body
LE: loop exit
PB: predicated region body
PF: predicated region fallthrough
CT: control target
= control target key end

     0   :  { %v184_v0 = vmov 0.0   ;;  %vm185_vm0 = vmmov 0   ;;  %s245_s1 = inlined_call_operand.vmem [shape: bf16[128,128], index: 1, kind: input, shape index: {}]   ;;  %s246_s0 = inlined_call_operand.vmem [shape: f32[16,128], index: 0, kind: input, shape index: {}]   ;;  %s247_s2 = inlined_call_operand.vmem [shape: f32[1,128], index: 2, kind: input, shape index: {}]   ;;  %s248_s3 = inlined_call_operand.vmem [shape: f32[16,128], index: 3, kind: output, shape index: {}]  }
   0x1   :  { %154 = vmatprep.subr.bf16.mxu0 %v184_v0  ;;  %v176_v1 = vld [vmem:[%s245_s1] sm:$0xff]   ;;  %170 = vmatprep.mubr.msk.bf16.mxu0 %vm185_vm0, %v184_v0  ;;  %v177_v2 = vld [vmem:[%s245_s1 + $0x8] sm:$0xff]   ;;  %v178_v3 = vld [vmem:[%s245_s1 + $0x10] sm:$0xff]  }
   0x2   :  { %155 = vmatpush3.bf16.msra.mxu0 %v176_v1  ;;  %v179_v4 = vld [vmem:[%s245_s1 + $0x18] sm:$0xff]   ;;  %v180_v5 = vld [vmem:[%s245_s1 + $0x20] sm:$0xff]   ;;  %v181_v6 = vld [vmem:[%s245_s1 + $0x28] sm:$0xff]  }
   0x3   :  { %156 = vmatprep.subr.bf16.mxu0 %v184_v0  ;;  %v182_v7 = vld [vmem:[%s245_s1 + $0x30] sm:$0xff]   ;;  %v183_v8 = vld [vmem:[%s245_s1 + $0x38] sm:$0xff]   ;;  %v15_v9 = vld [vmem:[%s246_s0] sm:$0xff] }
   0x4   :  { %v16_v10 = vld [vmem:[%s246_s0 + $0x8] sm:$0xff]  ;;  %v136_v12 = vld [vmem:[%s247_s2] ss:$0 sm:$0xff] }
   0x5   :  { %v33_v11 = vpack.c.bf16 %v16_v10, %v15_v9 }
   0x6   :  { %157 = vmatpush3.bf16.msra.mxu0 %v177_v2 }
   0x7   :  { %158 = vmatprep.subr.bf16.mxu0 %v184_v0 }
   0xa   :  { %159 = vmatpush3.bf16.msra.mxu0 %v178_v3 }
   0xb   :  { %160 = vmatprep.subr.bf16.mxu0 %v184_v0 }
   0xe   :  { %161 = vmatpush3.bf16.msra.mxu0 %v179_v4 }
   0xf   :  { %162 = vmatprep.subr.bf16.mxu0 %v184_v0 }
  0x12   :  { %163 = vmatpush3.bf16.msra.mxu0 %v180_v5 }
  0x13   :  { %164 = vmatprep.subr.bf16.mxu0 %v184_v0 }
  0x16   :  { %165 = vmatpush3.bf16.msra.mxu0 %v181_v6 }
  0x17   :  { %166 = vmatprep.subr.bf16.mxu0 %v184_v0 }
  0x1a   :  { %167 = vmatpush3.bf16.msra.mxu0 %v182_v7 }
  0x1b   :  { %168 = vmatprep.subr.bf16.mxu0 %v184_v0 }
  0x1e   :  { %169 = vmatpush3.bf16.msra.mxu0 %v183_v8 }
  0x21   :  { %171 = vmatmul.mubr.bf16.vlgmr.msra.gmra.mrb[0].mxu0 %v33_v11 }
  0xf4   :  { %v123_v13 = vpop.f32.mrb[0].mxu0 }
  0xf5   :  { %v124_v14 = vadd.f32 %v136_v12, %v123_v13  ;;  %v172_v15 = vpop.f32.mrb[1].mxu0 }
  0xf6   :  { %v126_v16 = vpop.f32.mrb[2].mxu0 }
  0xf7   :  { %130 = vst [vmem:[%s248_s3] sm:$0xff] %v124_v14  ;;  %v127_v17 = vadd.f32 %v136_v12, %v126_v16  ;;  %v173_v18 = vpop.f32.mrb[3].mxu0 }
  0xf9   :  { %131 = vst [vmem:[%s248_s3 + $0x8] sm:$0xff] %v127_v17 }

// kernel: run.56
= control target key start
LH: loop header
LB: loop body
LE: loop exit
PB: predicated region body
PF: predicated region fallthrough
CT: control target
= control target key end

     0   :  { %v377_v0 = vmov 0   ;;  %v378_v5 = vmov 0.0   ;;  %vm379_vm0 = vmmov 0   ;;  %s515_s0 = inlined_call_operand.vmem [shape: f32[48,1], index: 0, kind: input, shape index: {}]   ;;  %s516_s4 = inlined_call_operand.vmem [shape: bf16[128,128], index: 4, kind: input, shape index: {}]   ;;  %s517_s2 = inlined_call_operand.vmem [shape: f32[1,128], index: 2, kind: input, shape index: {}]   ;;  %s518_s3 = inlined_call_operand.vmem [shape: f32[1,128], index: 3, kind: input, shape index: {}]   ;;  %s519_s5 = inlined_call_operand.vmem [shape: f32[1,128], index: 5, kind: input, shape index: {}]   ;;  %s520_s1 = inlined_call_operand.vmem [shape: f32[48,128], index: 1, kind: input, shape index: {}]   ;;  %s521_s6 = inlined_call_operand.vmem [shape: bf16[48,128], index: 6, kind: output, shape index: {}]  }
   0x1   :  { %368 = vset.pattern.permute.xlu1 %v377_v0  ;;  %367 = vset.pattern.permute.xlu0 %v377_v0  ;;  %v26_v1 = vld [vmem:[%s515_s0 + $0x10] sm:$0xff]  ;;  %v24_v2 = vld [vmem:[%s515_s0] sm:$0xff]  ;;  %v27_v3 = vld [vmem:[%s515_s0 + $0x18] sm:$0xff] }
   0x2   :  { %43 = vperm.xlu0 %367, %v26_v1   ;;  %33 = vperm.xlu1 %368, %v24_v2   ;;  %v25_v4 = vld [vmem:[%s515_s0 + $0x8] sm:$0xff]  ;;  %v369_v6 = vld [vmem:[%s516_s4] sm:$0xff]   ;;  %v371_v10 = vld [vmem:[%s516_s4 + $0x10] sm:$0xff]  }
   0x3   :  { %320 = vmatprep.subr.bf16.mxu0 %v378_v5  ;;  %348 = vmatprep.subr.bf16.mxu1 %v378_v5  ;;  %v370_v7 = vld [vmem:[%s516_s4 + $0x8] sm:$0xff]   ;;  %v28_v8 = vld [vmem:[%s515_s0 + $0x20] sm:$0xff]  ;;  %v372_v11 = vld [vmem:[%s516_s4 + $0x18] sm:$0xff]  }
   0x4   :  { %321 = vmatpush3.bf16.msra.mxu0 %v369_v6  ;;  %356 = vmatpush3.bf16.msra.mxu1 %v369_v6  ;;  %v29_v9 = vld [vmem:[%s515_s0 + $0x28] sm:$0xff]  ;;  %v373_v12 = vld [vmem:[%s516_s4 + $0x20] sm:$0xff]   ;;  %v375_v14 = vld [vmem:[%s516_s4 + $0x30] sm:$0xff]  }
   0x5   :  { %322 = vmatprep.subr.bf16.mxu0 %v378_v5  ;;  %349 = vmatprep.subr.bf16.mxu1 %v378_v5  ;;  %v374_v13 = vld [vmem:[%s516_s4 + $0x28] sm:$0xff]   ;;  %v376_v15 = vld [vmem:[%s516_s4 + $0x38] sm:$0xff]   ;;  %v269_v16 = vld [vmem:[%s517_s2] ss:$0 sm:$0xff] }
   0x6   :  { %48 = vperm.xlu0 %367, %v27_v3   ;;  %38 = vperm.xlu1 %368, %v25_v4   ;;  %v270_v19 = vld [vmem:[%s518_s3] ss:$0 sm:$0xff]  ;;  %v225_v53 = vld [vmem:[%s520_s1 + $0x10] sm:$0xff]  ;;  %v224_v55 = vld [vmem:[%s520_s1 + $0x8] sm:$0xff] }
   0x7   :  { %336 = vmatprep.mubr.msk.bf16.mxu0 %vm379_vm0, %v378_v5  ;;  %340 = vmatprep.mubr.msk.bf16.mxu1 %vm379_vm0, %v378_v5  ;;  %v271_v45 = vld [vmem:[%s519_s5] ss:$0 sm:$0xff]  ;;  %v226_v57 = vld [vmem:[%s520_s1 + $0x18] sm:$0xff] }
   0x8   :  { %323 = vmatpush3.bf16.msra.mxu0 %v370_v7  ;;  %357 = vmatpush3.bf16.msra.mxu1 %v370_v7  ;;  %v223_v49 = vld [vmem:[%s520_s1] sm:$0xff] }
   0x9   :  { %324 = vmatprep.subr.bf16.mxu0 %v378_v5  ;;  %350 = vmatprep.subr.bf16.mxu1 %v378_v5  ;;  %v227_v7 = vld [vmem:[%s520_s1 + $0x20] sm:$0xff] }
   0xa   :  { %53 = vperm.xlu0 %367, %v28_v8   ;;  %58 = vperm.xlu1 %368, %v29_v9   ;;  %v228_v9 = vld [vmem:[%s520_s1 + $0x28] sm:$0xff] }
   0xc   :  { %325 = vmatpush3.bf16.msra.mxu0 %v371_v10  ;;  %358 = vmatpush3.bf16.msra.mxu1 %v371_v10 }
   0xd   :  { %326 = vmatprep.subr.bf16.mxu0 %v378_v5  ;;  %351 = vmatprep.subr.bf16.mxu1 %v378_v5 }
  0x10   :  { %327 = vmatpush3.bf16.msra.mxu0 %v372_v11  ;;  %359 = vmatpush3.bf16.msra.mxu1 %v372_v11 }
  0x11   :  { %328 = vmatprep.subr.bf16.mxu0 %v378_v5  ;;  %352 = vmatprep.subr.bf16.mxu1 %v378_v5 }
  0x14   :  { %329 = vmatpush3.bf16.msra.mxu0 %v373_v12  ;;  %360 = vmatpush3.bf16.msra.mxu1 %v373_v12 }
  0x15   :  { %330 = vmatprep.subr.bf16.mxu0 %v378_v5  ;;  %353 = vmatprep.subr.bf16.mxu1 %v378_v5 }
  0x18   :  { %331 = vmatpush3.bf16.msra.mxu0 %v374_v13  ;;  %361 = vmatpush3.bf16.msra.mxu1 %v374_v13 }
  0x19   :  { %332 = vmatprep.subr.bf16.mxu0 %v378_v5  ;;  %354 = vmatprep.subr.bf16.mxu1 %v378_v5 }
  0x1c   :  { %333 = vmatpush3.bf16.msra.mxu0 %v375_v14  ;;  %362 = vmatpush3.bf16.msra.mxu1 %v375_v14 }
  0x1d   :  { %334 = vmatprep.subr.bf16.mxu0 %v378_v5  ;;  %355 = vmatprep.subr.bf16.mxu1 %v378_v5 }
  0x20   :  { %335 = vmatpush3.bf16.msra.mxu0 %v376_v15  ;;  %363 = vmatpush3.bf16.msra.mxu1 %v376_v15 }
  0x81   :  { %v44_v17 = vpop.permute.xlu0 %43  ;;  %v34_v18 = vpop.permute.xlu1 %33 }
  0x82   :  { %v69_v20 = vmul.f32 %v269_v16, %v44_v17  ;;  %v67_v21 = vmul.f32 %v269_v16, %v34_v18 }
  0x84   :  { %v80_v22 = vadd.f32 %v270_v19, %v67_v21  ;;  %v82_v23 = vadd.f32 %v270_v19, %v69_v20 }
  0x85   :  { %v49_v24 = vpop.permute.xlu0 %48  ;;  %v39_v25 = vpop.permute.xlu1 %38 }
  0x86   :  { %v70_v26 = vmul.f32 %v269_v16, %v49_v24  ;;  %v68_v27 = vmul.f32 %v269_v16, %v39_v25  ;;  %v86_v28 = vmax.f32 %v80_v22, 0.0  ;;  %v88_v31 = vmax.f32 %v82_v23, 0.0 }
  0x88   :  { %v83_v29 = vadd.f32 %v270_v19, %v70_v26  ;;  %v81_v30 = vadd.f32 %v270_v19, %v68_v27 }
  0x89   :  { %v54_v32 = vpop.permute.xlu0 %53  ;;  %v59_v33 = vpop.permute.xlu1 %58 }
  0x8a   :  { %v89_v34 = vmax.f32 %v83_v29, 0.0  ;;  %v87_v35 = vmax.f32 %v81_v30, 0.0  ;;  %v71_v36 = vmul.f32 %v269_v16, %v54_v32  ;;  %v72_v37 = vmul.f32 %v269_v16, %v59_v33 }
  0x8c   :  { %v84_v38 = vadd.f32 %v270_v19, %v71_v36  ;;  %v85_v39 = vadd.f32 %v270_v19, %v72_v37  ;;  %v108_v40 = vpack.c.bf16 %v87_v35, %v86_v28  ;;  %v109_v41 = vpack.c.bf16 %v89_v34, %v88_v31 }
  0x8e   :  { %337 = vmatmul.mubr.bf16.vlgmr.msra.gmra.mrb[0].mxu0 %v108_v40  ;;  %341 = vmatmul.mubr.bf16.vlgmr.msra.gmra.mrb[0].mxu1 %v109_v41  ;;  %v90_v42 = vmax.f32 %v84_v38, 0.0  ;;  %v91_v43 = vmax.f32 %v85_v39, 0.0 }
  0x8f   :  { %344 = vmatprep.mubr.msk.bf16.mxu1 %vm379_vm0, %v378_v5 }
  0x90   :  { %v110_v44 = vpack.c.bf16 %v91_v43, %v90_v42 }
  0x96   :  { %345 = vmatmul.mubr.bf16.gmra.mrb[4].mxu1 %v110_v44 }
 0x161   :  { %v200_v46 = vpop.f32.mrb[0].mxu0  ;;  %v208_v47 = vpop.f32.mrb[0].mxu1 }
 0x162   :  { %v201_v48 = vadd.f32 %v271_v45, %v200_v46  ;;  %v209_v50 = vadd.f32 %v271_v45, %v208_v47  ;;  %v338_v51 = vpop.f32.mrb[1].mxu0  ;;  %v342_v52 = vpop.f32.mrb[1].mxu1 }
 0x163   :  { %v203_v54 = vpop.f32.mrb[2].mxu0  ;;  %v211_v56 = vpop.f32.mrb[2].mxu1 }
 0x164   :  { %v204_v58 = vadd.f32 %v271_v45, %v203_v54  ;;  %v212_v59 = vadd.f32 %v271_v45, %v211_v56  ;;  %v339_v60 = vpop.f32.mrb[3].mxu0  ;;  %v343_v61 = vpop.f32.mrb[3].mxu1  ;;  %v229_v62 = vmul.f32 %v223_v49, %v201_v48  ;;  %v231_v63 = vmul.f32 %v225_v53, %v209_v50 }
 0x166   :  { %v230_v0 = vmul.f32 %v224_v55, %v204_v58  ;;  %v232_v1 = vmul.f32 %v226_v57, %v212_v59 }
 0x168   :  { %v295_v2 = vpack.c.bf16 %v230_v0, %v229_v62  ;;  %v300_v3 = vpack.c.bf16 %v232_v1, %v231_v63 }
 0x169   :  { %v216_v4 = vpop.f32.mrb[4].mxu1 }
 0x16a   :  { %296 = vst [vmem:[%s521_s6] sm:$0xff] %v295_v2   ;;  %307 = vst [vmem:[%s521_s6 + $0x8] sm:$0xff] %v300_v3   ;;  %v217_v5 = vadd.f32 %v271_v45, %v216_v4  ;;  %v346_v6 = vpop.f32.mrb[5].mxu1 }
 0x16b   :  { %v219_v8 = vpop.f32.mrb[6].mxu1 }
 0x16c   :  { %v220_v10 = vadd.f32 %v271_v45, %v219_v8  ;;  %v347_v11 = vpop.f32.mrb[7].mxu1  ;;  %v233_v12 = vmul.f32 %v227_v7, %v217_v5 }
 0x16e   :  { %v234_v13 = vmul.f32 %v228_v9, %v220_v10 }
 0x170   :  { %v305_v14 = vpack.c.bf16 %v234_v13, %v233_v12 }
 0x172   :  { %308 = vst [vmem:[%s521_s6 + $0x10] sm:$0xff] %v305_v14  }

// kernel: run.55
= control target key start
LH: loop header
LB: loop body
LE: loop exit
PB: predicated region body
PF: predicated region fallthrough
CT: control target
= control target key end

     0   :  { %vm164_vm0 = vcmask 261120   ;;  %vm69_vm1 = vcmask 523264   ;;  %s651_s23 = smov 96   ;;  %s652_s26 = smov 64   ;;  %vm478_vm2 = vcmask 785408   ;;  %s827_s5 = inlined_call_operand.vmem [shape: f32[32,32], index: 5, kind: input, shape index: {}]   ;;  %s828_s1 = inlined_call_operand.vmem [shape: f32[16,32], index: 1, kind: input, shape index: {}]   ;;  %s829_s0 = inlined_call_operand.vmem [shape: f32[16,64], index: 0, kind: input, shape index: {}]   ;;  %s830_s2 = inlined_call_operand.vmem [shape: f32[16,32], index: 2, kind: input, shape index: {}]   ;;  %s831_s3 = inlined_call_operand.vmem [shape: f32[64,64], index: 3, kind: input, shape index: {}]   ;;  %s832_s9 = inlined_call_operand.vmem [shape: f32[32,32], index: 9, kind: input, shape index: {}]   ;;  %s833_s7 = inlined_call_operand.vmem [shape: f32[32,32], index: 7, kind: input, shape index: {}]   ;;  %s834_s6 = inlined_call_operand.vmem [shape: f32[1,32], index: 6, kind: input, shape index: {}]   ;;  %s835_s10 = inlined_call_operand.vmem [shape: f32[1,32], index: 10, kind: input, shape index: {}]   ;;  %s836_s8 = inlined_call_operand.vmem [shape: f32[1,32], index: 8, kind: input, shape index: {}]   ;;  %s837_s4 = inlined_call_operand.vmem [shape: f32[1,64], index: 4, kind: input, shape index: {}]   ;;  %s838_s11 = inlined_call_operand.vmem [shape: f32[16,128], index: 11, kind: output, shape index: {}]  }
   0x1   :  { %v153_v0 = vld [vmem:[%s827_s5] sm:$0xff]  ;;  %v154_v1 = vld [vmem:[%s827_s5 + $0x8] sm:$0xff]  ;;  %v155_v2 = vld [vmem:[%s827_s5 + $0x10] sm:$0xff] }
   0x2   :  { %v601_v3 = vpack.c.bf16 %v154_v1, %v153_v0  ;;  %v156_v4 = vld [vmem:[%s827_s5 + $0x18] sm:$0xff]  ;;  %v151_v5 = vld [vmem:[%s828_s1] sm:$0xff]  ;;  %v152_v7 = vld [vmem:[%s828_s1 + $0x8] sm:$0xff] }
   0x3   :  { %v605_v6 = vpack.c.bf16 %v156_v4, %v155_v2  ;;  %560 = vmatprep.mubr.msk.f32.mxu1 %vm164_vm0, %v151_v5  ;;  %v38_v8 = vld [vmem:[%s829_s0] sm:$0xff]  ;;  %v39_v9 = vld [vmem:[%s829_s0 + $0x8] sm:$0xff]  ;;  %v56_v21 = vld [vmem:[%s831_s3 + $0x10] sm:$0xff] }
   0x4   :  { %602 = vmatprep.subr.bf16.mxu1 %v601_v3  ;;  %v487_v10 = vmul.f32 -1.442695, %v38_v8  ;;  %v488_v11 = vmul.f32 -1.442695, %v39_v9  ;;  %v742_v12 = vld [vmem:[%s830_s2] sm:$0xff]  ;;  %v747_v13 = vld [vmem:[%s830_s2 + $0x8] sm:$0xff] }
   0x5   :  { %604 = vmatpush3.bf16.msra.mxu1 %v601_v3  ;;  %v500_v14 = vmul.f32 -1.442695, %v742_v12  ;;  %v501_v15 = vmul.f32 -1.442695, %v747_v13  ;;  %v54_v16 = vld [vmem:[%s831_s3] sm:$0xff]  ;;  %v55_v17 = vld [vmem:[%s831_s3 + $0x8] sm:$0xff] }
   0x6   :  { %606 = vmatprep.subr.bf16.mxu1 %v605_v6  ;;  %627 = vpow2.f32 %v487_v10  ;;  %v585_v18 = vpack.c.bf16 %v55_v17, %v54_v16  ;;  %v57_v22 = vld [vmem:[%s831_s3 + $0x18] sm:$0xff]  ;;  %v58_v26 = vld [vmem:[%s831_s3 + $0x20] sm:$0xff]  ;;  %v59_v27 = vld [vmem:[%s831_s3 + $0x28] sm:$0xff] }
   0x7   :  { %629 = vpow2.f32 %v488_v11  ;;  %v589_v24 = vpack.c.bf16 %v57_v22, %v56_v21  ;;  %v593_v28 = vpack.c.bf16 %v59_v27, %v58_v26  ;;  %v60_v32 = vld [vmem:[%s831_s3 + $0x30] sm:$0xff]  ;;  %v61_v33 = vld [vmem:[%s831_s3 + $0x38] sm:$0xff]  ;;  %v368_v37 = vld [vmem:[%s832_s9] sm:$0xff] }
   0x8   :  { %631 = vpow2.f32 %v500_v14  ;;  %586 = vmatprep.subr.bf16.mxu0 %v585_v18  ;;  %v597_v35 = vpack.c.bf16 %v61_v33, %v60_v32  ;;  %v369_v38 = vld [vmem:[%s832_s9 + $0x8] sm:$0xff]  ;;  %v260_v43 = vld [vmem:[%s833_s7] sm:$0xff]  ;;  %v370_v45 = vld [vmem:[%s832_s9 + $0x10] sm:$0xff] }
   0x9   :  { %608 = vmatpush3.bf16.msra.mxu1 %v605_v6  ;;  %633 = vpow2.f32 %v501_v15  ;;  %588 = vmatpush3.bf16.msra.mxu0 %v585_v18  ;;  %v617_v41 = vpack.c.bf16 %v369_v38, %v368_v37  ;;  %v261_v44 = vld [vmem:[%s833_s7 + $0x8] sm:$0xff]  ;;  %v371_v47 = vld [vmem:[%s832_s9 + $0x18] sm:$0xff]  ;;  %v262_v52 = vld [vmem:[%s833_s7 + $0x10] sm:$0xff] }
   0xa   :  { %590 = vmatprep.subr.bf16.mxu0 %v589_v24  ;;  %v609_v46 = vpack.c.bf16 %v261_v44, %v260_v43  ;;  %v621_v48 = vpack.c.bf16 %v371_v47, %v370_v45  ;;  %v263_v53 = vld [vmem:[%s833_s7 + $0x18] sm:$0xff]  ;;  %v492_v56 = vld [vmem:[%s834_s6] ss:$0 sm:$0xff] }
   0xb   :  { %v613_v55 = vpack.c.bf16 %v263_v53, %v262_v52  ;;  %v497_v14 = vld [vmem:[%s836_s8] ss:$0 sm:$0xff] }
   0xc   :  { %561 = vmatmul.mubr.msk.f32.vlgmr.msra.gmra.mrb[0].mxu1 %vm164_vm0, %v152_v7  ;;  %610 = vmatprep.subr.bf16.mxu1 %v609_v46 }
   0xd   :  { %592 = vmatpush3.bf16.msra.mxu0 %v589_v24  ;;  %612 = vmatpush3.bf16.msra.mxu1 %v609_v46 }
   0xe   :  { %594 = vmatprep.subr.bf16.mxu0 %v593_v28  ;;  %614 = vmatprep.subr.bf16.mxu1 %v613_v55 }
  0x10   :  { %v628_v19 = vpop.eup %627 }
  0x11   :  { %v630_v20 = vpop.eup %629  ;;  %v46_v23 = vadd.f32 1.0, %v628_v19  ;;  %596 = vmatpush3.bf16.msra.mxu0 %v593_v28  ;;  %616 = vmatpush3.bf16.msra.mxu1 %v613_v55  ;;  %v489_v19 = vld [vmem:[%s837_s4] ss:$0 sm:$0xff] }
  0x12   :  { %v47_v25 = vadd.f32 1.0, %v630_v20  ;;  %v632_v29 = vpop.eup %631  ;;  %598 = vmatprep.subr.bf16.mxu0 %v597_v35 }
  0x13   :  { %635 = vrcp.f32 %v46_v23  ;;  %v634_v30 = vpop.eup %633  ;;  %v360_v31 = vadd.f32 1.0, %v632_v29 }
  0x14   :  { %637 = vrcp.f32 %v47_v25  ;;  %v361_v34 = vadd.f32 1.0, %v634_v30 }
  0x15   :  { %639 = vrcp.f32 %v360_v31  ;;  %600 = vmatpush3.bf16.msra.mxu0 %v597_v35 }
  0x16   :  { %641 = vrcp.f32 %v361_v34  ;;  %618 = vmatprep.subr.bf16.mxu0 %v617_v41 }
  0x1d   :  { %v636_v36 = vpop.eup %635 }
  0x1e   :  { %v638_v39 = vpop.eup %637  ;;  %v52_v40 = vmul.f32 %v636_v36, %v38_v8 }
  0x1f   :  { %v53_v42 = vmul.f32 %v638_v39, %v39_v9  ;;  %v640_v49 = vpop.eup %639  ;;  %v502_v9 = vld [vmem:[%s835_s10] ss:$0 sm:$0xff] }
  0x20   :  { %549 = vmatprep.mubr.msk.f32.mxu0 %vm69_vm1, %v52_v40  ;;  %v642_v50 = vpop.eup %641  ;;  %v366_v51 = vmul.f32 %v640_v49, %v742_v12 }
  0x21   :  { %550 = vmatmul.mubr.msk.f32.vlgmr.msra.gmra.mrb[0].mxu0 %vm69_vm1, %v53_v42  ;;  %v367_v54 = vmul.f32 %v642_v50, %v747_v13 }
  0x22   :  { %620 = vmatpush3.bf16.msra.mxu0 %v617_v41  ;;  %582 = vmatprep.mubr.msk.f32.mxu0 %vm164_vm0, %v366_v51 }
  0x23   :  { %622 = vmatprep.subr.bf16.mxu0 %v621_v48 }
  0x26   :  { %624 = vmatpush3.bf16.msra.mxu0 %v621_v48 }
  0x29   :  { %583 = vmatmul.mubr.msk.f32.vlgmr.msra.gmra.mrb[2].mxu0 %vm164_vm0, %v367_v54 }
  0xdf   :  { %v562_v57 = vpop.f32.mrb[0].mxu1 }
  0xe0   :  { %v243_v58 = vadd.f32 %v562_v57, %v492_v56  ;;  %v237_v59 = vpop.f32.mrb[1].mxu1 }
  0xe1   :  { %v238_v60 = vadd.f32 %v492_v56, %v237_v59 }
  0xe2   :  { %v496_v61 = vmul.f32 -1.442695, %v243_v58 }
  0xe3   :  { %v495_v62 = vmul.f32 -1.442695, %v238_v60 }
  0xe4   :  { %643 = vpow2.f32 %v496_v61 }
  0xe5   :  { %645 = vpow2.f32 %v495_v62 }
  0xee   :  { %v644_v63 = vpop.eup %643 }
  0xef   :  { %v646_v0 = vpop.eup %645  ;;  %v253_v1 = vadd.f32 1.0, %v644_v63 }
  0xf0   :  { %v252_v2 = vadd.f32 1.0, %v646_v0 }
  0xf1   :  { %647 = vrcp.f32 %v253_v1 }
  0xf2   :  { %649 = vrcp.f32 %v252_v2 }
  0xf4   :  { %v551_v7 = vpop.f32.mrb[0].mxu0 }
  0xf5   :  { %v142_v8 = vpop.f32.mrb[1].mxu0  ;;  %v148_v25 = vadd.f32 %v551_v7, %v489_v19 }
  0xf6   :  { %v143_v20 = vadd.f32 %v489_v19, %v142_v8 }
  0xfb   :  { %v648_v3 = vpop.eup %647 }
  0xfc   :  { %v650_v4 = vpop.eup %649  ;;  %v259_v6 = vmul.f32 %v648_v3, %v243_v58  ;;  %v584_v10 = vpop.f32.mrb[2].mxu0 }
  0xfd   :  { %v258_v5 = vmul.f32 %v650_v4, %v238_v60  ;;  %v451_v11 = vpop.f32.mrb[3].mxu0  ;;  %v457_v13 = vadd.f32 %v584_v10, %v502_v9 }
  0xfe   :  { %v452_v12 = vadd.f32 %v502_v9, %v451_v11 }
  0xff   :  { %571 = vmatprep.mubr.msk.f32.mxu1 %vm164_vm0, %v258_v5 }
 0x100   :  { %572 = vmatmul.mubr.msk.f32.vlgmr.msra.gmra.mrb[2].mxu1 %vm164_vm0, %v259_v6  ;;  %470 = vrot.lane.b32.xlu1 %v452_v12, %s651_s23 }
 0x104   :  { %472 = vrot.lane.b32.xlu1 %v457_v13, %s651_s23 }
 0x172   :  { %v471_v21 = vpop.permute.xlu1 %470 }
 0x176   :  { %v473_v27 = vpop.permute.xlu1 %472 }
 0x1d3   :  { %v573_v15 = vpop.f32.mrb[2].mxu1 }
 0x1d4   :  { %v343_v16 = vpop.f32.mrb[3].mxu1  ;;  %v349_v18 = vadd.f32 %v573_v15, %v497_v14 }
 0x1d5   :  { %v344_v17 = vadd.f32 %v497_v14, %v343_v16 }
 0x1d7   :  { %462 = vrot.lane.b32.xlu0 %v344_v17, %s652_s26 }
 0x1db   :  { %464 = vrot.lane.b32.xlu0 %v349_v18, %s652_s26 }
 0x249   :  { %v463_v22 = vpop.permute.xlu0 %462 }
 0x24a   :  { %v476_v23 = vsel %vm69_vm1, %v143_v20, %v463_v22 }
 0x24b   :  { %v479_v24 = vsel %vm478_vm2, %v476_v23, %v471_v21 }
 0x24c   :  { %481 = vst [vmem:[%s838_s11] sm:$0xff] %v479_v24 }
 0x24d   :  { %v465_v26 = vpop.permute.xlu0 %464 }
 0x24e   :  { %v477_v28 = vsel %vm69_vm1, %v148_v25, %v465_v26 }
 0x24f   :  { %v480_v29 = vsel %vm478_vm2, %v477_v28, %v473_v27 }
 0x250   :  { %482 = vst [vmem:[%s838_s11 + $0x8] sm:$0xff] %v480_v29 }

// kernel: sub.30
= control target key start
LH: loop header
LB: loop body
LE: loop exit
PB: predicated region body
PF: predicated region fallthrough
CT: control target
= control target key end

     0   :  { %s144_s0 = inlined_call_operand.vmem [shape: f32[48,3], index: 0, kind: input, shape index: {}]   ;;  %s145_s1 = inlined_call_operand.vmem [shape: f32[48,3], index: 1, kind: input, shape index: {}]   ;;  %s146_s2 = inlined_call_operand.vmem [shape: f32[48,3], index: 2, kind: output, shape index: {}]  }
   0x1   :  { %v3_v0 = vld [vmem:[%s144_s0] sm:$0xff]  ;;  %v60_v2 = vld [vmem:[%s144_s0 + $0x8] sm:$0xff]  ;;  %v63_v5 = vld [vmem:[%s144_s0 + $0x10] sm:$0xff] }
   0x2   :  { %v4_v1 = vld [vmem:[%s145_s1] sm:$0xff]  ;;  %v61_v4 = vld [vmem:[%s145_s1 + $0x8] sm:$0xff]  ;;  %v64_v6 = vld [vmem:[%s145_s1 + $0x10] sm:$0xff] }
   0x3   :  { %v7_v3 = vsub.f32 %v3_v0, %v4_v1  ;;  %v16_v7 = vsub.f32 %v60_v2, %v61_v4  ;;  %v26_v8 = vsub.f32 %v63_v5, %v64_v6  ;;  %v66_v9 = vld [vmem:[%s144_s0 + $0x18] sm:$0xff]  ;;  %v69_v11 = vld [vmem:[%s144_s0 + $0x20] sm:$0xff]  ;;  %v72_v14 = vld [vmem:[%s144_s0 + $0x28] sm:$0xff] }
   0x4   :  { %v67_v10 = vld [vmem:[%s145_s1 + $0x18] sm:$0xff]  ;;  %v70_v13 = vld [vmem:[%s145_s1 + $0x20] sm:$0xff]  ;;  %v73_v15 = vld [vmem:[%s145_s1 + $0x28] sm:$0xff] }
   0x5   :  { %9 = vst [vmem:[%s146_s2] sm:$0xff] %v7_v3  ;;  %v36_v12 = vsub.f32 %v66_v9, %v67_v10  ;;  %62 = vst [vmem:[%s146_s2 + $0x8] sm:$0xff] %v16_v7  ;;  %v46_v16 = vsub.f32 %v69_v11, %v70_v13  ;;  %v56_v17 = vsub.f32 %v72_v14, %v73_v15 }
   0x6   :  { %65 = vst [vmem:[%s146_s2 + $0x10] sm:$0xff] %v26_v8 }
   0x7   :  { %68 = vst [vmem:[%s146_s2 + $0x18] sm:$0xff] %v36_v12  ;;  %71 = vst [vmem:[%s146_s2 + $0x20] sm:$0xff] %v46_v16 }
   0x8   :  { %74 = vst [vmem:[%s146_s2 + $0x28] sm:$0xff] %v56_v17 }

// kernel: run.58
= control target key start
LH: loop header
LB: loop body
LE: loop exit
PB: predicated region body
PF: predicated region fallthrough
CT: control target
= control target key end

     0   :  { %v1464_v1 = vmov 0.0   ;;  %vm1465_vm0 = vmmov 0   ;;  %vm67_vm1 = vcmask 23552   ;;  %s1923_s4 = inlined_call_operand.vmem [shape: bf16[256,128], index: 4, kind: input, shape index: {}]   ;;  %s1924_s6 = inlined_call_operand.vmem [shape: bf16[128,128], index: 6, kind: input, shape index: {}]   ;;  %s1925_s1 = inlined_call_operand.vmem [shape: f32[48,128], index: 1, kind: input, shape index: {}]   ;;  %s1926_s0 = inlined_call_operand.vmem [shape: f32[48,128], index: 0, kind: input, shape index: {}]   ;;  %s1927_s3 = inlined_call_operand.vmem [shape: bf16[48,128], index: 3, kind: input, shape index: {}]   ;;  %s1928_s2 = inlined_call_operand.vmem [shape: f32[48,3], index: 2, kind: input, shape index: {}]   ;;  %s1929_s8 = inlined_call_operand.vmem [shape: bf16[128,128], index: 8, kind: input, shape index: {}]   ;;  %s1930_s5 = inlined_call_operand.vmem [shape: f32[1,128], index: 5, kind: input, shape index: {}]   ;;  %s1931_s7 = inlined_call_operand.vmem [shape: f32[1,128], index: 7, kind: input, shape index: {}]   ;;  %s1932_s11 = inlined_call_operand.<no memory space> [shape: f32[1,1], index: 11, kind: input, shape index: {}]   ;;  %s1933_s9 = inlined_call_operand.vmem [shape: f32[1,128], index: 9, kind: input, shape index: {}]   ;;  %s1934_s10 = inlined_call_operand.vmem [shape: f32[1,128], index: 10, kind: input, shape index: {}]   ;;  %s1935_s12 = inlined_call_operand.vmem [shape: bf16[128,128], index: 12, kind: input, shape index: {}]   ;;  %s1936_s15 = inlined_call_operand.vmem [shape: bf16[48,128], index: 15, kind: output, shape index: {0}]   ;;  %s1937_s13 = inlined_call_operand.vmem [shape: f32[1,128], index: 13, kind: input, shape index: {}]   ;;  %s1938_s14 = inlined_call_operand.vmem [shape: f32[1,128], index: 14, kind: input, shape index: {}]   ;;  %s1939_s16 = inlined_call_operand.vmem [shape: f32[48,3], index: 16, kind: output, shape index: {1}]  }
   0x1   :  { %1941 = sst [smem:[#allocation3_spill]] %s1923_s4  ;;  %1224 = vmatprep.subr.bf16.mxu1 %v1464_v1  ;;  %1240 = vmatprep.mubr.msk.bf16.mxu1 %vm1465_vm0, %v1464_v1  ;;  %v1317_v5 = vld [vmem:[%s1924_s6] sm:$0xff]   ;;  %v1320_v8 = vld [vmem:[%s1924_s6 + $0x8] sm:$0xff]   ;;  %v1323_v10 = vld [vmem:[%s1924_s6 + $0x10] sm:$0xff]  }
   0x2   :  { %s1942_s23 = sld [smem:[#allocation3_spill]]  ;;  %1225 = vmatpush3.bf16.msra.mxu1 %v1317_v5  ;;  %v1326_v13 = vld [vmem:[%s1924_s6 + $0x18] sm:$0xff]   ;;  %v1329_v16 = vld [vmem:[%s1924_s6 + $0x20] sm:$0xff]   ;;  %v1332_v19 = vld [vmem:[%s1924_s6 + $0x28] sm:$0xff]  }
   0x3   :  { %1226 = vmatprep.subr.bf16.mxu1 %v1464_v1  ;;  %v92_v21 = vld [vmem:[%s1925_s1] sm:$0xff]  ;;  %v93_v22 = vld [vmem:[%s1925_s1 + $0x8] sm:$0xff]  ;;  %v1335_v26 = vld [vmem:[%s1924_s6 + $0x30] sm:$0xff]  }
   0x4   :  { %v131_v24 = vpack.c.bf16 %v93_v22, %v92_v21  ;;  %v86_v27 = vld [vmem:[%s1926_s0] sm:$0xff]  ;;  %v87_v28 = vld [vmem:[%s1926_s0 + $0x8] sm:$0xff]  ;;  %v94_v29 = vld [vmem:[%s1925_s1 + $0x10] sm:$0xff] }
   0x5   :  { %v95_v30 = vld [vmem:[%s1925_s1 + $0x18] sm:$0xff]  ;;  %v130_v31 = vpack.c.bf16 %v87_v28, %v86_v27  ;;  %v1655_v34 = vld [vmem:[%s1928_s2] sm:$0xff]  ;;  %v1660_v35 = vld [vmem:[%s1928_s2 + $0x8] sm:$0xff] }
   0x6   :  { %1227 = vmatpush3.bf16.msra.mxu1 %v1320_v8  ;;  %277 = vmatprep.mubr.bf16.mxu0 %v131_v24  ;;  %v1336_v32 = vld [vmem:[%s1924_s6 + $0x38] sm:$0xff]   ;;  %v133_v33 = vpack.c.bf16 %v95_v30, %v94_v29  ;;  %v1665_v36 = vld [vmem:[%s1928_s2 + $0x10] sm:$0xff]  ;;  %v61_v37 = vmul.f32 %v1655_v34, %v1655_v34  ;;  %v62_v38 = vmul.f32 %v1660_v35, %v1660_v35  ;;  %v1337_v41 = vld [vmem:[%s1927_s3] sm:$0xff]  }
   0x7   :  { %1228 = vmatprep.subr.bf16.mxu1 %v1464_v1  ;;  %v63_v39 = vmul.f32 %v1665_v36, %v1665_v36  ;;  %v1676_v40 = vld [vmem:[%s1928_s2 + $0x18] sm:$0xff]  ;;  %v1687_v43 = vld [vmem:[%s1928_s2 + $0x20] sm:$0xff]  ;;  %v1694_v46 = vld [vmem:[%s1928_s2 + $0x28] sm:$0xff] }
   0x8   :  { %v1313_v0 = vld [vmem:[%s1942_s23 + $0x40] sm:$0xff]   ;;  %v1315_v3 = vld [vmem:[%s1942_s23 + $0x48] sm:$0xff]   ;;  %v1318_v6 = vld [vmem:[%s1942_s23 + $0x50] sm:$0xff]   ;;  %v64_v42 = vmul.f32 %v1676_v40, %v1676_v40  ;;  %v68_v44 = vsel %vm67_vm1, %v61_v37, 0.0  ;;  %v71_v51 = vsel %vm67_vm1, %v62_v38, 0.0  ;;  %v65_v52 = vmul.f32 %v1687_v43, %v1687_v43 }
   0x9   :  { %v1314_v2 = vld [vmem:[%s1942_s23] sm:$0xff]   ;;  %1157 = vmatprep.subr.bf16.mxu0 %v1313_v0  ;;  %v1316_v4 = vld [vmem:[%s1942_s23 + $0x8] sm:$0xff]   ;;  %v1319_v7 = vld [vmem:[%s1942_s23 + $0x10] sm:$0xff]   ;;  %v74_v45 = vsel %vm67_vm1, %v63_v39, 0.0  ;;  %69 = vadd.xlane.f32.xlu0 %v68_v44  ;;  %v66_v54 = vmul.f32 %v1694_v46, %v1694_v46 }
   0xa   :  { %1158 = vmatpush3.bf16.msra.mxu0 %v1314_v2  ;;  %v1321_v9 = vld [vmem:[%s1942_s23 + $0x58] sm:$0xff]   ;;  %v1324_v12 = vld [vmem:[%s1942_s23 + $0x60] sm:$0xff]   ;;  %1229 = vmatpush3.bf16.msra.mxu1 %v1323_v10  ;;  %v1327_v15 = vld [vmem:[%s1942_s23 + $0x68] sm:$0xff]   ;;  %v77_v53 = vsel %vm67_vm1, %v64_v42, 0.0  ;;  %v80_v57 = vsel %vm67_vm1, %v65_v52, 0.0 }
   0xb   :  { %1159 = vmatprep.subr.bf16.mxu0 %v1315_v3  ;;  %v1322_v11 = vld [vmem:[%s1942_s23 + $0x18] sm:$0xff]   ;;  %1230 = vmatprep.subr.bf16.mxu1 %v1464_v1  ;;  %v1325_v14 = vld [vmem:[%s1942_s23 + $0x20] sm:$0xff]   ;;  %v1328_v17 = vld [vmem:[%s1942_s23 + $0x28] sm:$0xff]   ;;  %v83_v59 = vsel %vm67_vm1, %v66_v54, 0.0 }
   0xc   :  { %v1330_v18 = vld [vmem:[%s1942_s23 + $0x70] sm:$0xff]   ;;  %v1333_v23 = vld [vmem:[%s1942_s23 + $0x78] sm:$0xff]   ;;  %v96_v49 = vld [vmem:[%s1925_s1 + $0x20] sm:$0xff]  ;;  %75 = vadd.xlane.f32.xlu1 %v74_v45 }
   0xd   :  { %v1331_v20 = vld [vmem:[%s1942_s23 + $0x30] sm:$0xff]   ;;  %v1334_v25 = vld [vmem:[%s1942_s23 + $0x38] sm:$0xff]   ;;  %v97_v50 = vld [vmem:[%s1925_s1 + $0x28] sm:$0xff]  ;;  %72 = vadd.xlane.f32.xlu0 %v71_v51 }
   0xe   :  { %1160 = vmatpush3.bf16.msra.mxu0 %v1316_v4  ;;  %1231 = vmatpush3.bf16.msra.mxu1 %v1326_v13  ;;  %v88_v47 = vld [vmem:[%s1926_s0 + $0x10] sm:$0xff]  ;;  %v89_v48 = vld [vmem:[%s1926_s0 + $0x18] sm:$0xff]  ;;  %v135_v56 = vpack.c.bf16 %v97_v50, %v96_v49  ;;  %v1338_v58 = vld [vmem:[%s1927_s3 + $0x8] sm:$0xff]  }
   0xf   :  { %1161 = vmatprep.subr.bf16.mxu0 %v1318_v6  ;;  %1232 = vmatprep.subr.bf16.mxu1 %v1464_v1  ;;  %v132_v55 = vpack.c.bf16 %v89_v48, %v88_v47  ;;  %v90_v60 = vld [vmem:[%s1926_s0 + $0x20] sm:$0xff]  ;;  %v91_v61 = vld [vmem:[%s1926_s0 + $0x28] sm:$0xff]  ;;  %v1339_v63 = vld [vmem:[%s1927_s3 + $0x10] sm:$0xff]  }
  0x10   :  { %78 = vadd.xlane.f32.xlu1 %v77_v53  ;;  %v134_v62 = vpack.c.bf16 %v91_v61, %v90_v60  ;;  %v1340_v0 = vld [vmem:[%s1929_s8] sm:$0xff]   ;;  %v1341_v2 = vld [vmem:[%s1929_s8 + $0x8] sm:$0xff]   ;;  %v1342_v3 = vld [vmem:[%s1929_s8 + $0x10] sm:$0xff]  }
  0x11   :  { %81 = vadd.xlane.f32.xlu0 %v80_v57  ;;  %v1343_v4 = vld [vmem:[%s1929_s8 + $0x18] sm:$0xff]   ;;  %v1344_v5 = vld [vmem:[%s1929_s8 + $0x20] sm:$0xff]   ;;  %v1345_v6 = vld [vmem:[%s1929_s8 + $0x28] sm:$0xff]  }
  0x12   :  { %1162 = vmatpush3.bf16.msra.mxu0 %v1319_v7  ;;  %1233 = vmatpush3.bf16.msra.mxu1 %v1329_v16  ;;  %v1346_v7 = vld [vmem:[%s1929_s8 + $0x30] sm:$0xff]   ;;  %v1347_v8 = vld [vmem:[%s1929_s8 + $0x38] sm:$0xff]   ;;  %v1054_v10 = vld [vmem:[%s1930_s5] ss:$0 sm:$0xff] }
  0x13   :  { %1163 = vmatprep.subr.bf16.mxu0 %v1321_v9  ;;  %1234 = vmatprep.subr.bf16.mxu1 %v1464_v1 }
  0x14   :  { %84 = vadd.xlane.f32.xlu1 %v83_v59 }
  0x16   :  { %1164 = vmatpush3.bf16.msra.mxu0 %v1322_v11  ;;  %1235 = vmatpush3.bf16.msra.mxu1 %v1332_v19 }
  0x17   :  { %1165 = vmatprep.subr.bf16.mxu0 %v1324_v12  ;;  %1236 = vmatprep.subr.bf16.mxu1 %v1464_v1 }
  0x1a   :  { %1166 = vmatpush3.bf16.msra.mxu0 %v1325_v14  ;;  %1237 = vmatpush3.bf16.msra.mxu1 %v1335_v26 }
  0x1b   :  { %1167 = vmatprep.subr.bf16.mxu0 %v1327_v15  ;;  %1238 = vmatprep.subr.bf16.mxu1 %v1464_v1 }
  0x1e   :  { %1168 = vmatpush3.bf16.msra.mxu0 %v1328_v17  ;;  %1239 = vmatpush3.bf16.msra.mxu1 %v1336_v32 }
  0x1f   :  { %1169 = vmatprep.subr.bf16.mxu0 %v1330_v18  ;;  %1280 = vmatprep.subr.bf16.mxu1 %v1464_v1 }
  0x21   :  { %1241 = vmatmul.mubr.bf16.vlgmr.msra.gmra.mrb[0].mxu1 %v1337_v41 }
  0x22   :  { %1170 = vmatpush3.bf16.msra.mxu0 %v1331_v20  ;;  %1244 = vmatprep.mubr.msk.bf16.mxu1 %vm1465_vm0, %v1464_v1  ;;  %v1071_v20 = vld [vmem:[%s1931_s7] ss:$0 sm:$0xff] }
  0x23   :  { %1171 = vmatprep.subr.bf16.mxu0 %v1333_v23 }
  0x26   :  { %1172 = vmatpush3.bf16.msra.mxu0 %v1334_v25 }
  0x27   :  { %1252 = vmatprep.subr.bf16.mxu0 %v1464_v1 }
  0x29   :  { %278 = vmatmul.mubr.bf16.vlgmr.msra.gmra.mrb[0].mxu0 %v130_v31  ;;  %1245 = vmatmul.mubr.bf16.gmra.mrb[4].mxu1 %v1338_v58 }
  0x2a   :  { %285 = vmatprep.mubr.bf16.mxu0 %v133_v33  ;;  %1248 = vmatprep.mubr.msk.bf16.mxu1 %vm1465_vm0, %v1464_v1 }
  0x2b   :  { %1253 = vmatpush3.bf16.msra.mxu0 %v1340_v0 }
  0x2c   :  { %1254 = vmatprep.subr.bf16.mxu0 %v1464_v1 }
  0x2f   :  { %1255 = vmatpush3.bf16.msra.mxu0 %v1341_v2 }
  0x30   :  { %1256 = vmatprep.subr.bf16.mxu0 %v1464_v1 }
  0x31   :  { %286 = vmatmul.mubr.bf16.gmra.mrb[4].mxu0 %v132_v55  ;;  %1249 = vmatmul.mubr.bf16.gmra.mrb[8].mxu1 %v1339_v63 }
  0x32   :  { %293 = vmatprep.mubr.bf16.mxu0 %v135_v56  ;;  %1296 = vmatprep.mubr.msk.bf16.mxu1 %vm1465_vm0, %v1464_v1 }
  0x33   :  { %1257 = vmatpush3.bf16.msra.mxu0 %v1342_v3 }
  0x34   :  { %1258 = vmatprep.subr.bf16.mxu0 %v1464_v1 }
  0x37   :  { %1259 = vmatpush3.bf16.msra.mxu0 %v1343_v4 }
  0x38   :  { %1260 = vmatprep.subr.bf16.mxu0 %v1464_v1 }
  0x39   :  { %294 = vmatmul.mubr.bf16.gmra.mrb[8].mxu0 %v134_v62 }
  0x3a   :  { %1268 = vmatprep.mubr.msk.bf16.mxu0 %vm1465_vm0, %v1464_v1 }
  0x3b   :  { %1261 = vmatpush3.bf16.msra.mxu0 %v1344_v5 }
  0x3c   :  { %1262 = vmatprep.subr.bf16.mxu0 %v1464_v1 }
  0x3f   :  { %1263 = vmatpush3.bf16.msra.mxu0 %v1345_v6 }
  0x40   :  { %1264 = vmatprep.subr.bf16.mxu0 %v1464_v1 }
  0x43   :  { %1265 = vmatpush3.bf16.msra.mxu0 %v1346_v7 }
  0x44   :  { %1266 = vmatprep.subr.bf16.mxu0 %v1464_v1 }
  0x47   :  { %1267 = vmatpush3.bf16.msra.mxu0 %v1347_v8 }
  0x96   :  { %v1768_v9 = vpop.xlane.xlu0 %69 }
  0x97   :  { %v143_v15 = vmul.f32 %v1054_v10, %v1768_v9 }
  0x99   :  { %v1775_v14 = vpop.xlane.xlu1 %75 }
  0x9a   :  { %v1773_v11 = vpop.xlane.xlu0 %72  ;;  %v145_v33 = vmul.f32 %v1054_v10, %v1775_v14 }
  0x9b   :  { %v144_v18 = vmul.f32 %v1054_v10, %v1773_v11 }
  0x9d   :  { %v1782_v29 = vpop.xlane.xlu1 %78 }
  0x9e   :  { %v146_v44 = vmul.f32 %v1054_v10, %v1782_v29  ;;  %v1792_v53 = vpop.xlane.xlu0 %81 }
  0x9f   :  { %v147_v61 = vmul.f32 %v1054_v10, %v1792_v53 }
  0xa1   :  { %v1794_v57 = vpop.xlane.xlu1 %84 }
  0xa2   :  { %v148_v4 = vmul.f32 %v1054_v10, %v1794_v57 }
  0xf4   :  { %v437_v21 = vpop.f32.mrb[0].mxu1 }
  0xf5   :  { %v1242_v24 = vpop.f32.mrb[1].mxu1 }
  0xf6   :  { %v440_v25 = vpop.f32.mrb[2].mxu1 }
  0xf7   :  { %v1243_v28 = vpop.f32.mrb[3].mxu1 }
  0xfc   :  { %v1173_v12 = vpop.f32.mrb[0].mxu0  ;;  %v445_v47 = vpop.f32.mrb[4].mxu1 }
  0xfd   :  { %v1174_v13 = vpop.f32.mrb[1].mxu0  ;;  %v1246_v51 = vpop.f32.mrb[5].mxu1 }
  0xfe   :  { %v1175_v16 = vadd.f32 %v1174_v13, %v1173_v12  ;;  %v1176_v17 = vpop.f32.mrb[2].mxu0  ;;  %v448_v52 = vpop.f32.mrb[6].mxu1 }
  0xff   :  { %v1177_v19 = vpop.f32.mrb[3].mxu0  ;;  %v1247_v56 = vpop.f32.mrb[7].mxu1 }
 0x100   :  { %v280_v22 = vadd.f32 %v1175_v16, %v143_v15  ;;  %v1178_v23 = vadd.f32 %v1177_v19, %v1176_v17 }
 0x102   :  { %v283_v26 = vadd.f32 %v1178_v23, %v144_v18  ;;  %v309_v27 = vadd.f32 %v1071_v20, %v280_v22 }
 0x104   :  { %v1784_v30 = vadd.f32 %v437_v21, %v309_v27  ;;  %v310_v31 = vadd.f32 %v1071_v20, %v283_v26  ;;  %v1179_v32 = vpop.f32.mrb[4].mxu0  ;;  %v453_v6 = vpop.f32.mrb[8].mxu1 }
 0x105   :  { %v1180_v37 = vpop.f32.mrb[5].mxu0  ;;  %v1250_v13 = vpop.f32.mrb[9].mxu1 }
 0x106   :  { %v1083_v38 = vmul.f32 -1.442695, %v1784_v30  ;;  %v1788_v39 = vadd.f32 %v440_v25, %v310_v31  ;;  %v1181_v41 = vadd.f32 %v1180_v37, %v1179_v32  ;;  %v1182_v42 = vpop.f32.mrb[6].mxu0  ;;  %v456_v15 = vpop.f32.mrb[10].mxu1 }
 0x107   :  { %v1183_v45 = vpop.f32.mrb[7].mxu0  ;;  %v1251_v19 = vpop.f32.mrb[11].mxu1 }
 0x108   :  { %1356 = vpow2.f32 %v1083_v38  ;;  %v1084_v48 = vmul.f32 -1.442695, %v1788_v39  ;;  %v288_v49 = vadd.f32 %v1181_v41, %v145_v33  ;;  %v1184_v50 = vadd.f32 %v1183_v45, %v1182_v42 }
 0x10a   :  { %1358 = vpow2.f32 %v1084_v48  ;;  %v291_v54 = vadd.f32 %v1184_v50, %v146_v44  ;;  %v311_v55 = vadd.f32 %v1071_v20, %v288_v49 }
 0x10c   :  { %v462_v58 = vadd.f32 %v445_v47, %v311_v55  ;;  %v312_v59 = vadd.f32 %v1071_v20, %v291_v54  ;;  %v1185_v60 = vpop.f32.mrb[8].mxu0 }
 0x10d   :  { %v1186_v62 = vpop.f32.mrb[9].mxu0 }
 0x10e   :  { %v1085_v63 = vmul.f32 -1.442695, %v462_v58  ;;  %v463_v0 = vadd.f32 %v448_v52, %v312_v59  ;;  %v1187_v2 = vadd.f32 %v1186_v62, %v1185_v60  ;;  %v1188_v3 = vpop.f32.mrb[10].mxu0  ;;  %v22_v60 = vstv %s1932_s11 }
 0x10f   :  { %v1189_v5 = vpop.f32.mrb[11].mxu0  ;;  %23 = vst [vmem:[#allocation2] sm:$0x1] %v22_v60 }
 0x110   :  { %1360 = vpow2.f32 %v1085_v63  ;;  %v1086_v7 = vmul.f32 -1.442695, %v463_v0  ;;  %v296_v8 = vadd.f32 %v1187_v2, %v147_v61  ;;  %v1190_v12 = vadd.f32 %v1189_v5, %v1188_v3 }
 0x112   :  { %v1357_v16 = vpop.eup %1356  ;;  %1362 = vpow2.f32 %v1086_v7  ;;  %v299_v17 = vadd.f32 %v1190_v12, %v148_v4  ;;  %v313_v18 = vadd.f32 %v1071_v20, %v296_v8 }
 0x113   :  { %v484_v21 = vadd.f32 1.0, %v1357_v16 }
 0x114   :  { %v1359_v22 = vpop.eup %1358  ;;  %v464_v23 = vadd.f32 %v453_v6, %v313_v18  ;;  %v314_v24 = vadd.f32 %v1071_v20, %v299_v17 }
 0x115   :  { %1364 = vrcp.f32 %v484_v21  ;;  %v485_v25 = vadd.f32 1.0, %v1359_v22 }
 0x116   :  { %v1087_v10 = vmul.f32 -1.442695, %v464_v23  ;;  %v465_v26 = vadd.f32 %v456_v15, %v314_v24 }
 0x117   :  { %1366 = vrcp.f32 %v485_v25 }
 0x118   :  { %1368 = vpow2.f32 %v1087_v10  ;;  %v1088_v27 = vmul.f32 -1.442695, %v465_v26 }
 0x11a   :  { %v1361_v28 = vpop.eup %1360  ;;  %1370 = vpow2.f32 %v1088_v27 }
 0x11b   :  { %v486_v31 = vadd.f32 1.0, %v1361_v28 }
 0x11c   :  { %v1363_v32 = vpop.eup %1362 }
 0x11d   :  { %1372 = vrcp.f32 %v486_v31  ;;  %v487_v33 = vadd.f32 1.0, %v1363_v32 }
 0x11f   :  { %v1365_v37 = vpop.eup %1364  ;;  %1374 = vrcp.f32 %v487_v33 }
 0x120   :  { %v502_v42 = vmul.f32 %v1365_v37, %v1784_v30 }
 0x121   :  { %v1367_v38 = vpop.eup %1366 }
 0x122   :  { %v1369_v41 = vpop.eup %1368  ;;  %v503_v20 = vmul.f32 %v1367_v38, %v1788_v39 }
 0x123   :  { %v488_v44 = vadd.f32 1.0, %v1369_v41 }
 0x124   :  { %v1371_v45 = vpop.eup %1370  ;;  %v524_v47 = vpack.c.bf16 %v503_v20, %v502_v42  ;;  %v1104_v42 = vld [vmem:[%s1934_s10] ss:$0 sm:$0xff] }
 0x125   :  { %1376 = vrcp.f32 %v488_v44  ;;  %v489_v48 = vadd.f32 1.0, %v1371_v45 }
 0x126   :  { %1269 = vmatmul.mubr.bf16.vlgmr.msra.gmra.mrb[12].mxu0 %v524_v47 }
 0x127   :  { %v1373_v49 = vpop.eup %1372  ;;  %1378 = vrcp.f32 %v489_v48  ;;  %1272 = vmatprep.mubr.msk.bf16.mxu0 %vm1465_vm0, %v1464_v1 }
 0x128   :  { %v504_v51 = vmul.f32 %v1373_v49, %v462_v58  ;;  %v1089_v58 = vld [vmem:[%s1933_s9] ss:$0 sm:$0xff] }
 0x129   :  { %v1375_v50 = vpop.eup %1374 }
 0x12a   :  { %v505_v52 = vmul.f32 %v1375_v50, %v463_v0 }
 0x12c   :  { %v525_v54 = vpack.c.bf16 %v505_v52, %v504_v51 }
 0x12e   :  { %1273 = vmatmul.mubr.bf16.gmra.mrb[16].mxu0 %v525_v54 }
 0x12f   :  { %v1377_v55 = vpop.eup %1376  ;;  %1276 = vmatprep.mubr.msk.bf16.mxu0 %vm1465_vm0, %v1464_v1 }
 0x130   :  { %v506_v39 = vmul.f32 %v1377_v55, %v464_v23 }
 0x131   :  { %v1379_v30 = vpop.eup %1378 }
 0x132   :  { %v507_v56 = vmul.f32 %v1379_v30, %v465_v26 }
 0x134   :  { %v526_v59 = vpack.c.bf16 %v507_v56, %v506_v39 }
 0x136   :  { %1277 = vmatmul.mubr.bf16.gmra.mrb[20].mxu0 %v526_v59 }
 0x1f9   :  { %v616_v61 = vpop.f32.mrb[12].mxu0 }
 0x1fa   :  { %v617_v62 = vadd.f32 %v1089_v58, %v616_v61  ;;  %v1270_v63 = vpop.f32.mrb[13].mxu0 }
 0x1fb   :  { %v619_v0 = vpop.f32.mrb[14].mxu0 }
 0x1fc   :  { %v1098_v2 = vmul.f32 -1.442695, %v617_v62  ;;  %v620_v3 = vadd.f32 %v1089_v58, %v619_v0  ;;  %v1271_v4 = vpop.f32.mrb[15].mxu0 }
 0x1fd   :  { %v1349_v4 = vld [vmem:[%s1935_s12 + $0x8] sm:$0xff]  }
 0x1fe   :  { %1380 = vpow2.f32 %v1098_v2  ;;  %v1099_v5 = vmul.f32 -1.442695, %v620_v3  ;;  %v1466_v2 = vmov 0  }
 0x1ff   :  { %1311 = vset.pattern.permute.xlu0 %v1466_v2  ;;  %1312 = vset.pattern.permute.xlu1 %v1466_v2 }
 0x200   :  { %1382 = vpow2.f32 %v1099_v5  ;;  %v1350_v5 = vld [vmem:[%s1935_s12 + $0x10] sm:$0xff]  }
 0x201   :  { %v624_v6 = vpop.f32.mrb[16].mxu0 }
 0x202   :  { %v625_v7 = vadd.f32 %v1089_v58, %v624_v6  ;;  %v1274_v8 = vpop.f32.mrb[17].mxu0  ;;  %v1351_v6 = vld [vmem:[%s1935_s12 + $0x18] sm:$0xff]  }
 0x203   :  { %v627_v12 = vpop.f32.mrb[18].mxu0  ;;  %v1353_v8 = vld [vmem:[%s1935_s12 + $0x28] sm:$0xff]  }
 0x204   :  { %v1100_v13 = vmul.f32 -1.442695, %v625_v7  ;;  %v628_v15 = vadd.f32 %v1089_v58, %v627_v12  ;;  %v1275_v16 = vpop.f32.mrb[19].mxu0  ;;  %v1354_v12 = vld [vmem:[%s1935_s12 + $0x30] sm:$0xff]  }
 0x206   :  { %1384 = vpow2.f32 %v1100_v13  ;;  %v1101_v17 = vmul.f32 -1.442695, %v628_v15  ;;  %v1105_v13 = vld [vmem:[#allocation2] ss:$0 sm:$0xff] }
 0x208   :  { %v1381_v18 = vpop.eup %1380  ;;  %1386 = vpow2.f32 %v1101_v17 }
 0x209   :  { %v657_v19 = vadd.f32 1.0, %v1381_v18  ;;  %v632_v21 = vpop.f32.mrb[20].mxu0 }
 0x20a   :  { %v1383_v22 = vpop.eup %1382  ;;  %v633_v23 = vadd.f32 %v1089_v58, %v632_v21  ;;  %v1278_v24 = vpop.f32.mrb[21].mxu0 }
 0x20b   :  { %1388 = vrcp.f32 %v657_v19  ;;  %v658_v25 = vadd.f32 1.0, %v1383_v22  ;;  %v635_v10 = vpop.f32.mrb[22].mxu0 }
 0x20c   :  { %v1102_v26 = vmul.f32 -1.442695, %v633_v23  ;;  %v636_v27 = vadd.f32 %v1089_v58, %v635_v10  ;;  %v1279_v28 = vpop.f32.mrb[23].mxu0 }
 0x20d   :  { %1390 = vrcp.f32 %v658_v25 }
 0x20e   :  { %1392 = vpow2.f32 %v1102_v26  ;;  %v1103_v31 = vmul.f32 -1.442695, %v636_v27 }
 0x210   :  { %v1385_v32 = vpop.eup %1384  ;;  %1394 = vpow2.f32 %v1103_v31 }
 0x211   :  { %v659_v33 = vadd.f32 1.0, %v1385_v32 }
 0x212   :  { %v1387_v37 = vpop.eup %1386 }
 0x213   :  { %1396 = vrcp.f32 %v659_v33  ;;  %v660_v38 = vadd.f32 1.0, %v1387_v37 }
 0x215   :  { %v1389_v41 = vpop.eup %1388  ;;  %1398 = vrcp.f32 %v660_v38 }
 0x216   :  { %v1813_v20 = vmul.f32 %v1389_v41, %v617_v62 }
 0x217   :  { %v1391_v44 = vpop.eup %1390 }
 0x218   :  { %v1393_v45 = vpop.eup %1392  ;;  %v1815_v47 = vmul.f32 %v1391_v44, %v620_v3  ;;  %v688_v48 = vmul.f32 %v1104_v42, %v1813_v20  ;;  %v1348_v3 = vld [vmem:[%s1935_s12] sm:$0xff]  }
 0x219   :  { %v661_v49 = vadd.f32 1.0, %v1393_v45  ;;  %1281 = vmatpush3.bf16.msra.mxu1 %v1348_v3 }
 0x21a   :  { %v1395_v50 = vpop.eup %1394  ;;  %694 = vadd.xlane.f32.xlu0 %v688_v48  ;;  %v689_v51 = vmul.f32 %v1104_v42, %v1815_v47  ;;  %1282 = vmatprep.subr.bf16.mxu1 %v1464_v1 }
 0x21b   :  { %1400 = vrcp.f32 %v661_v49  ;;  %v662_v52 = vadd.f32 1.0, %v1395_v50 }
 0x21c   :  { %696 = vadd.xlane.f32.xlu1 %v689_v51 }
 0x21d   :  { %v1397_v54 = vpop.eup %1396  ;;  %1402 = vrcp.f32 %v662_v52  ;;  %1283 = vmatpush3.bf16.msra.mxu1 %v1349_v4 }
 0x21e   :  { %v1819_v55 = vmul.f32 %v1397_v54, %v625_v7  ;;  %1284 = vmatprep.subr.bf16.mxu1 %v1464_v1  ;;  %v1352_v7 = vld [vmem:[%s1935_s12 + $0x20] sm:$0xff]   ;;  %v1355_v54 = vld [vmem:[%s1935_s12 + $0x38] sm:$0xff]  }
 0x21f   :  { %v1399_v30 = vpop.eup %1398 }
 0x220   :  { %v1821_v39 = vmul.f32 %v1399_v30, %v628_v15  ;;  %v690_v56 = vmul.f32 %v1104_v42, %v1819_v55 }
 0x221   :  { %1285 = vmatpush3.bf16.msra.mxu1 %v1350_v5 }
 0x222   :  { %698 = vadd.xlane.f32.xlu0 %v690_v56  ;;  %v691_v59 = vmul.f32 %v1104_v42, %v1821_v39  ;;  %1286 = vmatprep.subr.bf16.mxu1 %v1464_v1 }
 0x224   :  { %700 = vadd.xlane.f32.xlu1 %v691_v59 }
 0x225   :  { %v1401_v60 = vpop.eup %1400  ;;  %1287 = vmatpush3.bf16.msra.mxu1 %v1351_v6 }
 0x226   :  { %v1825_v58 = vmul.f32 %v1401_v60, %v633_v23  ;;  %1288 = vmatprep.subr.bf16.mxu1 %v1464_v1 }
 0x227   :  { %v1403_v61 = vpop.eup %1402 }
 0x228   :  { %v1827_v62 = vmul.f32 %v1403_v61, %v636_v27  ;;  %v692_v63 = vmul.f32 %v1104_v42, %v1825_v58 }
 0x229   :  { %1289 = vmatpush3.bf16.msra.mxu1 %v1352_v7 }
 0x22a   :  { %702 = vadd.xlane.f32.xlu0 %v692_v63  ;;  %v693_v0 = vmul.f32 %v1104_v42, %v1827_v62  ;;  %1290 = vmatprep.subr.bf16.mxu1 %v1464_v1 }
 0x22c   :  { %704 = vadd.xlane.f32.xlu1 %v693_v0 }
 0x22d   :  { %1291 = vmatpush3.bf16.msra.mxu1 %v1353_v8 }
 0x22e   :  { %1292 = vmatprep.subr.bf16.mxu1 %v1464_v1 }
 0x231   :  { %1293 = vmatpush3.bf16.msra.mxu1 %v1354_v12 }
 0x232   :  { %1294 = vmatprep.subr.bf16.mxu1 %v1464_v1 }
 0x235   :  { %1295 = vmatpush3.bf16.msra.mxu1 %v1355_v54 }
 0x2a7   :  { %v695_v15 = vpop.xlane.xlu0 %694 }
 0x2a8   :  { %v713_v16 = vadd.f32 %v1105_v13, %v695_v15 }
 0x2a9   :  { %v697_v17 = vpop.xlane.xlu1 %696 }
 0x2aa   :  { %v1106_v18 = vmul.f32 -1.442695, %v713_v16  ;;  %v714_v19 = vadd.f32 %v1105_v13, %v697_v17 }
 0x2ac   :  { %1404 = vpow2.f32 %v1106_v18  ;;  %v1107_v21 = vmul.f32 -1.442695, %v714_v19 }
 0x2ae   :  { %1406 = vpow2.f32 %v1107_v21 }
 0x2af   :  { %v699_v22 = vpop.xlane.xlu0 %698 }
 0x2b0   :  { %v715_v23 = vadd.f32 %v1105_v13, %v699_v22 }
 0x2b1   :  { %v701_v24 = vpop.xlane.xlu1 %700 }
 0x2b2   :  { %v1108_v25 = vmul.f32 -1.442695, %v715_v23  ;;  %v716_v10 = vadd.f32 %v1105_v13, %v701_v24 }
 0x2b4   :  { %1408 = vpow2.f32 %v1108_v25  ;;  %v1109_v26 = vmul.f32 -1.442695, %v716_v10 }
 0x2b6   :  { %v1405_v27 = vpop.eup %1404  ;;  %1410 = vpow2.f32 %v1109_v26 }
 0x2b7   :  { %v737_v28 = vadd.f32 1.0, %v1405_v27  ;;  %v703_v31 = vpop.xlane.xlu0 %702 }
 0x2b8   :  { %v1407_v32 = vpop.eup %1406  ;;  %v717_v33 = vadd.f32 %v1105_v13, %v703_v31 }
 0x2b9   :  { %1412 = vrcp.f32 %v737_v28  ;;  %v738_v37 = vadd.f32 1.0, %v1407_v32  ;;  %v705_v38 = vpop.xlane.xlu1 %704 }
 0x2ba   :  { %v1110_v41 = vmul.f32 -1.442695, %v717_v33  ;;  %v718_v42 = vadd.f32 %v1105_v13, %v705_v38 }
 0x2bb   :  { %1414 = vrcp.f32 %v738_v37 }
 0x2bc   :  { %1416 = vpow2.f32 %v1110_v41  ;;  %v1111_v44 = vmul.f32 -1.442695, %v718_v42 }
 0x2be   :  { %v1409_v45 = vpop.eup %1408  ;;  %1418 = vpow2.f32 %v1111_v44 }
 0x2bf   :  { %v739_v48 = vadd.f32 1.0, %v1409_v45 }
 0x2c0   :  { %v1411_v49 = vpop.eup %1410 }
 0x2c1   :  { %1420 = vrcp.f32 %v739_v48  ;;  %v740_v50 = vadd.f32 1.0, %v1411_v49 }
 0x2c3   :  { %v1413_v51 = vpop.eup %1412  ;;  %1422 = vrcp.f32 %v740_v50 }
 0x2c4   :  { %757 = vperm.xlu0 %1311, %v1413_v51  }
 0x2c5   :  { %v1415_v52 = vpop.eup %1414 }
 0x2c6   :  { %v1417_v30 = vpop.eup %1416  ;;  %762 = vperm.xlu1 %1312, %v1415_v52  }
 0x2c7   :  { %v741_v56 = vadd.f32 1.0, %v1417_v30 }
 0x2c8   :  { %v1419_v59 = vpop.eup %1418 }
 0x2c9   :  { %1424 = vrcp.f32 %v741_v56  ;;  %v742_v60 = vadd.f32 1.0, %v1419_v59 }
 0x2cb   :  { %v1421_v61 = vpop.eup %1420  ;;  %1426 = vrcp.f32 %v742_v60 }
 0x2cc   :  { %767 = vperm.xlu1 %1312, %v1421_v61  }
 0x2cd   :  { %v1423_v63 = vpop.eup %1422 }
 0x2d0   :  { %772 = vperm.xlu1 %1312, %v1423_v63   ;;  %v1133_v63 = vld [vmem:[%s1938_s14] ss:$0 sm:$0xff] }
 0x2d3   :  { %v1425_v0 = vpop.eup %1424 }
 0x2d4   :  { %777 = vperm.xlu1 %1312, %v1425_v0  }
 0x2d5   :  { %v1427_v2 = vpop.eup %1426 }
 0x2d8   :  { %782 = vperm.xlu1 %1312, %v1427_v2  }
 0x343   :  { %v758_v3 = vpop.permute.xlu0 %757 }
 0x344   :  { %v785_v5 = vmul.f32 %v758_v3, %v1813_v20 }
 0x345   :  { %v763_v4 = vpop.permute.xlu1 %762 }
 0x346   :  { %v786_v6 = vmul.f32 %v763_v4, %v1815_v47 }
 0x348   :  { %v791_v7 = vpack.c.bf16 %v786_v6, %v785_v5 }
 0x34a   :  { %1144 = vst [vmem:[%s1936_s15] sm:$0xff] %v791_v7   ;;  %1297 = vmatmul.mubr.bf16.vlgmr.msra.gmra.mrb[12].mxu1 %v791_v7 }
 0x34b   :  { %v768_v8 = vpop.permute.xlu1 %767  ;;  %1300 = vmatprep.mubr.msk.bf16.mxu1 %vm1465_vm0, %v1464_v1 }
 0x34c   :  { %v787_v13 = vmul.f32 %v768_v8, %v1819_v55  ;;  %v1118_v55 = vld [vmem:[%s1937_s13] ss:$0 sm:$0xff] }
 0x34f   :  { %v773_v12 = vpop.permute.xlu1 %772 }
 0x350   :  { %v788_v15 = vmul.f32 %v773_v12, %v1821_v39 }
 0x352   :  { %v792_v16 = vpack.c.bf16 %v788_v15, %v787_v13 }
 0x353   :  { %v778_v17 = vpop.permute.xlu1 %777 }
 0x354   :  { %1155 = vst [vmem:[%s1936_s15 + $0x8] sm:$0xff] %v792_v16   ;;  %1301 = vmatmul.mubr.bf16.gmra.mrb[16].mxu1 %v792_v16  ;;  %v789_v47 = vmul.f32 %v778_v17, %v1825_v58 }
 0x355   :  { %1304 = vmatprep.mubr.msk.bf16.mxu1 %vm1465_vm0, %v1464_v1 }
 0x357   :  { %v783_v20 = vpop.permute.xlu1 %782 }
 0x358   :  { %v790_v18 = vmul.f32 %v783_v20, %v1827_v62 }
 0x35a   :  { %v793_v19 = vpack.c.bf16 %v790_v18, %v789_v47 }
 0x35c   :  { %1156 = vst [vmem:[%s1936_s15 + $0x10] sm:$0xff] %v793_v19   ;;  %1305 = vmatmul.mubr.bf16.gmra.mrb[20].mxu1 %v793_v19 }
 0x41d   :  { %v926_v39 = vpop.f32.mrb[12].mxu1 }
 0x41e   :  { %v927_v21 = vadd.f32 %v1118_v55, %v926_v39  ;;  %v1298_v22 = vpop.f32.mrb[13].mxu1 }
 0x41f   :  { %v929_v23 = vpop.f32.mrb[14].mxu1 }
 0x420   :  { %v1127_v1 = vmul.f32 -1.442695, %v927_v21  ;;  %v930_v24 = vadd.f32 %v1118_v55, %v929_v23  ;;  %v1299_v25 = vpop.f32.mrb[15].mxu1  ;;  %v1016_v23 = vadd.f32 1e-08, %v1768_v9 }
 0x421   :  { %v1020_v9 = vadd.f32 1e-08, %v1792_v53 }
 0x422   :  { %1428 = vpow2.f32 %v1127_v1  ;;  %v1128_v58 = vmul.f32 -1.442695, %v930_v24  ;;  %v1017_v1 = vadd.f32 1e-08, %v1773_v11 }
 0x424   :  { %1430 = vpow2.f32 %v1128_v58  ;;  %v1019_v58 = vadd.f32 1e-08, %v1782_v29 }
 0x427   :  { %v934_v62 = vpop.f32.mrb[16].mxu1 }
 0x428   :  { %v935_v10 = vadd.f32 %v1118_v55, %v934_v62  ;;  %v1302_v26 = vpop.f32.mrb[17].mxu1 }
 0x429   :  { %v937_v27 = vpop.f32.mrb[18].mxu1 }
 0x42a   :  { %v1129_v28 = vmul.f32 -1.442695, %v935_v10  ;;  %v938_v31 = vadd.f32 %v1118_v55, %v937_v27  ;;  %v1303_v32 = vpop.f32.mrb[19].mxu1 }
 0x42c   :  { %v1429_v33 = vpop.eup %1428  ;;  %1432 = vpow2.f32 %v1129_v28  ;;  %v1130_v37 = vmul.f32 -1.442695, %v938_v31 }
 0x42d   :  { %v967_v38 = vadd.f32 1.0, %v1429_v33 }
 0x42e   :  { %v1431_v41 = vpop.eup %1430  ;;  %1434 = vpow2.f32 %v1130_v37 }
 0x42f   :  { %1436 = vrcp.f32 %v967_v38  ;;  %v968_v42 = vadd.f32 1.0, %v1431_v41  ;;  %v942_v44 = vpop.f32.mrb[20].mxu1 }
 0x430   :  { %v943_v45 = vadd.f32 %v1118_v55, %v942_v44  ;;  %v1306_v48 = vpop.f32.mrb[21].mxu1 }
 0x431   :  { %1438 = vrcp.f32 %v968_v42  ;;  %v945_v49 = vpop.f32.mrb[22].mxu1 }
 0x432   :  { %v1131_v50 = vmul.f32 -1.442695, %v943_v45  ;;  %v946_v51 = vadd.f32 %v1118_v55, %v945_v49  ;;  %v1307_v52 = vpop.f32.mrb[23].mxu1 }
 0x434   :  { %1440 = vpow2.f32 %v1131_v50  ;;  %v1132_v54 = vmul.f32 -1.442695, %v946_v51 }
 0x436   :  { %v1433_v30 = vpop.eup %1432  ;;  %1442 = vpow2.f32 %v1132_v54 }
 0x437   :  { %v969_v56 = vadd.f32 1.0, %v1433_v30 }
 0x438   :  { %v1435_v59 = vpop.eup %1434 }
 0x439   :  { %v1437_v60 = vpop.eup %1436  ;;  %1444 = vrcp.f32 %v969_v56  ;;  %v970_v61 = vadd.f32 1.0, %v1435_v59 }
 0x43a   :  { %v985_v0 = vmul.f32 %v1437_v60, %v927_v21 }
 0x43b   :  { %v1439_v2 = vpop.eup %1438  ;;  %1446 = vrcp.f32 %v970_v61 }
 0x43c   :  { %v986_v3 = vmul.f32 %v1439_v2, %v930_v24  ;;  %v998_v4 = vmul.f32 %v1133_v63, %v985_v0  ;;  %v1018_v24 = vadd.f32 1e-08, %v1775_v14  ;;  %v1021_v14 = vadd.f32 1e-08, %v1794_v57 }
 0x43e   :  { %v1441_v5 = vpop.eup %1440  ;;  %1004 = vadd.xlane.f32.xlu1 %v998_v4  ;;  %v999_v6 = vmul.f32 %v1133_v63, %v986_v3 }
 0x43f   :  { %v971_v7 = vadd.f32 1.0, %v1441_v5 }
 0x440   :  { %v1443_v8 = vpop.eup %1442  ;;  %1006 = vadd.xlane.f32.xlu0 %v999_v6 }
 0x441   :  { %1448 = vrcp.f32 %v971_v7  ;;  %v972_v12 = vadd.f32 1.0, %v1443_v8 }
 0x443   :  { %v1445_v13 = vpop.eup %1444  ;;  %1450 = vrcp.f32 %v972_v12 }
 0x444   :  { %v987_v15 = vmul.f32 %v1445_v13, %v935_v10  ;;  %1452 = vrsqrt.f32 %v1016_v23 }
 0x445   :  { %v1447_v16 = vpop.eup %1446  ;;  %1454 = vrsqrt.f32 %v1017_v1 }
 0x446   :  { %v988_v17 = vmul.f32 %v1447_v16, %v938_v31  ;;  %v1000_v20 = vmul.f32 %v1133_v63, %v987_v15  ;;  %1456 = vrsqrt.f32 %v1018_v24 }
 0x447   :  { %1458 = vrsqrt.f32 %v1019_v58 }
 0x448   :  { %1008 = vadd.xlane.f32.xlu1 %v1000_v20  ;;  %v1001_v47 = vmul.f32 %v1133_v63, %v988_v17  ;;  %1460 = vrsqrt.f32 %v1020_v9 }
 0x449   :  { %1462 = vrsqrt.f32 %v1021_v14 }
 0x44b   :  { %v1449_v18 = vpop.eup %1448 }
 0x44c   :  { %v989_v19 = vmul.f32 %v1449_v18, %v943_v45  ;;  %1010 = vadd.xlane.f32.xlu1 %v1001_v47 }
 0x44d   :  { %v1451_v55 = vpop.eup %1450 }
 0x44e   :  { %v990_v39 = vmul.f32 %v1451_v55, %v946_v51  ;;  %v1002_v21 = vmul.f32 %v1133_v63, %v989_v19  ;;  %v1453_v25 = vpop.eup %1452 }
 0x44f   :  { %v1455_v26 = vpop.eup %1454 }
 0x450   :  { %1012 = vadd.xlane.f32.xlu0 %v1002_v21  ;;  %v1003_v22 = vmul.f32 %v1133_v63, %v990_v39 }
 0x452   :  { %1014 = vadd.xlane.f32.xlu1 %v1003_v22 }
 0x4cb   :  { %v1005_v62 = vpop.xlane.xlu1 %1004 }
 0x4cc   :  { %v1028_v10 = vmul.f32 %v1453_v25, %v1005_v62 }
 0x4cd   :  { %v1007_v27 = vpop.xlane.xlu0 %1006 }
 0x4ce   :  { %v1034_v28 = vmul.f32 %v1028_v10, %v1655_v34  ;;  %v1029_v31 = vmul.f32 %v1455_v26, %v1007_v27  ;;  %v1457_v34 = vpop.eup %1456 }
 0x4cf   :  { %v1459_v33 = vpop.eup %1458 }
 0x4d0   :  { %1040 = vst.msk [vmem:[%s1939_s16] sm:$0xff] %vm67_vm1, %v1034_v28  ;;  %v1035_v11 = vmul.f32 %v1029_v31, %v1660_v35  ;;  %v1461_v38 = vpop.eup %1460 }
 0x4d1   :  { %v1463_v44 = vpop.eup %1462 }
 0x4d2   :  { %1041 = vst.msk [vmem:[%s1939_s16 + $0x8] sm:$0xff] %vm67_vm1, %v1035_v11 }
 0x4d5   :  { %v1009_v29 = vpop.xlane.xlu1 %1008 }
 0x4d6   :  { %v1030_v32 = vmul.f32 %v1457_v34, %v1009_v29 }
 0x4d8   :  { %v1036_v53 = vmul.f32 %v1030_v32, %v1665_v36 }
 0x4d9   :  { %v1011_v37 = vpop.xlane.xlu1 %1010 }
 0x4da   :  { %1042 = vst.msk [vmem:[%s1939_s16 + $0x10] sm:$0xff] %vm67_vm1, %v1036_v53  ;;  %v1031_v35 = vmul.f32 %v1459_v33, %v1011_v37 }
 0x4dc   :  { %v1037_v57 = vmul.f32 %v1031_v35, %v1676_v40 }
 0x4dd   :  { %v1013_v41 = vpop.xlane.xlu0 %1012 }
 0x4de   :  { %1043 = vst.msk [vmem:[%s1939_s16 + $0x18] sm:$0xff] %vm67_vm1, %v1037_v57  ;;  %v1032_v42 = vmul.f32 %v1461_v38, %v1013_v41 }
 0x4df   :  { %v1015_v36 = vpop.xlane.xlu1 %1014 }
 0x4e0   :  { %v1038_v45 = vmul.f32 %v1032_v42, %v1687_v43  ;;  %v1033_v48 = vmul.f32 %v1463_v44, %v1015_v36 }
 0x4e2   :  { %1044 = vst.msk [vmem:[%s1939_s16 + $0x20] sm:$0xff] %vm67_vm1, %v1038_v45  ;;  %v1039_v40 = vmul.f32 %v1033_v48, %v1694_v46 }
 0x4e4   :  { %1045 = vst.msk [vmem:[%s1939_s16 + $0x28] sm:$0xff] %vm67_vm1, %v1039_v40 }

// kernel: run.59
= control target key start
LH: loop header
LB: loop body
LE: loop exit
PB: predicated region body
PF: predicated region fallthrough
CT: control target
= control target key end

     0   :  { %v456_v23 = vmov 0.0   ;;  %vm457_vm0 = vmmov 0   ;;  %s597_s2 = inlined_call_operand.vmem [shape: bf16[256,128], index: 2, kind: input, shape index: {}]   ;;  %s598_s1 = inlined_call_operand.vmem [shape: f32[16,128], index: 1, kind: input, shape index: {}]   ;;  %s599_s0 = inlined_call_operand.vmem [shape: f32[16,128], index: 0, kind: input, shape index: {}]   ;;  %s600_s4 = inlined_call_operand.vmem [shape: bf16[128,128], index: 4, kind: input, shape index: {}]   ;;  %s601_s3 = inlined_call_operand.vmem [shape: f32[1,128], index: 3, kind: input, shape index: {}]   ;;  %s602_s5 = inlined_call_operand.vmem [shape: f32[1,128], index: 5, kind: input, shape index: {}]   ;;  %s603_s6 = inlined_call_operand.vmem [shape: f32[16,128], index: 6, kind: output, shape index: {}]  }
   0x1   :  { %v424_v0 = vld [vmem:[%s597_s2 + $0x40] sm:$0xff]   ;;  %v426_v2 = vld [vmem:[%s597_s2 + $0x48] sm:$0xff]   ;;  %v428_v4 = vld [vmem:[%s597_s2 + $0x50] sm:$0xff]   ;;  %402 = vmatprep.subr.bf16.mxu1 %v456_v23  ;;  %418 = vmatprep.mubr.msk.bf16.mxu1 %vm457_vm0, %v456_v23 }
   0x2   :  { %v425_v1 = vld [vmem:[%s597_s2] sm:$0xff]   ;;  %371 = vmatprep.subr.bf16.mxu0 %v424_v0  ;;  %v427_v3 = vld [vmem:[%s597_s2 + $0x8] sm:$0xff]   ;;  %v429_v5 = vld [vmem:[%s597_s2 + $0x10] sm:$0xff]  }
   0x3   :  { %372 = vmatpush3.bf16.msra.mxu0 %v425_v1  ;;  %v430_v6 = vld [vmem:[%s597_s2 + $0x58] sm:$0xff]   ;;  %v432_v8 = vld [vmem:[%s597_s2 + $0x60] sm:$0xff]   ;;  %v434_v10 = vld [vmem:[%s597_s2 + $0x68] sm:$0xff]  }
   0x4   :  { %373 = vmatprep.subr.bf16.mxu0 %v426_v2  ;;  %v431_v7 = vld [vmem:[%s597_s2 + $0x18] sm:$0xff]   ;;  %v433_v9 = vld [vmem:[%s597_s2 + $0x20] sm:$0xff]   ;;  %v27_v12 = vld [vmem:[%s598_s1 + $0x8] sm:$0xff] }
   0x5   :  { %v26_v11 = vld [vmem:[%s598_s1] sm:$0xff]  ;;  %v435_v14 = vld [vmem:[%s597_s2 + $0x28] sm:$0xff]   ;;  %v436_v15 = vld [vmem:[%s597_s2 + $0x70] sm:$0xff]  }
   0x6   :  { %v61_v13 = vpack.c.bf16 %v27_v12, %v26_v11  ;;  %v437_v16 = vld [vmem:[%s597_s2 + $0x30] sm:$0xff]   ;;  %v438_v17 = vld [vmem:[%s597_s2 + $0x78] sm:$0xff]   ;;  %v550_v19 = vld [vmem:[%s599_s0] sm:$0xff] }
   0x7   :  { %374 = vmatpush3.bf16.msra.mxu0 %v427_v3  ;;  %v439_v18 = vld [vmem:[%s597_s2 + $0x38] sm:$0xff]   ;;  %v555_v20 = vld [vmem:[%s599_s0 + $0x8] sm:$0xff]  ;;  %v440_v22 = vld [vmem:[%s600_s4] sm:$0xff]  }
   0x8   :  { %375 = vmatprep.subr.bf16.mxu0 %v428_v4  ;;  %197 = vmatprep.mubr.bf16.mxu0 %v61_v13  ;;  %v60_v21 = vpack.c.bf16 %v555_v20, %v550_v19  ;;  %v441_v24 = vld [vmem:[%s600_s4 + $0x8] sm:$0xff]   ;;  %v442_v25 = vld [vmem:[%s600_s4 + $0x10] sm:$0xff]   ;;  %v443_v26 = vld [vmem:[%s600_s4 + $0x18] sm:$0xff]  }
   0x9   :  { %403 = vmatpush3.bf16.msra.mxu1 %v440_v22  ;;  %v444_v27 = vld [vmem:[%s600_s4 + $0x20] sm:$0xff]   ;;  %v445_v28 = vld [vmem:[%s600_s4 + $0x28] sm:$0xff]   ;;  %v446_v29 = vld [vmem:[%s600_s4 + $0x30] sm:$0xff]  }
   0xa   :  { %404 = vmatprep.subr.bf16.mxu1 %v456_v23  ;;  %v447_v30 = vld [vmem:[%s600_s4 + $0x38] sm:$0xff]   ;;  %v343_v32 = vld [vmem:[%s601_s3] ss:$0 sm:$0xff] }
   0xb   :  { %376 = vmatpush3.bf16.msra.mxu0 %v429_v5  ;;  %v370_v52 = vld [vmem:[%s602_s5] ss:$0 sm:$0xff] }
   0xc   :  { %377 = vmatprep.subr.bf16.mxu0 %v430_v6 }
   0xd   :  { %405 = vmatpush3.bf16.msra.mxu1 %v441_v24 }
   0xe   :  { %406 = vmatprep.subr.bf16.mxu1 %v456_v23 }
   0xf   :  { %378 = vmatpush3.bf16.msra.mxu0 %v431_v7 }
  0x10   :  { %379 = vmatprep.subr.bf16.mxu0 %v432_v8 }
  0x11   :  { %407 = vmatpush3.bf16.msra.mxu1 %v442_v25 }
  0x12   :  { %408 = vmatprep.subr.bf16.mxu1 %v456_v23 }
  0x13   :  { %380 = vmatpush3.bf16.msra.mxu0 %v433_v9 }
  0x14   :  { %381 = vmatprep.subr.bf16.mxu0 %v434_v10 }
  0x15   :  { %409 = vmatpush3.bf16.msra.mxu1 %v443_v26 }
  0x16   :  { %410 = vmatprep.subr.bf16.mxu1 %v456_v23 }
  0x17   :  { %382 = vmatpush3.bf16.msra.mxu0 %v435_v14 }
  0x18   :  { %383 = vmatprep.subr.bf16.mxu0 %v436_v15 }
  0x19   :  { %411 = vmatpush3.bf16.msra.mxu1 %v444_v27 }
  0x1a   :  { %412 = vmatprep.subr.bf16.mxu1 %v456_v23 }
  0x1b   :  { %384 = vmatpush3.bf16.msra.mxu0 %v437_v16 }
  0x1c   :  { %385 = vmatprep.subr.bf16.mxu0 %v438_v17 }
  0x1d   :  { %413 = vmatpush3.bf16.msra.mxu1 %v445_v28 }
  0x1e   :  { %414 = vmatprep.subr.bf16.mxu1 %v456_v23 }
  0x1f   :  { %386 = vmatpush3.bf16.msra.mxu0 %v439_v18 }
  0x21   :  { %415 = vmatpush3.bf16.msra.mxu1 %v446_v29 }
  0x22   :  { %198 = vmatmul.mubr.bf16.vlgmr.msra.gmra.mrb[0].mxu0 %v60_v21  ;;  %416 = vmatprep.subr.bf16.mxu1 %v456_v23 }
  0x25   :  { %417 = vmatpush3.bf16.msra.mxu1 %v447_v30 }
  0xf5   :  { %v387_v31 = vpop.f32.mrb[0].mxu0 }
  0xf6   :  { %v388_v33 = vpop.f32.mrb[1].mxu0 }
  0xf7   :  { %v389_v34 = vadd.f32 %v388_v33, %v387_v31  ;;  %v390_v35 = vpop.f32.mrb[2].mxu0 }
  0xf8   :  { %v391_v36 = vpop.f32.mrb[3].mxu0 }
  0xf9   :  { %v200_v37 = vadd.f32 %v389_v34, %v343_v32  ;;  %v392_v38 = vadd.f32 %v391_v36, %v390_v35 }
  0xfb   :  { %v360_v39 = vmul.f32 -1.442695, %v200_v37  ;;  %v203_v40 = vadd.f32 %v392_v38, %v343_v32 }
  0xfd   :  { %448 = vpow2.f32 %v360_v39  ;;  %v361_v41 = vmul.f32 -1.442695, %v203_v40 }
  0xff   :  { %450 = vpow2.f32 %v361_v41 }
 0x107   :  { %v449_v42 = vpop.eup %448 }
 0x108   :  { %v212_v43 = vadd.f32 1.0, %v449_v42 }
 0x109   :  { %v451_v44 = vpop.eup %450 }
 0x10a   :  { %452 = vrcp.f32 %v212_v43  ;;  %v213_v45 = vadd.f32 1.0, %v451_v44 }
 0x10c   :  { %454 = vrcp.f32 %v213_v45 }
 0x114   :  { %v453_v46 = vpop.eup %452 }
 0x115   :  { %v218_v48 = vmul.f32 %v453_v46, %v200_v37 }
 0x116   :  { %v455_v47 = vpop.eup %454 }
 0x117   :  { %v219_v49 = vmul.f32 %v455_v47, %v203_v40 }
 0x119   :  { %v236_v50 = vpack.c.bf16 %v219_v49, %v218_v48 }
 0x11b   :  { %419 = vmatmul.mubr.bf16.vlgmr.msra.gmra.mrb[0].mxu1 %v236_v50 }
 0x1ee   :  { %v319_v51 = vpop.f32.mrb[0].mxu1 }
 0x1ef   :  { %v326_v53 = vadd.f32 %v319_v51, %v550_v19  ;;  %v420_v54 = vpop.f32.mrb[1].mxu1 }
 0x1f0   :  { %v322_v55 = vpop.f32.mrb[2].mxu1 }
 0x1f1   :  { %v335_v56 = vadd.f32 %v370_v52, %v326_v53  ;;  %v327_v57 = vadd.f32 %v322_v55, %v555_v20  ;;  %v421_v58 = vpop.f32.mrb[3].mxu1 }
 0x1f3   :  { %337 = vst [vmem:[%s603_s6] sm:$0xff] %v335_v56  ;;  %v336_v59 = vadd.f32 %v370_v52, %v327_v57 }
 0x1f5   :  { %338 = vst [vmem:[%s603_s6 + $0x8] sm:$0xff] %v336_v59 }

// kernel: sub.43
= control target key start
LH: loop header
LB: loop body
LE: loop exit
PB: predicated region body
PF: predicated region fallthrough
CT: control target
= control target key end

     0   :  { %s188_s0 = inlined_call_operand.vmem [shape: f32[64,3], index: 0, kind: input, shape index: {}]   ;;  %s189_s1 = inlined_call_operand.vmem [shape: f32[64,3], index: 1, kind: input, shape index: {}]   ;;  %s190_s2 = inlined_call_operand.vmem [shape: f32[64,3], index: 2, kind: output, shape index: {}]  }
   0x1   :  { %v3_v0 = vld [vmem:[%s188_s0] sm:$0xff]  ;;  %v80_v2 = vld [vmem:[%s188_s0 + $0x8] sm:$0xff]  ;;  %v83_v5 = vld [vmem:[%s188_s0 + $0x10] sm:$0xff] }
   0x2   :  { %v4_v1 = vld [vmem:[%s189_s1] sm:$0xff]  ;;  %v81_v4 = vld [vmem:[%s189_s1 + $0x8] sm:$0xff]  ;;  %v84_v6 = vld [vmem:[%s189_s1 + $0x10] sm:$0xff] }
   0x3   :  { %v7_v3 = vsub.f32 %v3_v0, %v4_v1  ;;  %v16_v7 = vsub.f32 %v80_v2, %v81_v4  ;;  %v26_v8 = vsub.f32 %v83_v5, %v84_v6  ;;  %v86_v9 = vld [vmem:[%s188_s0 + $0x18] sm:$0xff]  ;;  %v89_v11 = vld [vmem:[%s188_s0 + $0x20] sm:$0xff]  ;;  %v92_v14 = vld [vmem:[%s188_s0 + $0x28] sm:$0xff] }
   0x4   :  { %v87_v10 = vld [vmem:[%s189_s1 + $0x18] sm:$0xff]  ;;  %v90_v13 = vld [vmem:[%s189_s1 + $0x20] sm:$0xff]  ;;  %v93_v15 = vld [vmem:[%s189_s1 + $0x28] sm:$0xff] }
   0x5   :  { %9 = vst [vmem:[%s190_s2] sm:$0xff] %v7_v3  ;;  %v36_v12 = vsub.f32 %v86_v9, %v87_v10  ;;  %82 = vst [vmem:[%s190_s2 + $0x8] sm:$0xff] %v16_v7  ;;  %v46_v16 = vsub.f32 %v89_v11, %v90_v13  ;;  %v56_v17 = vsub.f32 %v92_v14, %v93_v15  ;;  %v95_v18 = vld [vmem:[%s188_s0 + $0x30] sm:$0xff]  ;;  %v98_v20 = vld [vmem:[%s188_s0 + $0x38] sm:$0xff] }
   0x6   :  { %85 = vst [vmem:[%s190_s2 + $0x10] sm:$0xff] %v26_v8  ;;  %v96_v19 = vld [vmem:[%s189_s1 + $0x30] sm:$0xff]  ;;  %v99_v22 = vld [vmem:[%s189_s1 + $0x38] sm:$0xff] }
   0x7   :  { %88 = vst [vmem:[%s190_s2 + $0x18] sm:$0xff] %v36_v12  ;;  %v66_v21 = vsub.f32 %v95_v18, %v96_v19  ;;  %91 = vst [vmem:[%s190_s2 + $0x20] sm:$0xff] %v46_v16  ;;  %v76_v23 = vsub.f32 %v98_v20, %v99_v22 }
   0x8   :  { %94 = vst [vmem:[%s190_s2 + $0x28] sm:$0xff] %v56_v17 }
   0x9   :  { %97 = vst [vmem:[%s190_s2 + $0x30] sm:$0xff] %v66_v21  ;;  %100 = vst [vmem:[%s190_s2 + $0x38] sm:$0xff] %v76_v23 }

// kernel: sub.55
= control target key start
LH: loop header
LB: loop body
LE: loop exit
PB: predicated region body
PF: predicated region fallthrough
CT: control target
= control target key end

     0   :  { %s34_s0 = inlined_call_operand.vmem [shape: f32[8,3], index: 0, kind: input, shape index: {}]   ;;  %s35_s1 = inlined_call_operand.vmem [shape: f32[8,3], index: 1, kind: input, shape index: {}]   ;;  %s36_s2 = inlined_call_operand.vmem [shape: f32[8,3], index: 2, kind: output, shape index: {}]  }
   0x1   :  { %v3_v0 = vld [vmem:[%s34_s0] sm:$0xff] }
   0x2   :  { %v4_v1 = vld [vmem:[%s35_s1] sm:$0xff] }
   0x3   :  { %v7_v2 = vsub.f32 %v3_v0, %v4_v1 }
   0x5   :  { %9 = vst [vmem:[%s36_s2] sm:$0xff] %v7_v2 }

// kernel: run.84
= control target key start
LH: loop header
LB: loop body
LE: loop exit
PB: predicated region body
PF: predicated region fallthrough
CT: control target
= control target key end

     0   :  { %v1545_v1 = vmov 0   ;;  %vm71_vm0 = vcmask 23552   ;;  %s2037_s4 = inlined_call_operand.vmem [shape: bf16[256,128], index: 4, kind: input, shape index: {}]   ;;  %s2038_s1 = inlined_call_operand.vmem [shape: f32[64,128], index: 1, kind: input, shape index: {}]   ;;  %s2039_s2 = inlined_call_operand.vmem [shape: f32[64,3], index: 2, kind: input, shape index: {}]   ;;  %s2040_s0 = inlined_call_operand.vmem [shape: f32[64,128], index: 0, kind: input, shape index: {}]   ;;  %s2041_s3 = inlined_call_operand.vmem [shape: f32[64,1], index: 3, kind: input, shape index: {}]   ;;  %s2042_s8 = inlined_call_operand.vmem [shape: bf16[128,128], index: 8, kind: input, shape index: {}]   ;;  %s2043_s5 = inlined_call_operand.vmem [shape: f32[1,128], index: 5, kind: input, shape index: {}]   ;;  %s2044_s6 = inlined_call_operand.vmem [shape: f32[1,128], index: 6, kind: input, shape index: {}]   ;;  %s2045_s7 = inlined_call_operand.vmem [shape: f32[1,128], index: 7, kind: input, shape index: {}]   ;;  %s2046_s11 = inlined_call_operand.<no memory space> [shape: f32[1,1], index: 11, kind: input, shape index: {}]   ;;  %s2047_s9 = inlined_call_operand.vmem [shape: f32[1,128], index: 9, kind: input, shape index: {}]   ;;  %s2048_s10 = inlined_call_operand.vmem [shape: f32[1,128], index: 10, kind: input, shape index: {}]   ;;  %s2049_s12 = inlined_call_operand.vmem [shape: bf16[128,128], index: 12, kind: input, shape index: {}]   ;;  %s2050_s15 = inlined_call_operand.vmem [shape: bf16[64,128], index: 15, kind: output, shape index: {0}]   ;;  %s2051_s13 = inlined_call_operand.vmem [shape: f32[1,128], index: 13, kind: input, shape index: {}]   ;;  %s2052_s14 = inlined_call_operand.vmem [shape: f32[1,128], index: 14, kind: input, shape index: {}]   ;;  %s2053_s16 = inlined_call_operand.vmem [shape: f32[64,3], index: 16, kind: output, shape index: {1}]  }
   0x1   :  { %2055 = sst [smem:[#allocation3_spill]] %s2037_s4  ;;  %1360 = vset.pattern.permute.xlu1 %v1545_v1  ;;  %1359 = vset.pattern.permute.xlu0 %v1545_v1  ;;  %v104_v12 = vld [vmem:[%s2038_s1] sm:$0xff]  ;;  %v105_v13 = vld [vmem:[%s2038_s1 + $0x8] sm:$0xff]  ;;  %v57_v17 = vld [vmem:[%s2039_s2 + $0x10] sm:$0xff] }
   0x2   :  { %s2056_s23 = sld [smem:[#allocation3_spill]]  ;;  %v145_v14 = vpack.c.bf16 %v105_v13, %v104_v12  ;;  %v58_v18 = vld [vmem:[%s2039_s2 + $0x18] sm:$0xff]  ;;  %v65_v19 = vmul.f32 %v57_v17, %v57_v17  ;;  %v55_v21 = vld [vmem:[%s2039_s2] sm:$0xff]  ;;  %v60_v23 = vld [vmem:[%s2039_s2 + $0x28] sm:$0xff] }
   0x3   :  { %v66_v20 = vmul.f32 %v58_v18, %v58_v18  ;;  %v63_v24 = vmul.f32 %v55_v21, %v55_v21  ;;  %v56_v25 = vld [vmem:[%s2039_s2 + $0x8] sm:$0xff]  ;;  %v59_v29 = vld [vmem:[%s2039_s2 + $0x20] sm:$0xff]  ;;  %v68_v33 = vmul.f32 %v60_v23, %v60_v23  ;;  %v62_v36 = vld [vmem:[%s2039_s2 + $0x38] sm:$0xff] }
   0x4   :  { %295 = vmatprep.mubr.bf16.mxu0 %v145_v14  ;;  %v78_v27 = vsel %vm71_vm0, %v65_v19, 0.0  ;;  %v64_v28 = vmul.f32 %v56_v25, %v56_v25  ;;  %v96_v34 = vld [vmem:[%s2040_s0] sm:$0xff]  ;;  %v97_v35 = vld [vmem:[%s2040_s0 + $0x8] sm:$0xff]  ;;  %v67_v38 = vmul.f32 %v59_v29, %v59_v29  ;;  %v106_v39 = vld [vmem:[%s2038_s1 + $0x10] sm:$0xff]  ;;  %v70_v44 = vmul.f32 %v62_v36, %v62_v36 }
   0x5   :  { %79 = vadd.xlane.f32.xlu1 %v78_v27  ;;  %v72_v30 = vsel %vm71_vm0, %v63_v24, 0.0  ;;  %v81_v32 = vsel %vm71_vm0, %v66_v20, 0.0  ;;  %v107_v40 = vld [vmem:[%s2038_s1 + $0x18] sm:$0xff]  ;;  %v61_v41 = vld [vmem:[%s2039_s2 + $0x30] sm:$0xff]  ;;  %v144_v42 = vpack.c.bf16 %v97_v35, %v96_v34  ;;  %v87_v43 = vsel %vm71_vm0, %v68_v33, 0.0  ;;  %v108_v52 = vld [vmem:[%s2038_s1 + $0x20] sm:$0xff] }
   0x6   :  { %73 = vadd.xlane.f32.xlu0 %v72_v30  ;;  %v75_v37 = vsel %vm71_vm0, %v64_v28, 0.0  ;;  %v147_v45 = vpack.c.bf16 %v107_v40, %v106_v39  ;;  %v84_v46 = vsel %vm71_vm0, %v67_v38, 0.0  ;;  %v69_v47 = vmul.f32 %v61_v41, %v61_v41  ;;  %v98_v49 = vld [vmem:[%s2040_s0 + $0x10] sm:$0xff]  ;;  %v99_v50 = vld [vmem:[%s2040_s0 + $0x18] sm:$0xff]  ;;  %v109_v53 = vld [vmem:[%s2038_s1 + $0x28] sm:$0xff] }
   0x7   :  { %v93_v48 = vsel %vm71_vm0, %v70_v44, 0.0  ;;  %v146_v54 = vpack.c.bf16 %v99_v50, %v98_v49  ;;  %v149_v55 = vpack.c.bf16 %v109_v53, %v108_v52  ;;  %v100_v56 = vld [vmem:[%s2040_s0 + $0x20] sm:$0xff]  ;;  %v101_v57 = vld [vmem:[%s2040_s0 + $0x28] sm:$0xff]  ;;  %v110_v58 = vld [vmem:[%s2038_s1 + $0x30] sm:$0xff] }
   0x8   :  { %v1361_v0 = vld [vmem:[%s2056_s23 + $0x40] sm:$0xff]   ;;  %v1363_v3 = vld [vmem:[%s2056_s23 + $0x48] sm:$0xff]   ;;  %v1365_v5 = vld [vmem:[%s2056_s23 + $0x50] sm:$0xff]   ;;  %v90_v51 = vsel %vm71_vm0, %v69_v47, 0.0  ;;  %v148_v60 = vpack.c.bf16 %v101_v57, %v100_v56 }
   0x9   :  { %v1362_v2 = vld [vmem:[%s2056_s23] sm:$0xff]   ;;  %1230 = vmatprep.subr.bf16.mxu0 %v1361_v0  ;;  %v1364_v4 = vld [vmem:[%s2056_s23 + $0x8] sm:$0xff]   ;;  %v1366_v6 = vld [vmem:[%s2056_s23 + $0x10] sm:$0xff]   ;;  %82 = vadd.xlane.f32.xlu1 %v81_v32 }
   0xa   :  { %1231 = vmatpush3.bf16.msra.mxu0 %v1362_v2  ;;  %v1367_v7 = vld [vmem:[%s2056_s23 + $0x58] sm:$0xff]   ;;  %v1369_v9 = vld [vmem:[%s2056_s23 + $0x60] sm:$0xff]   ;;  %v1371_v11 = vld [vmem:[%s2056_s23 + $0x68] sm:$0xff]   ;;  %76 = vadd.xlane.f32.xlu0 %v75_v37 }
   0xb   :  { %1232 = vmatprep.subr.bf16.mxu0 %v1363_v3  ;;  %v1368_v8 = vld [vmem:[%s2056_s23 + $0x18] sm:$0xff]   ;;  %v1370_v10 = vld [vmem:[%s2056_s23 + $0x20] sm:$0xff]   ;;  %v1372_v15 = vld [vmem:[%s2056_s23 + $0x28] sm:$0xff]  }
   0xc   :  { %v1373_v16 = vld [vmem:[%s2056_s23 + $0x70] sm:$0xff]   ;;  %v1375_v26 = vld [vmem:[%s2056_s23 + $0x78] sm:$0xff]   ;;  %v344_v0 = vld [vmem:[%s2041_s3 + $0x8] sm:$0xff] }
   0xd   :  { %v1374_v22 = vld [vmem:[%s2056_s23 + $0x30] sm:$0xff]   ;;  %v1376_v31 = vld [vmem:[%s2056_s23 + $0x38] sm:$0xff]   ;;  %88 = vadd.xlane.f32.xlu1 %v87_v43  ;;  %v343_v3 = vld [vmem:[%s2041_s3] sm:$0xff] }
   0xe   :  { %1233 = vmatpush3.bf16.msra.mxu0 %v1364_v4  ;;  %85 = vadd.xlane.f32.xlu0 %v84_v46  ;;  %v111_v59 = vld [vmem:[%s2038_s1 + $0x38] sm:$0xff]  ;;  %v102_v62 = vld [vmem:[%s2040_s0 + $0x30] sm:$0xff]  ;;  %v1381_v13 = vld [vmem:[%s2042_s8 + $0x20] sm:$0xff]  }
   0xf   :  { %1234 = vmatprep.subr.bf16.mxu0 %v1365_v5  ;;  %v151_v61 = vpack.c.bf16 %v111_v59, %v110_v58  ;;  %v103_v63 = vld [vmem:[%s2040_s0 + $0x38] sm:$0xff]  ;;  %v345_v2 = vld [vmem:[%s2041_s3 + $0x10] sm:$0xff]  ;;  %v347_v5 = vld [vmem:[%s2041_s3 + $0x20] sm:$0xff] }
  0x10   :  { %v150_v1 = vpack.c.bf16 %v103_v63, %v102_v62  ;;  %v346_v4 = vld [vmem:[%s2041_s3 + $0x18] sm:$0xff]  ;;  %v1382_v14 = vld [vmem:[%s2042_s8 + $0x28] sm:$0xff]   ;;  %v1833_v30 = vld [vmem:[%s2044_s6] ss:$0 sm:$0xff] }
  0x11   :  { %94 = vadd.xlane.f32.xlu1 %v93_v48  ;;  %v1380_v12 = vld [vmem:[%s2042_s8 + $0x18] sm:$0xff]   ;;  %v1840_v37 = vld [vmem:[%s2045_s7] ss:$0 sm:$0xff] }
  0x12   :  { %1235 = vmatpush3.bf16.msra.mxu0 %v1366_v6  ;;  %91 = vadd.xlane.f32.xlu0 %v90_v51  ;;  %v348_v6 = vld [vmem:[%s2041_s3 + $0x28] sm:$0xff] }
  0x13   :  { %1236 = vmatprep.subr.bf16.mxu0 %v1367_v7  ;;  %v349_v7 = vld [vmem:[%s2041_s3 + $0x30] sm:$0xff] }
  0x16   :  { %1237 = vmatpush3.bf16.msra.mxu0 %v1368_v8  ;;  %v350_v8 = vld [vmem:[%s2041_s3 + $0x38] sm:$0xff] }
  0x17   :  { %1238 = vmatprep.subr.bf16.mxu0 %v1369_v9  ;;  %v1377_v9 = vld [vmem:[%s2042_s8] sm:$0xff]  }
  0x18   :  { %1294 = vmatprep.subr.bf16.mxu1 %v1377_v9 }
  0x19   :  { %1295 = vmatpush3.bf16.msra.mxu1 %v1377_v9 }
  0x1a   :  { %1239 = vmatpush3.bf16.msra.mxu0 %v1370_v10  ;;  %v1378_v10 = vld [vmem:[%s2042_s8 + $0x8] sm:$0xff]  }
  0x1b   :  { %1240 = vmatprep.subr.bf16.mxu0 %v1371_v11  ;;  %1296 = vmatprep.subr.bf16.mxu1 %v1378_v10  ;;  %v1379_v11 = vld [vmem:[%s2042_s8 + $0x10] sm:$0xff]  }
  0x1d   :  { %1297 = vmatpush3.bf16.msra.mxu1 %v1378_v10 }
  0x1e   :  { %1241 = vmatpush3.bf16.msra.mxu0 %v1372_v15  ;;  %1298 = vmatprep.subr.bf16.mxu1 %v1379_v11  ;;  %v1383_v15 = vld [vmem:[%s2042_s8 + $0x30] sm:$0xff]  }
  0x1f   :  { %1242 = vmatprep.subr.bf16.mxu0 %v1373_v16  ;;  %v1384_v16 = vld [vmem:[%s2042_s8 + $0x38] sm:$0xff]  }
  0x21   :  { %1299 = vmatpush3.bf16.msra.mxu1 %v1379_v11 }
  0x22   :  { %1243 = vmatpush3.bf16.msra.mxu0 %v1374_v22  ;;  %359 = vperm.xlu1 %1360, %v344_v0  }
  0x23   :  { %1244 = vmatprep.subr.bf16.mxu0 %v1375_v26  ;;  %1300 = vmatprep.subr.bf16.mxu1 %v1380_v12  ;;  %v1826_v26 = vld [vmem:[%s2043_s5] ss:$0 sm:$0xff] }
  0x25   :  { %1301 = vmatpush3.bf16.msra.mxu1 %v1380_v12 }
  0x26   :  { %1245 = vmatpush3.bf16.msra.mxu0 %v1376_v31  ;;  %364 = vperm.xlu1 %1360, %v345_v2  }
  0x27   :  { %1302 = vmatprep.subr.bf16.mxu1 %v1381_v13 }
  0x28   :  { %354 = vperm.xlu0 %1359, %v343_v3  }
  0x29   :  { %296 = vmatmul.mubr.bf16.vlgmr.msra.gmra.mrb[0].mxu0 %v144_v42  ;;  %1303 = vmatpush3.bf16.msra.mxu1 %v1381_v13 }
  0x2a   :  { %303 = vmatprep.mubr.bf16.mxu0 %v147_v45  ;;  %369 = vperm.xlu1 %1360, %v346_v4  }
  0x2b   :  { %1304 = vmatprep.subr.bf16.mxu1 %v1382_v14 }
  0x2d   :  { %1305 = vmatpush3.bf16.msra.mxu1 %v1382_v14 }
  0x2e   :  { %374 = vperm.xlu1 %1360, %v347_v5   ;;  %1306 = vmatprep.subr.bf16.mxu1 %v1383_v15 }
  0x31   :  { %304 = vmatmul.mubr.bf16.gmra.mrb[4].mxu0 %v146_v54  ;;  %1307 = vmatpush3.bf16.msra.mxu1 %v1383_v15 }
  0x32   :  { %311 = vmatprep.mubr.bf16.mxu0 %v149_v55  ;;  %379 = vperm.xlu1 %1360, %v348_v6  }
  0x33   :  { %1308 = vmatprep.subr.bf16.mxu1 %v1384_v16 }
  0x35   :  { %1309 = vmatpush3.bf16.msra.mxu1 %v1384_v16 }
  0x36   :  { %384 = vperm.xlu1 %1360, %v349_v7  }
  0x39   :  { %312 = vmatmul.mubr.bf16.gmra.mrb[8].mxu0 %v148_v60 }
  0x3a   :  { %319 = vmatprep.mubr.bf16.mxu0 %v151_v61  ;;  %389 = vperm.xlu1 %1360, %v350_v8  }
  0x41   :  { %320 = vmatmul.mubr.bf16.gmra.mrb[12].mxu0 %v150_v1 }
  0x92   :  { %v1807_v17 = vpop.xlane.xlu1 %79 }
  0x93   :  { %v1811_v19 = vpop.xlane.xlu0 %73  ;;  %v161_v49 = vmul.f32 %v1826_v26, %v1807_v17 }
  0x94   :  { %v159_v28 = vmul.f32 %v1826_v26, %v1811_v19 }
  0x96   :  { %v1809_v18 = vpop.xlane.xlu1 %82 }
  0x97   :  { %v1815_v21 = vpop.xlane.xlu0 %76  ;;  %v162_v54 = vmul.f32 %v1826_v26, %v1809_v18 }
  0x98   :  { %v160_v33 = vmul.f32 %v1826_v26, %v1815_v21 }
  0x9a   :  { %v1813_v20 = vpop.xlane.xlu1 %88 }
  0x9b   :  { %v1819_v23 = vpop.xlane.xlu0 %85  ;;  %v164_v10 = vmul.f32 %v1826_v26, %v1813_v20 }
  0x9c   :  { %v163_v5 = vmul.f32 %v1826_v26, %v1819_v23 }
  0x9e   :  { %v1817_v22 = vpop.xlane.xlu1 %94 }
  0x9f   :  { %v1821_v25 = vpop.xlane.xlu0 %91 }
  0xa2   :  { %v360_v24 = vpop.permute.xlu1 %359 }
  0xa3   :  { %v399_v42 = vmul.f32 %v1833_v30, %v360_v24 }
  0xa6   :  { %v365_v27 = vpop.permute.xlu1 %364 }
  0xa7   :  { %v355_v32 = vpop.permute.xlu0 %354  ;;  %v400_v60 = vmul.f32 %v1833_v30, %v365_v27 }
  0xa8   :  { %v398_v40 = vmul.f32 %v1833_v30, %v355_v32 }
  0xaa   :  { %v370_v41 = vpop.permute.xlu1 %369 }
  0xab   :  { %v401_v63 = vmul.f32 %v1833_v30, %v370_v41 }
  0xae   :  { %v375_v55 = vpop.permute.xlu1 %374 }
  0xaf   :  { %v402_v16 = vmul.f32 %v1833_v30, %v375_v55 }
  0xb2   :  { %v380_v3 = vpop.permute.xlu1 %379 }
  0xb3   :  { %v403_v32 = vmul.f32 %v1833_v30, %v380_v3 }
  0xfc   :  { %v1246_v29 = vpop.f32.mrb[0].mxu0 }
  0xfd   :  { %v1247_v31 = vpop.f32.mrb[1].mxu0 }
  0xfe   :  { %v1248_v34 = vadd.f32 %v1247_v31, %v1246_v29  ;;  %v1249_v35 = vpop.f32.mrb[2].mxu0 }
  0xff   :  { %v1250_v36 = vpop.f32.mrb[3].mxu0 }
 0x100   :  { %v298_v38 = vadd.f32 %v1248_v34, %v159_v28  ;;  %v1251_v39 = vadd.f32 %v1250_v36, %v1249_v35  ;;  %v385_v28 = vpop.permute.xlu1 %384 }
 0x102   :  { %v301_v43 = vadd.f32 %v1251_v39, %v160_v33  ;;  %v335_v44 = vadd.f32 %v1840_v37, %v298_v38  ;;  %v165_v39 = vmul.f32 %v1826_v26, %v1821_v25 }
 0x104   :  { %v336_v45 = vadd.f32 %v1840_v37, %v301_v43  ;;  %v1846_v46 = vadd.f32 %v398_v40, %v335_v44  ;;  %v1252_v47 = vpop.f32.mrb[4].mxu0  ;;  %v166_v44 = vmul.f32 %v1826_v26, %v1817_v22 }
 0x105   :  { %v1253_v48 = vpop.f32.mrb[5].mxu0 }
 0x106   :  { %v1138_v50 = vmul.f32 -1.442695, %v1846_v46  ;;  %v1254_v51 = vadd.f32 %v1253_v48, %v1252_v47  ;;  %v1255_v52 = vpop.f32.mrb[6].mxu0  ;;  %v1851_v53 = vadd.f32 %v399_v42, %v336_v45 }
 0x107   :  { %v1256_v56 = vpop.f32.mrb[7].mxu0 }
 0x108   :  { %1393 = vpow2.f32 %v1138_v50  ;;  %v306_v57 = vadd.f32 %v1254_v51, %v161_v49  ;;  %v1257_v58 = vadd.f32 %v1256_v56, %v1255_v52  ;;  %v1139_v59 = vmul.f32 -1.442695, %v1851_v53  ;;  %v390_v50 = vpop.permute.xlu1 %389 }
 0x109   :  { %v404_v52 = vmul.f32 %v1833_v30, %v385_v28 }
 0x10a   :  { %v337_v61 = vadd.f32 %v1840_v37, %v306_v57  ;;  %v309_v62 = vadd.f32 %v1257_v58, %v162_v54  ;;  %1395 = vpow2.f32 %v1139_v59  ;;  %v405_v58 = vmul.f32 %v1833_v30, %v390_v50 }
 0x10c   :  { %v1859_v0 = vadd.f32 %v400_v60, %v337_v61  ;;  %v338_v1 = vadd.f32 %v1840_v37, %v309_v62  ;;  %v1258_v2 = vpop.f32.mrb[8].mxu0 }
 0x10d   :  { %v1259_v4 = vpop.f32.mrb[9].mxu0 }
 0x10e   :  { %v1140_v6 = vmul.f32 -1.442695, %v1859_v0  ;;  %v1865_v7 = vadd.f32 %v401_v63, %v338_v1  ;;  %v1260_v8 = vadd.f32 %v1259_v4, %v1258_v2  ;;  %v1261_v9 = vpop.f32.mrb[10].mxu0 }
 0x10f   :  { %v1262_v11 = vpop.f32.mrb[11].mxu0 }
 0x110   :  { %1397 = vpow2.f32 %v1140_v6  ;;  %v1141_v12 = vmul.f32 -1.442695, %v1865_v7  ;;  %v314_v13 = vadd.f32 %v1260_v8, %v163_v5  ;;  %v1263_v14 = vadd.f32 %v1262_v11, %v1261_v9 }
 0x112   :  { %v1394_v15 = vpop.eup %1393  ;;  %1399 = vpow2.f32 %v1141_v12  ;;  %v339_v24 = vadd.f32 %v1840_v37, %v314_v13  ;;  %v317_v27 = vadd.f32 %v1263_v14, %v164_v10 }
 0x113   :  { %v438_v29 = vadd.f32 1.0, %v1394_v15 }
 0x114   :  { %v1396_v31 = vpop.eup %1395  ;;  %v1873_v33 = vadd.f32 %v402_v16, %v339_v24  ;;  %v340_v34 = vadd.f32 %v1840_v37, %v317_v27  ;;  %v1264_v35 = vpop.f32.mrb[12].mxu0 }
 0x115   :  { %1401 = vrcp.f32 %v438_v29  ;;  %v1265_v36 = vpop.f32.mrb[13].mxu0  ;;  %v439_v38 = vadd.f32 1.0, %v1396_v31 }
 0x116   :  { %v1142_v40 = vmul.f32 -1.442695, %v1873_v33  ;;  %v411_v41 = vadd.f32 %v403_v32, %v340_v34  ;;  %v1266_v42 = vadd.f32 %v1265_v36, %v1264_v35  ;;  %v1267_v43 = vpop.f32.mrb[14].mxu0  ;;  %v1146_v36 = vld [vmem:[%s2047_s9] ss:$0 sm:$0xff] }
 0x117   :  { %v1268_v45 = vpop.f32.mrb[15].mxu0  ;;  %1403 = vrcp.f32 %v439_v38 }
 0x118   :  { %1405 = vpow2.f32 %v1142_v40  ;;  %v1143_v47 = vmul.f32 -1.442695, %v411_v41  ;;  %v322_v48 = vadd.f32 %v1266_v42, %v165_v39  ;;  %v1269_v49 = vadd.f32 %v1268_v45, %v1267_v43 }
 0x11a   :  { %v1398_v51 = vpop.eup %1397  ;;  %1407 = vpow2.f32 %v1143_v47  ;;  %v341_v54 = vadd.f32 %v1840_v37, %v322_v48  ;;  %v325_v55 = vadd.f32 %v1269_v49, %v166_v44 }
 0x11b   :  { %v440_v56 = vadd.f32 1.0, %v1398_v51 }
 0x11c   :  { %v1400_v57 = vpop.eup %1399  ;;  %v412_v59 = vadd.f32 %v404_v52, %v341_v54  ;;  %v342_v26 = vadd.f32 %v1840_v37, %v325_v55 }
 0x11d   :  { %1409 = vrcp.f32 %v440_v56  ;;  %v441_v60 = vadd.f32 1.0, %v1400_v57 }
 0x11e   :  { %v1144_v61 = vmul.f32 -1.442695, %v412_v59  ;;  %v413_v62 = vadd.f32 %v405_v58, %v342_v26 }
 0x11f   :  { %v1402_v63 = vpop.eup %1401  ;;  %1411 = vrcp.f32 %v441_v60 }
 0x120   :  { %1413 = vpow2.f32 %v1144_v61  ;;  %v1145_v1 = vmul.f32 -1.442695, %v413_v62  ;;  %v462_v4 = vmul.f32 %v1402_v63, %v1846_v46 }
 0x121   :  { %v1404_v2 = vpop.eup %1403 }
 0x122   :  { %v1406_v3 = vpop.eup %1405  ;;  %1415 = vpow2.f32 %v1145_v1  ;;  %v463_v5 = vmul.f32 %v1404_v2, %v1851_v53 }
 0x123   :  { %v442_v6 = vadd.f32 1.0, %v1406_v3 }
 0x124   :  { %v1408_v30 = vpop.eup %1407  ;;  %v486_v8 = vpack.c.bf16 %v463_v5, %v462_v4 }
 0x125   :  { %1417 = vrcp.f32 %v442_v6  ;;  %v443_v37 = vadd.f32 1.0, %v1408_v30 }
 0x126   :  { %1310 = vmatprep.mubr.bf16.mxu1 %v486_v8  ;;  %v1163_v8 = vld [vmem:[%s2048_s10] ss:$0 sm:$0xff] }
 0x127   :  { %v1410_v9 = vpop.eup %1409  ;;  %1419 = vrcp.f32 %v443_v37 }
 0x128   :  { %v464_v12 = vmul.f32 %v1410_v9, %v1859_v0 }
 0x129   :  { %v1412_v10 = vpop.eup %1411 }
 0x12a   :  { %v1414_v11 = vpop.eup %1413  ;;  %v465_v13 = vmul.f32 %v1412_v10, %v1865_v7  ;;  %v22_v7 = vstv %s2046_s11 }
 0x12b   :  { %v444_v14 = vadd.f32 1.0, %v1414_v11  ;;  %23 = vst [vmem:[#allocation2] sm:$0x1] %v22_v7 }
 0x12c   :  { %v1416_v15 = vpop.eup %1415  ;;  %v487_v16 = vpack.c.bf16 %v465_v13, %v464_v12 }
 0x12d   :  { %1421 = vrcp.f32 %v444_v14  ;;  %v445_v46 = vadd.f32 1.0, %v1416_v15 }
 0x12e   :  { %1311 = vmatmul.mubr.bf16.vlgmr.msra.gmra.mrb[0].mxu1 %v487_v16 }
 0x12f   :  { %v1418_v53 = vpop.eup %1417  ;;  %1423 = vrcp.f32 %v445_v46 }
 0x130   :  { %v466_v27 = vmul.f32 %v1418_v53, %v1873_v33 }
 0x131   :  { %v1420_v24 = vpop.eup %1419 }
 0x132   :  { %v467_v28 = vmul.f32 %v1420_v24, %v411_v41 }
 0x134   :  { %v488_v29 = vpack.c.bf16 %v467_v28, %v466_v27 }
 0x136   :  { %1314 = vmatprep.mubr.bf16.mxu1 %v488_v29 }
 0x137   :  { %v1422_v31 = vpop.eup %1421 }
 0x138   :  { %v468_v34 = vmul.f32 %v1422_v31, %v412_v59 }
 0x139   :  { %v1424_v32 = vpop.eup %1423 }
 0x13a   :  { %v469_v0 = vmul.f32 %v1424_v32, %v413_v62 }
 0x13c   :  { %v489_v35 = vpack.c.bf16 %v469_v0, %v468_v34 }
 0x13e   :  { %1315 = vmatmul.mubr.bf16.gmra.mrb[4].mxu1 %v489_v35 }
 0x201   :  { %v1312_v38 = vpop.f32.mrb[0].mxu1 }
 0x202   :  { %v588_v33 = vadd.f32 %v1312_v38, %v1146_v36  ;;  %v579_v39 = vpop.f32.mrb[1].mxu1 }
 0x203   :  { %v580_v40 = vadd.f32 %v1146_v36, %v579_v39  ;;  %v1313_v41 = vpop.f32.mrb[2].mxu1 }
 0x204   :  { %v1157_v42 = vmul.f32 -1.442695, %v588_v33  ;;  %v591_v43 = vadd.f32 %v1313_v41, %v1146_v36  ;;  %v582_v44 = vpop.f32.mrb[3].mxu1 }
 0x205   :  { %v1155_v45 = vmul.f32 -1.442695, %v580_v40  ;;  %v583_v47 = vadd.f32 %v1146_v36, %v582_v44 }
 0x206   :  { %1425 = vpow2.f32 %v1157_v42  ;;  %v1158_v48 = vmul.f32 -1.442695, %v591_v43 }
 0x207   :  { %1427 = vpow2.f32 %v1155_v45  ;;  %v1156_v49 = vmul.f32 -1.442695, %v583_v47 }
 0x208   :  { %1429 = vpow2.f32 %v1158_v48  ;;  %v1386_v48 = vld [vmem:[%s2049_s12 + $0x8] sm:$0xff]  }
 0x209   :  { %1431 = vpow2.f32 %v1156_v49  ;;  %v1387_v49 = vld [vmem:[%s2049_s12 + $0x10] sm:$0xff]  }
 0x210   :  { %v1426_v50 = vpop.eup %1425 }
 0x211   :  { %v1428_v51 = vpop.eup %1427  ;;  %v636_v52 = vadd.f32 1.0, %v1426_v50  ;;  %v1316_v54 = vpop.f32.mrb[4].mxu1  ;;  %v1388_v50 = vld [vmem:[%s2049_s12 + $0x18] sm:$0xff]  }
 0x212   :  { %v1430_v55 = vpop.eup %1429  ;;  %v634_v56 = vadd.f32 1.0, %v1428_v51  ;;  %v604_v57 = vadd.f32 %v1316_v54, %v1146_v36  ;;  %v595_v58 = vpop.f32.mrb[5].mxu1  ;;  %v1389_v51 = vld [vmem:[%s2049_s12 + $0x20] sm:$0xff]  }
 0x213   :  { %v1432_v59 = vpop.eup %1431  ;;  %1433 = vrcp.f32 %v636_v52  ;;  %v637_v26 = vadd.f32 1.0, %v1430_v55  ;;  %v596_v60 = vadd.f32 %v1146_v36, %v595_v58  ;;  %v1317_v61 = vpop.f32.mrb[6].mxu1  ;;  %v1390_v52 = vld [vmem:[%s2049_s12 + $0x28] sm:$0xff]   ;;  %v1164_v54 = vld [vmem:[#allocation2] ss:$0 sm:$0xff] }
 0x214   :  { %1435 = vrcp.f32 %v634_v56  ;;  %v635_v62 = vadd.f32 1.0, %v1432_v59  ;;  %v1161_v63 = vmul.f32 -1.442695, %v604_v57  ;;  %v607_v1 = vadd.f32 %v1317_v61, %v1146_v36  ;;  %v598_v2 = vpop.f32.mrb[7].mxu1 }
 0x215   :  { %1437 = vrcp.f32 %v637_v26  ;;  %v1159_v3 = vmul.f32 -1.442695, %v596_v60  ;;  %v599_v4 = vadd.f32 %v1146_v36, %v598_v2 }
 0x216   :  { %1439 = vrcp.f32 %v635_v62  ;;  %v1162_v5 = vmul.f32 -1.442695, %v607_v1 }
 0x217   :  { %1441 = vpow2.f32 %v1161_v63  ;;  %v1160_v6 = vmul.f32 -1.442695, %v599_v4 }
 0x218   :  { %1443 = vpow2.f32 %v1159_v3 }
 0x219   :  { %1445 = vpow2.f32 %v1162_v5 }
 0x21a   :  { %1447 = vpow2.f32 %v1160_v6 }
 0x21d   :  { %v1434_v30 = vpop.eup %1433 }
 0x21e   :  { %v1436_v37 = vpop.eup %1435  ;;  %v1899_v9 = vmul.f32 %v1434_v30, %v588_v33 }
 0x21f   :  { %v1438_v10 = vpop.eup %1437  ;;  %v1901_v11 = vmul.f32 %v1436_v37, %v580_v40 }
 0x220   :  { %v1440_v12 = vpop.eup %1439  ;;  %v675_v13 = vmul.f32 %v1163_v8, %v1899_v9  ;;  %v1904_v15 = vmul.f32 %v1438_v10, %v591_v43 }
 0x221   :  { %v1442_v14 = vpop.eup %1441  ;;  %v1906_v16 = vmul.f32 %v1440_v12, %v583_v47  ;;  %v673_v46 = vmul.f32 %v1163_v8, %v1901_v11  ;;  %v1385_v47 = vld [vmem:[%s2049_s12] sm:$0xff]  }
 0x222   :  { %v1444_v53 = vpop.eup %1443  ;;  %v640_v24 = vadd.f32 1.0, %v1442_v14  ;;  %685 = vadd.xlane.f32.xlu0 %v675_v13  ;;  %v676_v0 = vmul.f32 %v1163_v8, %v1904_v15  ;;  %1318 = vmatprep.subr.bf16.mxu0 %v1385_v47 }
 0x223   :  { %v1446_v27 = vpop.eup %1445  ;;  %v638_v28 = vadd.f32 1.0, %v1444_v53  ;;  %681 = vadd.xlane.f32.xlu1 %v673_v46  ;;  %v674_v29 = vmul.f32 %v1163_v8, %v1906_v16  ;;  %1342 = vmatprep.subr.bf16.mxu1 %v1385_v47 }
 0x224   :  { %v1448_v31 = vpop.eup %1447  ;;  %1449 = vrcp.f32 %v640_v24  ;;  %v641_v32 = vadd.f32 1.0, %v1446_v27  ;;  %1319 = vmatpush3.bf16.msra.mxu0 %v1385_v47  ;;  %1350 = vmatpush3.bf16.msra.mxu1 %v1385_v47 }
 0x225   :  { %1451 = vrcp.f32 %v638_v28  ;;  %v639_v34 = vadd.f32 1.0, %v1448_v31  ;;  %1320 = vmatprep.subr.bf16.mxu0 %v1386_v48  ;;  %1343 = vmatprep.subr.bf16.mxu1 %v1386_v48 }
 0x226   :  { %1453 = vrcp.f32 %v641_v32  ;;  %683 = vadd.xlane.f32.xlu0 %v674_v29 }
 0x227   :  { %1455 = vrcp.f32 %v639_v34  ;;  %687 = vadd.xlane.f32.xlu1 %v676_v0 }
 0x228   :  { %1321 = vmatpush3.bf16.msra.mxu0 %v1386_v48  ;;  %1351 = vmatpush3.bf16.msra.mxu1 %v1386_v48 }
 0x229   :  { %1322 = vmatprep.subr.bf16.mxu0 %v1387_v49  ;;  %1344 = vmatprep.subr.bf16.mxu1 %v1387_v49 }
 0x22c   :  { %1323 = vmatpush3.bf16.msra.mxu0 %v1387_v49  ;;  %1352 = vmatpush3.bf16.msra.mxu1 %v1387_v49 }
 0x22d   :  { %1324 = vmatprep.subr.bf16.mxu0 %v1388_v50  ;;  %1345 = vmatprep.subr.bf16.mxu1 %v1388_v50 }
 0x22e   :  { %v1450_v35 = vpop.eup %1449 }
 0x22f   :  { %v1452_v7 = vpop.eup %1451  ;;  %v1913_v39 = vmul.f32 %v1450_v35, %v604_v57 }
 0x230   :  { %v1454_v36 = vpop.eup %1453  ;;  %v1911_v38 = vmul.f32 %v1452_v7, %v596_v60  ;;  %1325 = vmatpush3.bf16.msra.mxu0 %v1388_v50  ;;  %1353 = vmatpush3.bf16.msra.mxu1 %v1388_v50  ;;  %v1391_v7 = vld [vmem:[%s2049_s12 + $0x30] sm:$0xff]  }
 0x231   :  { %v1456_v33 = vpop.eup %1455  ;;  %v1918_v42 = vmul.f32 %v1454_v36, %v607_v1  ;;  %v679_v44 = vmul.f32 %v1163_v8, %v1913_v39  ;;  %1326 = vmatprep.subr.bf16.mxu0 %v1389_v51  ;;  %1346 = vmatprep.subr.bf16.mxu1 %v1389_v51 }
 0x232   :  { %v1915_v40 = vmul.f32 %v1456_v33, %v599_v4  ;;  %v677_v41 = vmul.f32 %v1163_v8, %v1911_v38 }
 0x233   :  { %v680_v45 = vmul.f32 %v1163_v8, %v1918_v42 }
 0x234   :  { %689 = vadd.xlane.f32.xlu0 %v677_v41  ;;  %v678_v43 = vmul.f32 %v1163_v8, %v1915_v40  ;;  %1327 = vmatpush3.bf16.msra.mxu0 %v1389_v51 }
 0x235   :  { %1354 = vmatpush3.bf16.msra.mxu1 %v1389_v51  ;;  %1328 = vmatprep.subr.bf16.mxu0 %v1390_v52 }
 0x236   :  { %691 = vadd.xlane.f32.xlu1 %v678_v43  ;;  %1347 = vmatprep.subr.bf16.mxu1 %v1390_v52  ;;  %v1392_v43 = vld [vmem:[%s2049_s12 + $0x38] sm:$0xff]  }
 0x238   :  { %693 = vadd.xlane.f32.xlu0 %v679_v44  ;;  %1329 = vmatpush3.bf16.msra.mxu0 %v1390_v52 }
 0x239   :  { %1355 = vmatpush3.bf16.msra.mxu1 %v1390_v52  ;;  %1330 = vmatprep.subr.bf16.mxu0 %v1391_v7 }
 0x23a   :  { %695 = vadd.xlane.f32.xlu1 %v680_v45  ;;  %1348 = vmatprep.subr.bf16.mxu1 %v1391_v7 }
 0x23c   :  { %1331 = vmatpush3.bf16.msra.mxu0 %v1391_v7 }
 0x23d   :  { %1356 = vmatpush3.bf16.msra.mxu1 %v1391_v7  ;;  %1332 = vmatprep.subr.bf16.mxu0 %v1392_v43 }
 0x23e   :  { %1349 = vmatprep.subr.bf16.mxu1 %v1392_v43 }
 0x240   :  { %1333 = vmatpush3.bf16.msra.mxu0 %v1392_v43 }
 0x241   :  { %1357 = vmatpush3.bf16.msra.mxu1 %v1392_v43 }
 0x2af   :  { %v686_v55 = vpop.xlane.xlu0 %685 }
 0x2b0   :  { %v706_v56 = vadd.f32 %v1164_v54, %v686_v55  ;;  %v682_v57 = vpop.xlane.xlu1 %681 }
 0x2b1   :  { %v704_v58 = vadd.f32 %v1164_v54, %v682_v57 }
 0x2b2   :  { %v1167_v59 = vmul.f32 -1.442695, %v706_v56 }
 0x2b3   :  { %v1165_v26 = vmul.f32 -1.442695, %v704_v58  ;;  %v684_v60 = vpop.xlane.xlu0 %683 }
 0x2b4   :  { %1457 = vpow2.f32 %v1167_v59  ;;  %v705_v61 = vadd.f32 %v1164_v54, %v684_v60  ;;  %v688_v62 = vpop.xlane.xlu1 %687 }
 0x2b5   :  { %1459 = vpow2.f32 %v1165_v26  ;;  %v707_v63 = vadd.f32 %v1164_v54, %v688_v62 }
 0x2b6   :  { %v1166_v1 = vmul.f32 -1.442695, %v705_v61 }
 0x2b7   :  { %v1168_v2 = vmul.f32 -1.442695, %v707_v63 }
 0x2b8   :  { %1461 = vpow2.f32 %v1166_v1 }
 0x2b9   :  { %1463 = vpow2.f32 %v1168_v2 }
 0x2be   :  { %v1458_v3 = vpop.eup %1457 }
 0x2bf   :  { %v1460_v4 = vpop.eup %1459  ;;  %v738_v5 = vadd.f32 1.0, %v1458_v3 }
 0x2c0   :  { %v736_v6 = vadd.f32 1.0, %v1460_v4 }
 0x2c1   :  { %1465 = vrcp.f32 %v738_v5  ;;  %v690_v30 = vpop.xlane.xlu0 %689 }
 0x2c2   :  { %v1462_v8 = vpop.eup %1461  ;;  %1467 = vrcp.f32 %v736_v6  ;;  %v708_v37 = vadd.f32 %v1164_v54, %v690_v30 }
 0x2c3   :  { %v1464_v10 = vpop.eup %1463  ;;  %v737_v12 = vadd.f32 1.0, %v1462_v8  ;;  %v692_v13 = vpop.xlane.xlu1 %691 }
 0x2c4   :  { %v739_v14 = vadd.f32 1.0, %v1464_v10  ;;  %v1169_v46 = vmul.f32 -1.442695, %v708_v37  ;;  %v709_v53 = vadd.f32 %v1164_v54, %v692_v13 }
 0x2c5   :  { %1469 = vrcp.f32 %v737_v12  ;;  %v694_v24 = vpop.xlane.xlu0 %693 }
 0x2c6   :  { %1471 = vrcp.f32 %v739_v14  ;;  %v1170_v27 = vmul.f32 -1.442695, %v709_v53  ;;  %v710_v28 = vadd.f32 %v1164_v54, %v694_v24 }
 0x2c7   :  { %1473 = vpow2.f32 %v1169_v46  ;;  %v696_v29 = vpop.xlane.xlu1 %695 }
 0x2c8   :  { %1475 = vpow2.f32 %v1170_v27  ;;  %v1171_v31 = vmul.f32 -1.442695, %v710_v28  ;;  %v711_v32 = vadd.f32 %v1164_v54, %v696_v29 }
 0x2ca   :  { %1477 = vpow2.f32 %v1171_v31  ;;  %v1172_v34 = vmul.f32 -1.442695, %v711_v32 }
 0x2cb   :  { %v1466_v0 = vpop.eup %1465 }
 0x2cc   :  { %v1468_v35 = vpop.eup %1467  ;;  %1479 = vpow2.f32 %v1172_v34  ;;  %772 = vperm.xlu1 %1360, %v1466_v0  }
 0x2cd   :  { %762 = vperm.xlu0 %1359, %v1468_v35  }
 0x2cf   :  { %v1470_v36 = vpop.eup %1469 }
 0x2d0   :  { %v1472_v33 = vpop.eup %1471  ;;  %767 = vperm.xlu1 %1360, %v1470_v36  }
 0x2d1   :  { %v1474_v41 = vpop.eup %1473  ;;  %777 = vperm.xlu0 %1359, %v1472_v33  }
 0x2d2   :  { %v1476_v44 = vpop.eup %1475  ;;  %v740_v45 = vadd.f32 1.0, %v1474_v41 }
 0x2d3   :  { %v741_v47 = vadd.f32 1.0, %v1476_v44 }
 0x2d4   :  { %v1478_v48 = vpop.eup %1477  ;;  %1481 = vrcp.f32 %v740_v45 }
 0x2d5   :  { %1483 = vrcp.f32 %v741_v47  ;;  %v742_v49 = vadd.f32 1.0, %v1478_v48 }
 0x2d6   :  { %v1480_v50 = vpop.eup %1479 }
 0x2d7   :  { %1485 = vrcp.f32 %v742_v49  ;;  %v743_v51 = vadd.f32 1.0, %v1480_v50 }
 0x2d9   :  { %1487 = vrcp.f32 %v743_v51 }
 0x2de   :  { %v1482_v52 = vpop.eup %1481 }
 0x2df   :  { %v1484_v54 = vpop.eup %1483  ;;  %782 = vperm.xlu1 %1360, %v1482_v52  }
 0x2e0   :  { %787 = vperm.xlu0 %1359, %v1484_v54  }
 0x2e1   :  { %v1486_v55 = vpop.eup %1485 }
 0x2e3   :  { %v1488_v56 = vpop.eup %1487  ;;  %792 = vperm.xlu1 %1360, %v1486_v55   ;;  %v1198_v55 = vld [vmem:[%s2052_s14] ss:$0 sm:$0xff] }
 0x2e4   :  { %797 = vperm.xlu0 %1359, %v1488_v56  }
 0x34b   :  { %v773_v57 = vpop.permute.xlu1 %772 }
 0x34c   :  { %v763_v58 = vpop.permute.xlu0 %762  ;;  %v802_v62 = vmul.f32 %v773_v57, %v1899_v9 }
 0x34d   :  { %v800_v26 = vmul.f32 %v763_v58, %v1901_v11 }
 0x34f   :  { %v768_v59 = vpop.permute.xlu1 %767 }
 0x350   :  { %v801_v60 = vmul.f32 %v768_v59, %v1906_v16  ;;  %v778_v61 = vpop.permute.xlu0 %777 }
 0x351   :  { %v803_v63 = vmul.f32 %v778_v61, %v1904_v15 }
 0x352   :  { %v808_v1 = vpack.c.bf16 %v801_v60, %v800_v26 }
 0x353   :  { %v809_v2 = vpack.c.bf16 %v803_v63, %v802_v62 }
 0x354   :  { %1211 = vst [vmem:[%s2050_s15] sm:$0xff] %v808_v1   ;;  %1334 = vmatprep.mubr.bf16.mxu0 %v808_v1 }
 0x355   :  { %1227 = vst [vmem:[%s2050_s15 + $0x8] sm:$0xff] %v809_v2   ;;  %1335 = vmatmul.mubr.bf16.vlgmr.msra.gmra.mrb[16].mxu0 %v809_v2 }
 0x35e   :  { %v783_v11 = vpop.permute.xlu1 %782 }
 0x35f   :  { %v788_v3 = vpop.permute.xlu0 %787  ;;  %v804_v16 = vmul.f32 %v783_v11, %v1911_v38  ;;  %v1181_v38 = vld [vmem:[%s2051_s13] ss:$0 sm:$0xff] }
 0x360   :  { %v805_v9 = vmul.f32 %v788_v3, %v1915_v40 }
 0x362   :  { %v810_v4 = vpack.c.bf16 %v805_v9, %v804_v16  ;;  %v793_v15 = vpop.permute.xlu1 %792 }
 0x363   :  { %v798_v5 = vpop.permute.xlu0 %797  ;;  %v806_v6 = vmul.f32 %v793_v15, %v1913_v39 }
 0x364   :  { %1228 = vst [vmem:[%s2050_s15 + $0x10] sm:$0xff] %v810_v4   ;;  %v807_v30 = vmul.f32 %v798_v5, %v1918_v42  ;;  %1338 = vmatprep.mubr.bf16.mxu1 %v810_v4 }
 0x366   :  { %v811_v8 = vpack.c.bf16 %v807_v30, %v806_v6 }
 0x368   :  { %1229 = vst [vmem:[%s2050_s15 + $0x18] sm:$0xff] %v811_v8   ;;  %1339 = vmatmul.mubr.bf16.vlgmr.msra.gmra.mrb[8].mxu1 %v811_v8 }
 0x428   :  { %v1336_v40 = vpop.f32.mrb[16].mxu0 }
 0x429   :  { %v962_v37 = vadd.f32 %v1336_v40, %v1181_v38  ;;  %v953_v10 = vpop.f32.mrb[17].mxu0 }
 0x42a   :  { %v954_v12 = vadd.f32 %v1181_v38, %v953_v10  ;;  %v1337_v13 = vpop.f32.mrb[18].mxu0 }
 0x42b   :  { %v1192_v14 = vmul.f32 -1.442695, %v962_v37  ;;  %v965_v39 = vadd.f32 %v1337_v13, %v1181_v38  ;;  %v956_v46 = vpop.f32.mrb[19].mxu0 }
 0x42c   :  { %v1190_v42 = vmul.f32 -1.442695, %v954_v12  ;;  %v957_v53 = vadd.f32 %v1181_v38, %v956_v46 }
 0x42d   :  { %1489 = vpow2.f32 %v1192_v14  ;;  %v1193_v24 = vmul.f32 -1.442695, %v965_v39 }
 0x42e   :  { %1491 = vpow2.f32 %v1190_v42  ;;  %v1191_v27 = vmul.f32 -1.442695, %v957_v53 }
 0x42f   :  { %1493 = vpow2.f32 %v1193_v24  ;;  %v1071_v24 = vadd.f32 1e-08, %v1811_v19 }
 0x430   :  { %1495 = vpow2.f32 %v1191_v27  ;;  %v1072_v27 = vadd.f32 1e-08, %v1815_v21  ;;  %v1538_v21 = vld [vmem:[%s2039_s2] sm:$0xff] }
 0x437   :  { %v1490_v28 = vpop.eup %1489 }
 0x438   :  { %v1492_v29 = vpop.eup %1491  ;;  %v1010_v31 = vadd.f32 1.0, %v1490_v28  ;;  %v1074_v28 = vadd.f32 1e-08, %v1809_v18 }
 0x439   :  { %v1494_v32 = vpop.eup %1493  ;;  %v1008_v34 = vadd.f32 1.0, %v1492_v29 }
 0x43a   :  { %v1496_v0 = vpop.eup %1495  ;;  %1497 = vrcp.f32 %v1010_v31  ;;  %v1011_v35 = vadd.f32 1.0, %v1494_v32 }
 0x43b   :  { %1499 = vrcp.f32 %v1008_v34  ;;  %v1009_v7 = vadd.f32 1.0, %v1496_v0  ;;  %v1340_v36 = vpop.f32.mrb[8].mxu1 }
 0x43c   :  { %1501 = vrcp.f32 %v1011_v35  ;;  %v978_v33 = vadd.f32 %v1340_v36, %v1181_v38  ;;  %v969_v41 = vpop.f32.mrb[9].mxu1 }
 0x43d   :  { %1503 = vrcp.f32 %v1009_v7  ;;  %v970_v43 = vadd.f32 %v1181_v38, %v969_v41  ;;  %v1341_v44 = vpop.f32.mrb[10].mxu1 }
 0x43e   :  { %v1196_v45 = vmul.f32 -1.442695, %v978_v33  ;;  %v981_v47 = vadd.f32 %v1341_v44, %v1181_v38  ;;  %v972_v48 = vpop.f32.mrb[11].mxu1  ;;  %v1075_v44 = vadd.f32 1e-08, %v1819_v23 }
 0x43f   :  { %v1194_v49 = vmul.f32 -1.442695, %v970_v43  ;;  %v973_v50 = vadd.f32 %v1181_v38, %v972_v48  ;;  %v1077_v23 = vadd.f32 1e-08, %v1821_v25 }
 0x440   :  { %1505 = vpow2.f32 %v1196_v45  ;;  %v1197_v51 = vmul.f32 -1.442695, %v981_v47 }
 0x441   :  { %1507 = vpow2.f32 %v1194_v49  ;;  %v1195_v52 = vmul.f32 -1.442695, %v973_v50  ;;  %v1076_v49 = vadd.f32 1e-08, %v1813_v20  ;;  %v1078_v20 = vadd.f32 1e-08, %v1817_v22 }
 0x442   :  { %1509 = vpow2.f32 %v1197_v51  ;;  %v1542_v22 = vld [vmem:[%s2039_s2 + $0x28] sm:$0xff] }
 0x443   :  { %1511 = vpow2.f32 %v1195_v52 }
 0x444   :  { %v1498_v54 = vpop.eup %1497 }
 0x445   :  { %v1500_v56 = vpop.eup %1499  ;;  %v1034_v57 = vmul.f32 %v1498_v54, %v962_v37 }
 0x446   :  { %v1502_v58 = vpop.eup %1501  ;;  %v1032_v59 = vmul.f32 %v1500_v56, %v954_v12 }
 0x447   :  { %v1504_v26 = vpop.eup %1503  ;;  %v1049_v60 = vmul.f32 %v1198_v55, %v1034_v57  ;;  %v1035_v61 = vmul.f32 %v1502_v58, %v965_v39  ;;  %v1541_v58 = vld [vmem:[%s2039_s2 + $0x20] sm:$0xff] }
 0x448   :  { %v1033_v62 = vmul.f32 %v1504_v26, %v957_v53  ;;  %v1047_v63 = vmul.f32 %v1198_v55, %v1032_v59  ;;  %v1073_v53 = vadd.f32 1e-08, %v1807_v17  ;;  %v1537_v17 = vld [vmem:[%s2039_s2 + $0x10] sm:$0xff] }
 0x449   :  { %1059 = vadd.xlane.f32.xlu0 %v1049_v60  ;;  %v1050_v4 = vmul.f32 %v1198_v55, %v1035_v61 }
 0x44a   :  { %v1506_v1 = vpop.eup %1505  ;;  %1055 = vadd.xlane.f32.xlu1 %v1047_v63  ;;  %v1048_v2 = vmul.f32 %v1198_v55, %v1033_v62 }
 0x44b   :  { %v1508_v11 = vpop.eup %1507  ;;  %v1014_v3 = vadd.f32 1.0, %v1506_v1 }
 0x44c   :  { %v1510_v16 = vpop.eup %1509  ;;  %v1012_v9 = vadd.f32 1.0, %v1508_v11 }
 0x44d   :  { %v1512_v15 = vpop.eup %1511  ;;  %1513 = vrcp.f32 %v1014_v3  ;;  %v1015_v5 = vadd.f32 1.0, %v1510_v16  ;;  %1057 = vadd.xlane.f32.xlu0 %v1048_v2  ;;  %v1543_v2 = vld [vmem:[%s2039_s2 + $0x30] sm:$0xff]  ;;  %v1544_v16 = vld [vmem:[%s2039_s2 + $0x38] sm:$0xff] }
 0x44e   :  { %1515 = vrcp.f32 %v1012_v9  ;;  %v1013_v6 = vadd.f32 1.0, %v1512_v15  ;;  %1061 = vadd.xlane.f32.xlu1 %v1050_v4 }
 0x44f   :  { %1517 = vrcp.f32 %v1015_v5 }
 0x450   :  { %1519 = vrcp.f32 %v1013_v6 }
 0x451   :  { %1521 = vrsqrt.f32 %v1073_v53 }
 0x452   :  { %1523 = vrsqrt.f32 %v1071_v24 }
 0x453   :  { %1525 = vrsqrt.f32 %v1072_v27 }
 0x454   :  { %1527 = vrsqrt.f32 %v1074_v28 }
 0x455   :  { %1529 = vrsqrt.f32 %v1075_v44 }
 0x456   :  { %1531 = vrsqrt.f32 %v1076_v49 }
 0x457   :  { %v1514_v30 = vpop.eup %1513  ;;  %1533 = vrsqrt.f32 %v1077_v23 }
 0x458   :  { %v1516_v8 = vpop.eup %1515  ;;  %v1038_v10 = vmul.f32 %v1514_v30, %v978_v33  ;;  %1535 = vrsqrt.f32 %v1078_v20 }
 0x459   :  { %v1518_v38 = vpop.eup %1517  ;;  %v1036_v40 = vmul.f32 %v1516_v8, %v970_v43 }
 0x45a   :  { %v1520_v37 = vpop.eup %1519  ;;  %v1039_v14 = vmul.f32 %v1518_v38, %v981_v47  ;;  %v1053_v46 = vmul.f32 %v1198_v55, %v1038_v10  ;;  %v1539_v47 = vld [vmem:[%s2039_s2 + $0x8] sm:$0xff] }
 0x45b   :  { %v1037_v12 = vmul.f32 %v1520_v37, %v973_v50  ;;  %v1051_v13 = vmul.f32 %v1198_v55, %v1036_v40  ;;  %v1522_v29 = vpop.eup %1521  ;;  %v1540_v50 = vld [vmem:[%s2039_s2 + $0x18] sm:$0xff] }
 0x45c   :  { %v1054_v42 = vmul.f32 %v1198_v55, %v1039_v14  ;;  %v1524_v32 = vpop.eup %1523 }
 0x45d   :  { %1063 = vadd.xlane.f32.xlu0 %v1051_v13  ;;  %v1052_v39 = vmul.f32 %v1198_v55, %v1037_v12  ;;  %v1526_v19 = vpop.eup %1525 }
 0x45e   :  { %v1528_v33 = vpop.eup %1527 }
 0x45f   :  { %1065 = vadd.xlane.f32.xlu1 %v1052_v39  ;;  %v1530_v52 = vpop.eup %1529 }
 0x460   :  { %v1532_v56 = vpop.eup %1531 }
 0x461   :  { %1067 = vadd.xlane.f32.xlu0 %v1053_v46  ;;  %v1534_v26 = vpop.eup %1533 }
 0x462   :  { %v1536_v63 = vpop.eup %1535 }
 0x463   :  { %1069 = vadd.xlane.f32.xlu1 %v1054_v42 }
 0x4d6   :  { %v1060_v31 = vpop.xlane.xlu0 %1059 }
 0x4d7   :  { %v1089_v34 = vmul.f32 %v1522_v29, %v1060_v31  ;;  %v1056_v0 = vpop.xlane.xlu1 %1055 }
 0x4d8   :  { %v1087_v35 = vmul.f32 %v1524_v32, %v1056_v0 }
 0x4d9   :  { %v1097_v7 = vmul.f32 %v1537_v17, %v1089_v34 }
 0x4da   :  { %v1095_v18 = vmul.f32 %v1538_v21, %v1087_v35  ;;  %v1058_v36 = vpop.xlane.xlu0 %1057 }
 0x4db   :  { %1105 = vst.msk [vmem:[%s2053_s16 + $0x10] sm:$0xff] %vm71_vm0, %v1097_v7  ;;  %v1088_v41 = vmul.f32 %v1526_v19, %v1058_v36  ;;  %v1062_v43 = vpop.xlane.xlu1 %1061 }
 0x4dc   :  { %1103 = vst.msk [vmem:[%s2053_s16] sm:$0xff] %vm71_vm0, %v1095_v18  ;;  %v1090_v45 = vmul.f32 %v1528_v33, %v1062_v43 }
 0x4dd   :  { %v1096_v48 = vmul.f32 %v1539_v47, %v1088_v41 }
 0x4de   :  { %v1098_v51 = vmul.f32 %v1540_v50, %v1090_v45 }
 0x4df   :  { %1104 = vst.msk [vmem:[%s2053_s16 + $0x8] sm:$0xff] %vm71_vm0, %v1096_v48 }
 0x4e0   :  { %1106 = vst.msk [vmem:[%s2053_s16 + $0x18] sm:$0xff] %vm71_vm0, %v1098_v51 }
 0x4ea   :  { %v1064_v54 = vpop.xlane.xlu0 %1063 }
 0x4eb   :  { %v1091_v55 = vmul.f32 %v1530_v52, %v1064_v54 }
 0x4ec   :  { %v1066_v57 = vpop.xlane.xlu1 %1065 }
 0x4ed   :  { %v1099_v25 = vmul.f32 %v1541_v58, %v1091_v55  ;;  %v1092_v59 = vmul.f32 %v1532_v56, %v1066_v57 }
 0x4ee   :  { %v1068_v60 = vpop.xlane.xlu0 %1067 }
 0x4ef   :  { %1107 = vst.msk [vmem:[%s2053_s16 + $0x20] sm:$0xff] %vm71_vm0, %v1099_v25  ;;  %v1100_v61 = vmul.f32 %v1542_v22, %v1092_v59  ;;  %v1093_v62 = vmul.f32 %v1534_v26, %v1068_v60 }
 0x4f0   :  { %v1070_v1 = vpop.xlane.xlu1 %1069 }
 0x4f1   :  { %1108 = vst.msk [vmem:[%s2053_s16 + $0x28] sm:$0xff] %vm71_vm0, %v1100_v61  ;;  %v1101_v11 = vmul.f32 %v1543_v2, %v1093_v62  ;;  %v1094_v3 = vmul.f32 %v1536_v63, %v1070_v1 }
 0x4f3   :  { %1109 = vst.msk [vmem:[%s2053_s16 + $0x30] sm:$0xff] %vm71_vm0, %v1101_v11  ;;  %v1102_v9 = vmul.f32 %v1544_v16, %v1094_v3 }
 0x4f5   :  { %1110 = vst.msk [vmem:[%s2053_s16 + $0x38] sm:$0xff] %vm71_vm0, %v1102_v9 }

// kernel: run.109
= control target key start
LH: loop header
LB: loop body
LE: loop exit
PB: predicated region body
PF: predicated region fallthrough
CT: control target
= control target key end

     0   :  { %s1969_s0 = inlined_call_operand.vmem [shape: f32[48,128], index: 0, kind: input, shape index: {}]   ;;  %s1970_s1 = inlined_call_operand.vmem [shape: f32[48,128], index: 1, kind: input, shape index: {}]   ;;  %s1971_s2 = inlined_call_operand.vmem [shape: f32[48,3], index: 2, kind: input, shape index: {}]   ;;  %s1972_s3 = inlined_call_operand.vmem [shape: bf16[48,128], index: 3, kind: input, shape index: {}]   ;;  %s1973_s4 = inlined_call_operand.vmem [shape: bf16[256,128], index: 4, kind: input, shape index: {}]   ;;  %s1974_s5 = inlined_call_operand.vmem [shape: f32[1,128], index: 5, kind: input, shape index: {}]   ;;  %s1975_s6 = inlined_call_operand.vmem [shape: bf16[128,128], index: 6, kind: input, shape index: {}]   ;;  %s1976_s7 = inlined_call_operand.vmem [shape: f32[1,128], index: 7, kind: input, shape index: {}]   ;;  %s1977_s8 = inlined_call_operand.vmem [shape: bf16[128,128], index: 8, kind: input, shape index: {}]   ;;  %s1978_s9 = inlined_call_operand.vmem [shape: f32[1,128], index: 9, kind: input, shape index: {}]   ;;  %s1979_s10 = inlined_call_operand.vmem [shape: f32[1,128], index: 10, kind: input, shape index: {}]   ;;  %s1980_s11 = inlined_call_operand.<no memory space> [shape: f32[1,1], index: 11, kind: input, shape index: {}]   ;;  %s1981_s12 = inlined_call_operand.vmem [shape: bf16[128,128], index: 12, kind: input, shape index: {}]   ;;  %s1982_s13 = inlined_call_operand.vmem [shape: f32[1,128], index: 13, kind: input, shape index: {}]   ;;  %s1983_s14 = inlined_call_operand.vmem [shape: f32[1,128], index: 14, kind: input, shape index: {}]   ;;  %s1984_s15 = inlined_call_operand.hbm [shape: bf16[48,128], index: 15, kind: output, shape index: {0}]   ;;  %s1985_s16 = inlined_call_operand.vmem [shape: f32[48,3], index: 16, kind: output, shape index: {1}]  }
   0x1   :  { %1987 = sst [smem:[#allocation6_spill]] %s1969_s0  ;;  %v22_v0 = vstv %s1980_s11 }
   0x2   :  { %23 = vst [vmem:[#allocation2] sm:$0x1] %v22_v0 }
   0x3   :  { %v1329_v1 = vld [vmem:[%s1973_s4 + $0x40] sm:$0xff]   ;;  %v1504_v3 = vmov 0.0   ;;  %v1331_v4 = vld [vmem:[%s1973_s4 + $0x48] sm:$0xff]   ;;  %vm1505_vm0 = vmmov 0   ;;  %v1334_v7 = vld [vmem:[%s1973_s4 + $0x50] sm:$0xff]   ;;  %s1988_s27 = sld [smem:[#allocation6_spill]] }
   0x4   :  { %v1330_v2 = vld [vmem:[%s1973_s4] sm:$0xff]   ;;  %1237 = vmatprep.subr.bf16.mxu1 %v1504_v3  ;;  %1170 = vmatprep.subr.bf16.mxu0 %v1329_v1  ;;  %v1332_v5 = vld [vmem:[%s1973_s4 + $0x8] sm:$0xff]   ;;  %v1335_v8 = vld [vmem:[%s1973_s4 + $0x10] sm:$0xff]   ;;  %vm68_vm1 = vcmask 23552  }
   0x5   :  { %1253 = vmatprep.mubr.msk.bf16.mxu1 %vm1505_vm0, %v1504_v3  ;;  %1171 = vmatpush3.bf16.msra.mxu0 %v1330_v2  ;;  %v1333_v6 = vld [vmem:[%s1975_s6] sm:$0xff]   ;;  %v1336_v9 = vld [vmem:[%s1975_s6 + $0x8] sm:$0xff]   ;;  %v1337_v10 = vld [vmem:[%s1973_s4 + $0x58] sm:$0xff]  }
   0x6   :  { %1172 = vmatprep.subr.bf16.mxu0 %v1331_v4  ;;  %1238 = vmatpush3.bf16.msra.mxu1 %v1333_v6  ;;  %v1339_v11 = vld [vmem:[%s1975_s6 + $0x10] sm:$0xff]   ;;  %v1338_v12 = vld [vmem:[%s1973_s4 + $0x18] sm:$0xff]   ;;  %v1340_v13 = vld [vmem:[%s1973_s4 + $0x60] sm:$0xff]  }
   0x7   :  { %1239 = vmatprep.subr.bf16.mxu1 %v1504_v3  ;;  %v1342_v14 = vld [vmem:[%s1975_s6 + $0x18] sm:$0xff]   ;;  %v1341_v15 = vld [vmem:[%s1973_s4 + $0x20] sm:$0xff]   ;;  %v1343_v16 = vld [vmem:[%s1973_s4 + $0x68] sm:$0xff]  }
   0x8   :  { %v1345_v17 = vld [vmem:[%s1975_s6 + $0x20] sm:$0xff]   ;;  %v1344_v18 = vld [vmem:[%s1973_s4 + $0x28] sm:$0xff]   ;;  %v1346_v19 = vld [vmem:[%s1973_s4 + $0x70] sm:$0xff]  }
   0x9   :  { %1173 = vmatpush3.bf16.msra.mxu0 %v1332_v5  ;;  %v1348_v20 = vld [vmem:[%s1975_s6 + $0x28] sm:$0xff]   ;;  %v1347_v21 = vld [vmem:[%s1973_s4 + $0x30] sm:$0xff]   ;;  %v93_v22 = vld [vmem:[%s1970_s1] sm:$0xff] }
   0xa   :  { %1174 = vmatprep.subr.bf16.mxu0 %v1334_v7  ;;  %1240 = vmatpush3.bf16.msra.mxu1 %v1336_v9  ;;  %v94_v23 = vld [vmem:[%s1970_s1 + $0x8] sm:$0xff]  ;;  %v1349_v24 = vld [vmem:[%s1973_s4 + $0x78] sm:$0xff]   ;;  %v1351_v27 = vld [vmem:[%s1975_s6 + $0x30] sm:$0xff]  }
   0xb   :  { %1241 = vmatprep.subr.bf16.mxu1 %v1504_v3  ;;  %v132_v25 = vpack.c.bf16 %v94_v23, %v93_v22  ;;  %v1350_v26 = vld [vmem:[%s1973_s4 + $0x38] sm:$0xff]   ;;  %v87_v28 = vld [vmem:[%s1988_s27] sm:$0xff]  ;;  %v88_v29 = vld [vmem:[%s1988_s27 + $0x8] sm:$0xff] }
   0xc   :  { %v95_v30 = vld [vmem:[%s1970_s1 + $0x10] sm:$0xff]  ;;  %v96_v31 = vld [vmem:[%s1970_s1 + $0x18] sm:$0xff]  ;;  %v131_v32 = vpack.c.bf16 %v88_v29, %v87_v28  ;;  %v1353_v34 = vld [vmem:[%s1972_s3] sm:$0xff]  }
   0xd   :  { %1175 = vmatpush3.bf16.msra.mxu0 %v1335_v8  ;;  %278 = vmatprep.mubr.bf16.mxu0 %v132_v25  ;;  %v1352_v33 = vld [vmem:[%s1975_s6 + $0x38] sm:$0xff]   ;;  %v134_v35 = vpack.c.bf16 %v96_v31, %v95_v30  ;;  %v1704_v36 = vld [vmem:[%s1971_s2] sm:$0xff]  ;;  %v1709_v37 = vld [vmem:[%s1971_s2 + $0x8] sm:$0xff] }
   0xe   :  { %1176 = vmatprep.subr.bf16.mxu0 %v1337_v10  ;;  %1242 = vmatpush3.bf16.msra.mxu1 %v1339_v11  ;;  %v1714_v38 = vld [vmem:[%s1971_s2 + $0x10] sm:$0xff]  ;;  %v62_v39 = vmul.f32 %v1704_v36, %v1704_v36  ;;  %v63_v40 = vmul.f32 %v1709_v37, %v1709_v37  ;;  %v1725_v42 = vld [vmem:[%s1971_s2 + $0x18] sm:$0xff]  ;;  %v1730_v43 = vld [vmem:[%s1971_s2 + $0x20] sm:$0xff] }
   0xf   :  { %1243 = vmatprep.subr.bf16.mxu1 %v1504_v3  ;;  %v64_v41 = vmul.f32 %v1714_v38, %v1714_v38  ;;  %v1735_v44 = vld [vmem:[%s1971_s2 + $0x28] sm:$0xff]  ;;  %v89_v45 = vld [vmem:[%s1988_s27 + $0x10] sm:$0xff]  ;;  %v90_v46 = vld [vmem:[%s1988_s27 + $0x18] sm:$0xff]  ;;  %v65_v47 = vmul.f32 %v1725_v42, %v1725_v42  ;;  %v66_v48 = vmul.f32 %v1730_v43, %v1730_v43 }
  0x10   :  { %v67_v49 = vmul.f32 %v1735_v44, %v1735_v44  ;;  %v97_v50 = vld [vmem:[%s1970_s1 + $0x20] sm:$0xff]  ;;  %v98_v51 = vld [vmem:[%s1970_s1 + $0x28] sm:$0xff]  ;;  %v69_v52 = vsel %vm68_vm1, %v62_v39, 0.0  ;;  %v72_v54 = vsel %vm68_vm1, %v63_v40, 0.0  ;;  %v133_v58 = vpack.c.bf16 %v90_v46, %v89_v45 }
  0x11   :  { %1177 = vmatpush3.bf16.msra.mxu0 %v1338_v12  ;;  %v75_v53 = vsel %vm68_vm1, %v64_v41, 0.0  ;;  %70 = vadd.xlane.f32.xlu0 %v69_v52  ;;  %v78_v55 = vsel %vm68_vm1, %v65_v47, 0.0  ;;  %v81_v56 = vsel %vm68_vm1, %v66_v48, 0.0  ;;  %v1354_v59 = vld [vmem:[%s1972_s3 + $0x8] sm:$0xff]   ;;  %v136_v60 = vpack.c.bf16 %v98_v51, %v97_v50  ;;  %v91_v61 = vld [vmem:[%s1988_s27 + $0x20] sm:$0xff] }
  0x12   :  { %1178 = vmatprep.subr.bf16.mxu0 %v1340_v13  ;;  %1244 = vmatpush3.bf16.msra.mxu1 %v1342_v14  ;;  %v84_v57 = vsel %vm68_vm1, %v67_v49, 0.0  ;;  %v92_v62 = vld [vmem:[%s1988_s27 + $0x28] sm:$0xff] }
  0x13   :  { %1245 = vmatprep.subr.bf16.mxu1 %v1504_v3  ;;  %76 = vadd.xlane.f32.xlu1 %v75_v53 }
  0x15   :  { %1179 = vmatpush3.bf16.msra.mxu0 %v1341_v15  ;;  %73 = vadd.xlane.f32.xlu0 %v72_v54 }
  0x16   :  { %1180 = vmatprep.subr.bf16.mxu0 %v1343_v16  ;;  %1246 = vmatpush3.bf16.msra.mxu1 %v1345_v17 }
  0x17   :  { %1247 = vmatprep.subr.bf16.mxu1 %v1504_v3  ;;  %79 = vadd.xlane.f32.xlu1 %v78_v55 }
  0x19   :  { %1181 = vmatpush3.bf16.msra.mxu0 %v1344_v18  ;;  %82 = vadd.xlane.f32.xlu0 %v81_v56 }
  0x1a   :  { %1182 = vmatprep.subr.bf16.mxu0 %v1346_v19  ;;  %1248 = vmatpush3.bf16.msra.mxu1 %v1348_v20 }
  0x1b   :  { %1249 = vmatprep.subr.bf16.mxu1 %v1504_v3  ;;  %85 = vadd.xlane.f32.xlu1 %v84_v57 }
  0x1d   :  { %1183 = vmatpush3.bf16.msra.mxu0 %v1347_v21 }
  0x1e   :  { %1184 = vmatprep.subr.bf16.mxu0 %v1349_v24  ;;  %1250 = vmatpush3.bf16.msra.mxu1 %v1351_v27 }
  0x1f   :  { %1251 = vmatprep.subr.bf16.mxu1 %v1504_v3 }
  0x21   :  { %1185 = vmatpush3.bf16.msra.mxu0 %v1350_v26 }
  0x22   :  { %1265 = vmatprep.subr.bf16.mxu0 %v1504_v3  ;;  %1252 = vmatpush3.bf16.msra.mxu1 %v1352_v33 }
  0x23   :  { %1293 = vmatprep.subr.bf16.mxu1 %v1504_v3 }
  0x24   :  { %279 = vmatmul.mubr.bf16.vlgmr.msra.gmra.mrb[0].mxu0 %v131_v32 }
  0x25   :  { %286 = vmatprep.mubr.bf16.mxu0 %v134_v35  ;;  %1254 = vmatmul.mubr.bf16.vlgmr.msra.gmra.mrb[0].mxu1 %v1353_v34 }
  0x26   :  { %1257 = vmatprep.mubr.msk.bf16.mxu1 %vm1505_vm0, %v1504_v3 }
  0x2c   :  { %287 = vmatmul.mubr.bf16.gmra.mrb[4].mxu0 %v133_v58 }
  0x2d   :  { %294 = vmatprep.mubr.bf16.mxu0 %v136_v60  ;;  %1258 = vmatmul.mubr.bf16.gmra.mrb[4].mxu1 %v1354_v59 }
  0x2e   :  { %24 = vsyncpa [#allocation4], 0  ;;  %v135_v63 = vpack.c.bf16 %v92_v62, %v91_v61  ;;  %1261 = vmatprep.mubr.msk.bf16.mxu1 %vm1505_vm0, %v1504_v3  ;;  %v1355_v0 = vld [vmem:[%s1972_s3 + $0x10] sm:$0xff]   ;;  %v1356_v1 = vld [vmem:[%s1977_s8] sm:$0xff]  }
  0x2f   :  { %1266 = vmatpush3.bf16.msra.mxu0 %v1356_v1  ;;  %v1357_v2 = vld [vmem:[%s1977_s8 + $0x8] sm:$0xff]   ;;  %v1358_v4 = vld [vmem:[%s1977_s8 + $0x10] sm:$0xff]   ;;  %v1359_v5 = vld [vmem:[%s1977_s8 + $0x18] sm:$0xff]  }
  0x30   :  { %1267 = vmatprep.subr.bf16.mxu0 %v1504_v3  ;;  %v1360_v6 = vld [vmem:[%s1977_s8 + $0x20] sm:$0xff]   ;;  %v1361_v7 = vld [vmem:[%s1977_s8 + $0x28] sm:$0xff]   ;;  %v1362_v8 = vld [vmem:[%s1977_s8 + $0x30] sm:$0xff]  }
  0x31   :  { %v1363_v9 = vld [vmem:[%s1977_s8 + $0x38] sm:$0xff]   ;;  %v1067_v11 = vld [vmem:[%s1974_s5] ss:$0 sm:$0xff] }
  0x32   :  { %v1084_v21 = vld [vmem:[%s1976_s7] ss:$0 sm:$0xff] }
  0x33   :  { %1268 = vmatpush3.bf16.msra.mxu0 %v1357_v2 }
  0x34   :  { %295 = vmatmul.mubr.bf16.gmra.mrb[8].mxu0 %v135_v63  ;;  %1269 = vmatprep.subr.bf16.mxu0 %v1504_v3 }
  0x35   :  { %1281 = vmatprep.mubr.msk.bf16.mxu0 %vm1505_vm0, %v1504_v3  ;;  %1262 = vmatmul.mubr.bf16.gmra.mrb[8].mxu1 %v1355_v0 }
  0x36   :  { %1309 = vmatprep.mubr.msk.bf16.mxu1 %vm1505_vm0, %v1504_v3 }
  0x37   :  { %1270 = vmatpush3.bf16.msra.mxu0 %v1358_v4 }
  0x38   :  { %1271 = vmatprep.subr.bf16.mxu0 %v1504_v3 }
  0x3b   :  { %1272 = vmatpush3.bf16.msra.mxu0 %v1359_v5 }
  0x3c   :  { %1273 = vmatprep.subr.bf16.mxu0 %v1504_v3 }
  0x3f   :  { %1274 = vmatpush3.bf16.msra.mxu0 %v1360_v6 }
  0x40   :  { %1275 = vmatprep.subr.bf16.mxu0 %v1504_v3 }
  0x43   :  { %1276 = vmatpush3.bf16.msra.mxu0 %v1361_v7 }
  0x44   :  { %1277 = vmatprep.subr.bf16.mxu0 %v1504_v3 }
  0x47   :  { %1278 = vmatpush3.bf16.msra.mxu0 %v1362_v8 }
  0x48   :  { %1279 = vmatprep.subr.bf16.mxu0 %v1504_v3 }
  0x4b   :  { %1280 = vmatpush3.bf16.msra.mxu0 %v1363_v9 }
  0x9e   :  { %v1814_v10 = vpop.xlane.xlu0 %70 }
  0x9f   :  { %v144_v16 = vmul.f32 %v1067_v11, %v1814_v10 }
  0xa0   :  { %v1821_v15 = vpop.xlane.xlu1 %76 }
  0xa1   :  { %v146_v34 = vmul.f32 %v1067_v11, %v1821_v15 }
  0xa2   :  { %v1819_v12 = vpop.xlane.xlu0 %73 }
  0xa3   :  { %v145_v19 = vmul.f32 %v1067_v11, %v1819_v12 }
  0xa4   :  { %v1828_v30 = vpop.xlane.xlu1 %79 }
  0xa5   :  { %v147_v46 = vmul.f32 %v1067_v11, %v1828_v30 }
  0xa6   :  { %v1838_v54 = vpop.xlane.xlu0 %82 }
  0xa7   :  { %v148_v62 = vmul.f32 %v1067_v11, %v1838_v54 }
  0xa8   :  { %v1840_v58 = vpop.xlane.xlu1 %85 }
  0xa9   :  { %v149_v5 = vmul.f32 %v1067_v11, %v1840_v58 }
  0xf7   :  { %v1186_v13 = vpop.f32.mrb[0].mxu0 }
  0xf8   :  { %v1187_v14 = vpop.f32.mrb[1].mxu0  ;;  %v438_v22 = vpop.f32.mrb[0].mxu1 }
  0xf9   :  { %v1188_v17 = vadd.f32 %v1187_v14, %v1186_v13  ;;  %v1189_v18 = vpop.f32.mrb[2].mxu0  ;;  %v1255_v25 = vpop.f32.mrb[1].mxu1 }
  0xfa   :  { %v1190_v20 = vpop.f32.mrb[3].mxu0  ;;  %v441_v26 = vpop.f32.mrb[2].mxu1 }
  0xfb   :  { %v281_v23 = vadd.f32 %v1188_v17, %v144_v16  ;;  %v1191_v24 = vadd.f32 %v1190_v20, %v1189_v18  ;;  %v1256_v29 = vpop.f32.mrb[3].mxu1 }
  0xfd   :  { %v284_v27 = vadd.f32 %v1191_v24, %v145_v19  ;;  %v310_v28 = vadd.f32 %v1084_v21, %v281_v23 }
  0xff   :  { %v1830_v31 = vadd.f32 %v438_v22, %v310_v28  ;;  %v311_v32 = vadd.f32 %v1084_v21, %v284_v27  ;;  %v1192_v33 = vpop.f32.mrb[4].mxu0 }
 0x100   :  { %v1193_v35 = vpop.f32.mrb[5].mxu0  ;;  %v446_v48 = vpop.f32.mrb[4].mxu1 }
 0x101   :  { %v1096_v39 = vmul.f32 -1.442695, %v1830_v31  ;;  %v1834_v40 = vadd.f32 %v441_v26, %v311_v32  ;;  %v1194_v41 = vadd.f32 %v1193_v35, %v1192_v33  ;;  %v1195_v45 = vpop.f32.mrb[6].mxu0  ;;  %v1259_v52 = vpop.f32.mrb[5].mxu1 }
 0x102   :  { %v1196_v47 = vpop.f32.mrb[7].mxu0  ;;  %v449_v53 = vpop.f32.mrb[6].mxu1 }
 0x103   :  { %1372 = vpow2.f32 %v1096_v39  ;;  %v1097_v49 = vmul.f32 -1.442695, %v1834_v40  ;;  %v289_v50 = vadd.f32 %v1194_v41, %v146_v34  ;;  %v1197_v51 = vadd.f32 %v1196_v47, %v1195_v45  ;;  %v1260_v57 = vpop.f32.mrb[7].mxu1 }
 0x105   :  { %1374 = vpow2.f32 %v1097_v49  ;;  %v292_v55 = vadd.f32 %v1197_v51, %v147_v46  ;;  %v312_v56 = vadd.f32 %v1084_v21, %v289_v50 }
 0x107   :  { %v463_v59 = vadd.f32 %v446_v48, %v312_v56  ;;  %v313_v60 = vadd.f32 %v1084_v21, %v292_v55  ;;  %v1198_v61 = vpop.f32.mrb[8].mxu0 }
 0x108   :  { %v1199_v63 = vpop.f32.mrb[9].mxu0  ;;  %v454_v7 = vpop.f32.mrb[8].mxu1 }
 0x109   :  { %v1098_v0 = vmul.f32 -1.442695, %v463_v59  ;;  %v464_v1 = vadd.f32 %v449_v53, %v313_v60  ;;  %v1200_v2 = vadd.f32 %v1199_v63, %v1198_v61  ;;  %v1201_v4 = vpop.f32.mrb[10].mxu0  ;;  %v1263_v14 = vpop.f32.mrb[9].mxu1  ;;  %v1102_v61 = vld [vmem:[%s1978_s9] ss:$0 sm:$0xff] }
 0x10a   :  { %v1202_v6 = vpop.f32.mrb[11].mxu0  ;;  %v457_v16 = vpop.f32.mrb[10].mxu1 }
 0x10b   :  { %1376 = vpow2.f32 %v1098_v0  ;;  %v1099_v8 = vmul.f32 -1.442695, %v464_v1  ;;  %v297_v9 = vadd.f32 %v1200_v2, %v148_v62  ;;  %v1203_v13 = vadd.f32 %v1202_v6, %v1201_v4  ;;  %v1264_v20 = vpop.f32.mrb[11].mxu1 }
 0x10d   :  { %v1373_v17 = vpop.eup %1372  ;;  %1378 = vpow2.f32 %v1099_v8  ;;  %v300_v18 = vadd.f32 %v1203_v13, %v149_v5  ;;  %v314_v19 = vadd.f32 %v1084_v21, %v297_v9 }
 0x10e   :  { %v485_v22 = vadd.f32 1.0, %v1373_v17 }
 0x10f   :  { %v1375_v23 = vpop.eup %1374  ;;  %v465_v24 = vadd.f32 %v454_v7, %v314_v19  ;;  %v315_v25 = vadd.f32 %v1084_v21, %v300_v18 }
 0x110   :  { %1380 = vrcp.f32 %v485_v22  ;;  %v486_v26 = vadd.f32 1.0, %v1375_v23 }
 0x111   :  { %v1100_v11 = vmul.f32 -1.442695, %v465_v24  ;;  %v466_v27 = vadd.f32 %v457_v16, %v315_v25 }
 0x112   :  { %1382 = vrcp.f32 %v486_v26 }
 0x113   :  { %1384 = vpow2.f32 %v1100_v11  ;;  %v1101_v28 = vmul.f32 -1.442695, %v466_v27 }
 0x115   :  { %v1377_v29 = vpop.eup %1376  ;;  %1386 = vpow2.f32 %v1101_v28 }
 0x116   :  { %v487_v32 = vadd.f32 1.0, %v1377_v29 }
 0x117   :  { %v1379_v33 = vpop.eup %1378 }
 0x118   :  { %1388 = vrcp.f32 %v487_v32  ;;  %v488_v34 = vadd.f32 1.0, %v1379_v33 }
 0x11a   :  { %v1381_v35 = vpop.eup %1380  ;;  %1390 = vrcp.f32 %v488_v34 }
 0x11b   :  { %v503_v45 = vmul.f32 %v1381_v35, %v1830_v31 }
 0x11c   :  { %v1383_v39 = vpop.eup %1382 }
 0x11d   :  { %v1385_v41 = vpop.eup %1384  ;;  %v504_v21 = vmul.f32 %v1383_v39, %v1834_v40 }
 0x11e   :  { %v489_v46 = vadd.f32 1.0, %v1385_v41  ;;  %v1117_v41 = vld [vmem:[%s1979_s10] ss:$0 sm:$0xff] }
 0x11f   :  { %v1387_v47 = vpop.eup %1386  ;;  %v525_v48 = vpack.c.bf16 %v504_v21, %v503_v45 }
 0x120   :  { %1392 = vrcp.f32 %v489_v46  ;;  %v490_v49 = vadd.f32 1.0, %v1387_v47 }
 0x121   :  { %1282 = vmatmul.mubr.bf16.vlgmr.msra.gmra.mrb[12].mxu0 %v525_v48 }
 0x122   :  { %v1389_v50 = vpop.eup %1388  ;;  %1394 = vrcp.f32 %v490_v49  ;;  %1285 = vmatprep.mubr.msk.bf16.mxu0 %vm1505_vm0, %v1504_v3 }
 0x123   :  { %v505_v52 = vmul.f32 %v1389_v50, %v463_v59 }
 0x124   :  { %v1391_v51 = vpop.eup %1390 }
 0x125   :  { %v506_v53 = vmul.f32 %v1391_v51, %v464_v1 }
 0x127   :  { %v526_v55 = vpack.c.bf16 %v506_v53, %v505_v52 }
 0x129   :  { %1286 = vmatmul.mubr.bf16.gmra.mrb[16].mxu0 %v526_v55 }
 0x12a   :  { %v1393_v56 = vpop.eup %1392  ;;  %1289 = vmatprep.mubr.msk.bf16.mxu0 %vm1505_vm0, %v1504_v3 }
 0x12b   :  { %v507_v40 = vmul.f32 %v1393_v56, %v465_v24 }
 0x12c   :  { %v1395_v31 = vpop.eup %1394 }
 0x12d   :  { %v508_v57 = vmul.f32 %v1395_v31, %v466_v27 }
 0x12f   :  { %v527_v60 = vpack.c.bf16 %v508_v57, %v507_v40 }
 0x131   :  { %1290 = vmatmul.mubr.bf16.gmra.mrb[20].mxu0 %v527_v60 }
 0x1f4   :  { %v617_v62 = vpop.f32.mrb[12].mxu0 }
 0x1f5   :  { %v618_v63 = vadd.f32 %v1102_v61, %v617_v62  ;;  %v1283_v0 = vpop.f32.mrb[13].mxu0 }
 0x1f6   :  { %v620_v59 = vpop.f32.mrb[14].mxu0 }
 0x1f7   :  { %v1111_v1 = vmul.f32 -1.442695, %v618_v63  ;;  %v621_v2 = vadd.f32 %v1102_v61, %v620_v59  ;;  %v1284_v4 = vpop.f32.mrb[15].mxu0 }
 0x1f8   :  { %v1365_v4 = vld [vmem:[%s1981_s12 + $0x8] sm:$0xff]  }
 0x1f9   :  { %1396 = vpow2.f32 %v1111_v1  ;;  %v1112_v5 = vmul.f32 -1.442695, %v621_v2  ;;  %v1506_v1 = vmov 0  }
 0x1fa   :  { %1327 = vset.pattern.permute.xlu0 %v1506_v1  ;;  %1328 = vset.pattern.permute.xlu1 %v1506_v1 }
 0x1fb   :  { %1398 = vpow2.f32 %v1112_v5  ;;  %v1366_v5 = vld [vmem:[%s1981_s12 + $0x10] sm:$0xff]  }
 0x1fc   :  { %v625_v6 = vpop.f32.mrb[16].mxu0 }
 0x1fd   :  { %v626_v7 = vadd.f32 %v1102_v61, %v625_v6  ;;  %v1287_v8 = vpop.f32.mrb[17].mxu0  ;;  %v1367_v6 = vld [vmem:[%s1981_s12 + $0x18] sm:$0xff]  }
 0x1fe   :  { %v628_v9 = vpop.f32.mrb[18].mxu0  ;;  %v1369_v8 = vld [vmem:[%s1981_s12 + $0x28] sm:$0xff]  }
 0x1ff   :  { %v1113_v13 = vmul.f32 -1.442695, %v626_v7  ;;  %v629_v14 = vadd.f32 %v1102_v61, %v628_v9  ;;  %v1288_v16 = vpop.f32.mrb[19].mxu0  ;;  %v1370_v9 = vld [vmem:[%s1981_s12 + $0x30] sm:$0xff]  }
 0x201   :  { %1400 = vpow2.f32 %v1113_v13  ;;  %v1114_v17 = vmul.f32 -1.442695, %v629_v14  ;;  %v1118_v13 = vld [vmem:[#allocation2] ss:$0 sm:$0xff] }
 0x203   :  { %v1397_v18 = vpop.eup %1396  ;;  %1402 = vpow2.f32 %v1114_v17 }
 0x204   :  { %v658_v19 = vadd.f32 1.0, %v1397_v18  ;;  %v633_v20 = vpop.f32.mrb[20].mxu0 }
 0x205   :  { %v1399_v22 = vpop.eup %1398  ;;  %v634_v23 = vadd.f32 %v1102_v61, %v633_v20  ;;  %v1291_v24 = vpop.f32.mrb[21].mxu0 }
 0x206   :  { %1404 = vrcp.f32 %v658_v19  ;;  %v659_v25 = vadd.f32 1.0, %v1399_v22  ;;  %v636_v26 = vpop.f32.mrb[22].mxu0 }
 0x207   :  { %v1115_v11 = vmul.f32 -1.442695, %v634_v23  ;;  %v637_v27 = vadd.f32 %v1102_v61, %v636_v26  ;;  %v1292_v28 = vpop.f32.mrb[23].mxu0 }
 0x208   :  { %1406 = vrcp.f32 %v659_v25 }
 0x209   :  { %1408 = vpow2.f32 %v1115_v11  ;;  %v1116_v29 = vmul.f32 -1.442695, %v637_v27 }
 0x20b   :  { %v1401_v32 = vpop.eup %1400  ;;  %1410 = vpow2.f32 %v1116_v29 }
 0x20c   :  { %v660_v33 = vadd.f32 1.0, %v1401_v32 }
 0x20d   :  { %v1403_v34 = vpop.eup %1402 }
 0x20e   :  { %1412 = vrcp.f32 %v660_v33  ;;  %v661_v35 = vadd.f32 1.0, %v1403_v34 }
 0x210   :  { %v1405_v39 = vpop.eup %1404  ;;  %1414 = vrcp.f32 %v661_v35 }
 0x211   :  { %v1856_v45 = vmul.f32 %v1405_v39, %v618_v63 }
 0x212   :  { %v1407_v21 = vpop.eup %1406 }
 0x213   :  { %v1409_v46 = vpop.eup %1408  ;;  %v1858_v47 = vmul.f32 %v1407_v21, %v621_v2  ;;  %v689_v48 = vmul.f32 %v1117_v41, %v1856_v45  ;;  %v1364_v2 = vld [vmem:[%s1981_s12] sm:$0xff]  }
 0x214   :  { %v662_v49 = vadd.f32 1.0, %v1409_v46  ;;  %1294 = vmatpush3.bf16.msra.mxu1 %v1364_v2 }
 0x215   :  { %v1411_v50 = vpop.eup %1410  ;;  %695 = vadd.xlane.f32.xlu0 %v689_v48  ;;  %v690_v51 = vmul.f32 %v1117_v41, %v1858_v47  ;;  %1295 = vmatprep.subr.bf16.mxu1 %v1504_v3 }
 0x216   :  { %1416 = vrcp.f32 %v662_v49  ;;  %v663_v52 = vadd.f32 1.0, %v1411_v50 }
 0x217   :  { %697 = vadd.xlane.f32.xlu1 %v690_v51 }
 0x218   :  { %v1413_v53 = vpop.eup %1412  ;;  %1418 = vrcp.f32 %v663_v52  ;;  %1296 = vmatpush3.bf16.msra.mxu1 %v1365_v4 }
 0x219   :  { %v1862_v55 = vmul.f32 %v1413_v53, %v626_v7  ;;  %1297 = vmatprep.subr.bf16.mxu1 %v1504_v3  ;;  %v1368_v7 = vld [vmem:[%s1981_s12 + $0x20] sm:$0xff]   ;;  %v1371_v53 = vld [vmem:[%s1981_s12 + $0x38] sm:$0xff]  }
 0x21a   :  { %v1415_v56 = vpop.eup %1414 }
 0x21b   :  { %v1864_v31 = vmul.f32 %v1415_v56, %v629_v14  ;;  %v691_v40 = vmul.f32 %v1117_v41, %v1862_v55 }
 0x21c   :  { %1298 = vmatpush3.bf16.msra.mxu1 %v1366_v5 }
 0x21d   :  { %699 = vadd.xlane.f32.xlu0 %v691_v40  ;;  %v692_v57 = vmul.f32 %v1117_v41, %v1864_v31  ;;  %1299 = vmatprep.subr.bf16.mxu1 %v1504_v3 }
 0x21f   :  { %701 = vadd.xlane.f32.xlu1 %v692_v57 }
 0x220   :  { %v1417_v60 = vpop.eup %1416  ;;  %1300 = vmatpush3.bf16.msra.mxu1 %v1367_v6 }
 0x221   :  { %v1868_v61 = vmul.f32 %v1417_v60, %v634_v23  ;;  %1301 = vmatprep.subr.bf16.mxu1 %v1504_v3 }
 0x222   :  { %v1419_v62 = vpop.eup %1418 }
 0x223   :  { %v1870_v63 = vmul.f32 %v1419_v62, %v637_v27  ;;  %v693_v0 = vmul.f32 %v1117_v41, %v1868_v61 }
 0x224   :  { %1302 = vmatpush3.bf16.msra.mxu1 %v1368_v7 }
 0x225   :  { %703 = vadd.xlane.f32.xlu0 %v693_v0  ;;  %v694_v59 = vmul.f32 %v1117_v41, %v1870_v63  ;;  %1303 = vmatprep.subr.bf16.mxu1 %v1504_v3 }
 0x227   :  { %705 = vadd.xlane.f32.xlu1 %v694_v59 }
 0x228   :  { %1304 = vmatpush3.bf16.msra.mxu1 %v1369_v8 }
 0x229   :  { %1305 = vmatprep.subr.bf16.mxu1 %v1504_v3 }
 0x22c   :  { %1306 = vmatpush3.bf16.msra.mxu1 %v1370_v9 }
 0x22d   :  { %1307 = vmatprep.subr.bf16.mxu1 %v1504_v3 }
 0x230   :  { %1308 = vmatpush3.bf16.msra.mxu1 %v1371_v53 }
 0x2a2   :  { %v696_v14 = vpop.xlane.xlu0 %695 }
 0x2a3   :  { %v714_v16 = vadd.f32 %v1118_v13, %v696_v14 }
 0x2a4   :  { %v698_v17 = vpop.xlane.xlu1 %697 }
 0x2a5   :  { %v1119_v18 = vmul.f32 -1.442695, %v714_v16  ;;  %v715_v19 = vadd.f32 %v1118_v13, %v698_v17 }
 0x2a7   :  { %1420 = vpow2.f32 %v1119_v18  ;;  %v1120_v20 = vmul.f32 -1.442695, %v715_v19 }
 0x2a9   :  { %1422 = vpow2.f32 %v1120_v20 }
 0x2aa   :  { %v700_v22 = vpop.xlane.xlu0 %699 }
 0x2ab   :  { %v716_v23 = vadd.f32 %v1118_v13, %v700_v22 }
 0x2ac   :  { %v702_v24 = vpop.xlane.xlu1 %701 }
 0x2ad   :  { %v1121_v25 = vmul.f32 -1.442695, %v716_v23  ;;  %v717_v26 = vadd.f32 %v1118_v13, %v702_v24 }
 0x2af   :  { %1424 = vpow2.f32 %v1121_v25  ;;  %v1122_v11 = vmul.f32 -1.442695, %v717_v26 }
 0x2b1   :  { %v1421_v27 = vpop.eup %1420  ;;  %1426 = vpow2.f32 %v1122_v11 }
 0x2b2   :  { %v738_v28 = vadd.f32 1.0, %v1421_v27  ;;  %v704_v29 = vpop.xlane.xlu0 %703 }
 0x2b3   :  { %v1423_v32 = vpop.eup %1422  ;;  %v718_v33 = vadd.f32 %v1118_v13, %v704_v29 }
 0x2b4   :  { %1428 = vrcp.f32 %v738_v28  ;;  %v739_v34 = vadd.f32 1.0, %v1423_v32  ;;  %v706_v35 = vpop.xlane.xlu1 %705 }
 0x2b5   :  { %v1123_v39 = vmul.f32 -1.442695, %v718_v33  ;;  %v719_v41 = vadd.f32 %v1118_v13, %v706_v35 }
 0x2b6   :  { %1430 = vrcp.f32 %v739_v34 }
 0x2b7   :  { %1432 = vpow2.f32 %v1123_v39  ;;  %v1124_v21 = vmul.f32 -1.442695, %v719_v41 }
 0x2b9   :  { %v1425_v46 = vpop.eup %1424  ;;  %1434 = vpow2.f32 %v1124_v21 }
 0x2ba   :  { %v740_v48 = vadd.f32 1.0, %v1425_v46 }
 0x2bb   :  { %v1427_v49 = vpop.eup %1426 }
 0x2bc   :  { %1436 = vrcp.f32 %v740_v48  ;;  %v741_v50 = vadd.f32 1.0, %v1427_v49 }
 0x2be   :  { %v1429_v51 = vpop.eup %1428  ;;  %1438 = vrcp.f32 %v741_v50 }
 0x2bf   :  { %758 = vperm.xlu0 %1327, %v1429_v51  }
 0x2c0   :  { %v1431_v52 = vpop.eup %1430 }
 0x2c1   :  { %v1433_v56 = vpop.eup %1432  ;;  %763 = vperm.xlu1 %1328, %v1431_v52  }
 0x2c2   :  { %v742_v40 = vadd.f32 1.0, %v1433_v56 }
 0x2c3   :  { %v1435_v57 = vpop.eup %1434 }
 0x2c4   :  { %1440 = vrcp.f32 %v742_v40  ;;  %v743_v60 = vadd.f32 1.0, %v1435_v57 }
 0x2c6   :  { %v1437_v62 = vpop.eup %1436  ;;  %1442 = vrcp.f32 %v743_v60 }
 0x2c7   :  { %768 = vperm.xlu1 %1328, %v1437_v62  }
 0x2c8   :  { %v1439_v0 = vpop.eup %1438 }
 0x2cb   :  { %773 = vperm.xlu1 %1328, %v1439_v0   ;;  %v1146_v0 = vld [vmem:[%s1983_s14] ss:$0 sm:$0xff]  ;;  %s1507_s14 = smov [#allocation3]  }
 0x2cc   :  { %s1052_s6 = sshll.u32 %s1507_s14, 4  ;;  %s1053_s6 = int_to_ptr.vmem [resolvable:$true] %s1052_s6 }
 0x2cd   :  { %s1480_s25 = scalar_lea.vmem %s1053_s6, 384  ;;  %p1485_p1 = scmp.lt.s32.totalorder %s1053_s6, %s1053_s6 }
 0x2ce   :  { %v1441_v59 = vpop.eup %1440  ;;  %p1481_p0 = scmp.ne.s32.totalorder %s1053_s6, %s1480_s25  ;;  %p1486_p2 = scmp.lt.s32.totalorder %s1480_s25, %s1480_s25 }
 0x2cf   :  { %778 = vperm.xlu1 %1328, %v1441_v59  }
 0x2d0   :  { %v1443_v1 = vpop.eup %1442  ;;  %p1487_p3 = por %p1486_p2, %p1485_p1 }
 0x2d2   :  { %p1488_p4 = pnand %p1487_p3, %p1481_p0 }
 0x2d3   :  { %783 = vperm.xlu1 %1328, %v1443_v1  }
 0x33e   :  { %v759_v2 = vpop.permute.xlu0 %758 }
 0x33f   :  { %v786_v5 = vmul.f32 %v759_v2, %v1856_v45 }
 0x340   :  { %v764_v4 = vpop.permute.xlu1 %763 }
 0x341   :  { %v787_v6 = vmul.f32 %v764_v4, %v1858_v47 }
 0x343   :  { %v792_v7 = vpack.c.bf16 %v787_v6, %v786_v5 }
 0x345   :  { %1157 = vst [vmem:[#allocation3] sm:$0xff] %v792_v7   ;;  %1310 = vmatmul.mubr.bf16.vlgmr.msra.gmra.mrb[12].mxu1 %v792_v7 }
 0x346   :  { %v769_v8 = vpop.permute.xlu1 %768  ;;  %1313 = vmatprep.mubr.msk.bf16.mxu1 %vm1505_vm0, %v1504_v3 }
 0x347   :  { %v788_v13 = vmul.f32 %v769_v8, %v1862_v55  ;;  %v1131_v55 = vld [vmem:[%s1982_s13] ss:$0 sm:$0xff] }
 0x34a   :  { %v774_v9 = vpop.permute.xlu1 %773 }
 0x34b   :  { %v789_v14 = vmul.f32 %v774_v9, %v1864_v31 }
 0x34d   :  { %v793_v16 = vpack.c.bf16 %v789_v14, %v788_v13 }
 0x34e   :  { %v779_v17 = vpop.permute.xlu1 %778 }
 0x34f   :  { %1168 = vst [vmem:[#allocation3 + $0x8] sm:$0xff] %v793_v16   ;;  %1314 = vmatmul.mubr.bf16.gmra.mrb[16].mxu1 %v793_v16  ;;  %v790_v47 = vmul.f32 %v779_v17, %v1868_v61 }
 0x350   :  { %1317 = vmatprep.mubr.msk.bf16.mxu1 %vm1505_vm0, %v1504_v3 }
 0x352   :  { %v784_v45 = vpop.permute.xlu1 %783 }
 0x353   :  { %v791_v18 = vmul.f32 %v784_v45, %v1870_v63 }
 0x355   :  { %v794_v19 = vpack.c.bf16 %v791_v18, %v790_v47 }
 0x357   :  { %1169 = vst [vmem:[#allocation3 + $0x10] sm:$0xff] %v794_v19   ;;  %1318 = vmatmul.mubr.bf16.gmra.mrb[20].mxu1 %v794_v19 }
 0x418   :  { %v927_v31 = vpop.f32.mrb[12].mxu1 }
 0x419   :  { %v928_v20 = vadd.f32 %v1131_v55, %v927_v31  ;;  %v1311_v22 = vpop.f32.mrb[13].mxu1 }
 0x41a   :  { %v930_v23 = vpop.f32.mrb[14].mxu1 }
 0x41b   :  { %v1140_v24 = vmul.f32 -1.442695, %v928_v20  ;;  %v931_v25 = vadd.f32 %v1131_v55, %v930_v23  ;;  %v1312_v26 = vpop.f32.mrb[15].mxu1 }
 0x41d   :  { %1444 = vpow2.f32 %v1140_v24  ;;  %v1141_v3 = vmul.f32 -1.442695, %v931_v25 }
 0x41f   :  { %1446 = vpow2.f32 %v1141_v3 }
 0x422   :  { %v935_v61 = vpop.f32.mrb[16].mxu1 }
 0x423   :  { %v936_v11 = vadd.f32 %v1131_v55, %v935_v61  ;;  %v1315_v63 = vpop.f32.mrb[17].mxu1 }
 0x424   :  { %v938_v27 = vpop.f32.mrb[18].mxu1 }
 0x425   :  { %v1142_v28 = vmul.f32 -1.442695, %v936_v11  ;;  %v939_v29 = vadd.f32 %v1131_v55, %v938_v27  ;;  %v1316_v32 = vpop.f32.mrb[19].mxu1 }
 0x427   :  { %v1445_v33 = vpop.eup %1444  ;;  %1448 = vpow2.f32 %v1142_v28  ;;  %v1143_v34 = vmul.f32 -1.442695, %v939_v29 }
 0x428   :  { %v968_v35 = vadd.f32 1.0, %v1445_v33 }
 0x429   :  { %v1447_v39 = vpop.eup %1446  ;;  %1450 = vpow2.f32 %v1143_v34 }
 0x42a   :  { %1452 = vrcp.f32 %v968_v35  ;;  %v969_v41 = vadd.f32 1.0, %v1447_v39  ;;  %v943_v21 = vpop.f32.mrb[20].mxu1 }
 0x42b   :  { %v944_v46 = vadd.f32 %v1131_v55, %v943_v21  ;;  %v1319_v48 = vpop.f32.mrb[21].mxu1 }
 0x42c   :  { %1454 = vrcp.f32 %v969_v41  ;;  %v946_v49 = vpop.f32.mrb[22].mxu1 }
 0x42d   :  { %v1144_v50 = vmul.f32 -1.442695, %v944_v46  ;;  %v947_v51 = vadd.f32 %v1131_v55, %v946_v49  ;;  %v1320_v52 = vpop.f32.mrb[23].mxu1 }
 0x42f   :  { %1456 = vpow2.f32 %v1144_v50  ;;  %v1145_v53 = vmul.f32 -1.442695, %v947_v51 }
 0x431   :  { %v1449_v56 = vpop.eup %1448  ;;  %1458 = vpow2.f32 %v1145_v53 }
 0x432   :  { %v970_v40 = vadd.f32 1.0, %v1449_v56 }
 0x433   :  { %v1451_v57 = vpop.eup %1450 }
 0x434   :  { %v1453_v60 = vpop.eup %1452  ;;  %1460 = vrcp.f32 %v970_v40  ;;  %v971_v62 = vadd.f32 1.0, %v1451_v57 }
 0x435   :  { %v986_v59 = vmul.f32 %v1453_v60, %v928_v20 }
 0x436   :  { %v1455_v1 = vpop.eup %1454  ;;  %1462 = vrcp.f32 %v971_v62 }
 0x437   :  { %v987_v2 = vmul.f32 %v1455_v1, %v931_v25  ;;  %v999_v4 = vmul.f32 %v1146_v0, %v986_v59 }
 0x439   :  { %v1457_v5 = vpop.eup %1456  ;;  %1005 = vadd.xlane.f32.xlu1 %v999_v4  ;;  %v1000_v6 = vmul.f32 %v1146_v0, %v987_v2 }
 0x43a   :  { %v972_v7 = vadd.f32 1.0, %v1457_v5 }
 0x43b   :  { %v1459_v8 = vpop.eup %1458  ;;  %1007 = vadd.xlane.f32.xlu0 %v1000_v6 }
 0x43c   :  { %1464 = vrcp.f32 %v972_v7  ;;  %v973_v9 = vadd.f32 1.0, %v1459_v8 }
 0x43e   :  { %v1461_v13 = vpop.eup %1460  ;;  %1466 = vrcp.f32 %v973_v9 }
 0x43f   :  { %v988_v14 = vmul.f32 %v1461_v13, %v936_v11 }
 0x440   :  { %v1463_v16 = vpop.eup %1462 }
 0x441   :  { %v989_v17 = vmul.f32 %v1463_v16, %v939_v29  ;;  %v1001_v45 = vmul.f32 %v1146_v0, %v988_v14 }
 0x443   :  { %1009 = vadd.xlane.f32.xlu1 %v1001_v45  ;;  %v1002_v47 = vmul.f32 %v1146_v0, %v989_v17 }
 0x446   :  { %v1465_v18 = vpop.eup %1464 }
 0x447   :  { %v990_v19 = vmul.f32 %v1465_v18, %v944_v46  ;;  %1011 = vadd.xlane.f32.xlu1 %v1002_v47 }
 0x448   :  { %v1467_v55 = vpop.eup %1466 }
 0x449   :  { %v991_v31 = vmul.f32 %v1467_v55, %v947_v51  ;;  %v1003_v20 = vmul.f32 %v1146_v0, %v990_v19 }
 0x44b   :  { %1013 = vadd.xlane.f32.xlu0 %v1003_v20  ;;  %v1004_v22 = vmul.f32 %v1146_v0, %v991_v31 }
 0x44d   :  { %1015 = vadd.xlane.f32.xlu1 %v1004_v22 }
 0x44e   :  { %1491 = shalt.err (!%p1488_p4)
}
 0x44f   :  { %s1492_s5 = scalar_lea.hbm %s1984_s15, 384 }
 0x450   :  { %p1493_p5 = scmp.ne.s32.totalorder %s1984_s15, %s1492_s5  ;;  %p1496_p6 = scmp.lt.u32.totalorder %s1492_s5, %s1984_s15 }
 0x452   :  { %p1498_p7 = pnand %p1496_p6, %p1493_p5 }
 0x454   :  { %1501 = shalt.err (!%p1498_p7)
}
 0x455   :  { %s1508_s11 = smov 64   ;;  %s1509_s27 = smov 4   ;;  %v1017_v23 = vadd.f32 1e-08, %v1814_v10  ;;  %v1018_v24 = vadd.f32 1e-08, %v1819_v12 }
 0x456   :  { %1058 = dma.vmem_to_hbm [thread:$0]  %s1053_s6, 384, %s1984_s15, [#allocation4], %s1508_s11, %s1508_s11, %s1509_s27   ;;  %v1019_v25 = vadd.f32 1e-08, %v1821_v15  ;;  %v1020_v3 = vadd.f32 1e-08, %v1828_v30 }
 0x457   :  { %1468 = vrsqrt.f32 %v1017_v23  ;;  %v1021_v10 = vadd.f32 1e-08, %v1838_v54  ;;  %v1022_v15 = vadd.f32 1e-08, %v1840_v58 }
 0x458   :  { %1470 = vrsqrt.f32 %v1018_v24 }
 0x459   :  { %1472 = vrsqrt.f32 %v1019_v25 }
 0x45a   :  { %1474 = vrsqrt.f32 %v1020_v3 }
 0x45b   :  { %1476 = vrsqrt.f32 %v1021_v10 }
 0x45c   :  { %1478 = vrsqrt.f32 %v1022_v15 }
 0x461   :  { %v1469_v26 = vpop.eup %1468 }
 0x462   :  { %v1471_v63 = vpop.eup %1470 }
 0x4c6   :  { %v1006_v61 = vpop.xlane.xlu1 %1005 }
 0x4c7   :  { %v1029_v11 = vmul.f32 %v1469_v26, %v1006_v61 }
 0x4c8   :  { %v1008_v27 = vpop.xlane.xlu0 %1007 }
 0x4c9   :  { %v1035_v28 = vmul.f32 %v1029_v11, %v1704_v36  ;;  %v1030_v29 = vmul.f32 %v1471_v63, %v1008_v27  ;;  %v1473_v36 = vpop.eup %1472 }
 0x4ca   :  { %v1475_v33 = vpop.eup %1474 }
 0x4cb   :  { %1041 = vst.msk [vmem:[%s1985_s16] sm:$0xff] %vm68_vm1, %v1035_v28  ;;  %v1036_v12 = vmul.f32 %v1030_v29, %v1709_v37  ;;  %v1477_v35 = vpop.eup %1476 }
 0x4cc   :  { %v1479_v21 = vpop.eup %1478 }
 0x4cd   :  { %1042 = vst.msk [vmem:[%s1985_s16 + $0x8] sm:$0xff] %vm68_vm1, %v1036_v12 }
 0x4d0   :  { %v1010_v30 = vpop.xlane.xlu1 %1009 }
 0x4d1   :  { %v1031_v32 = vmul.f32 %v1473_v36, %v1010_v30 }
 0x4d3   :  { %v1037_v54 = vmul.f32 %v1031_v32, %v1714_v38 }
 0x4d4   :  { %v1012_v34 = vpop.xlane.xlu1 %1011 }
 0x4d5   :  { %1043 = vst.msk [vmem:[%s1985_s16 + $0x10] sm:$0xff] %vm68_vm1, %v1037_v54  ;;  %v1032_v37 = vmul.f32 %v1475_v33, %v1012_v34 }
 0x4d7   :  { %v1038_v58 = vmul.f32 %v1032_v37, %v1725_v42 }
 0x4d8   :  { %v1014_v39 = vpop.xlane.xlu0 %1013 }
 0x4d9   :  { %1044 = vst.msk [vmem:[%s1985_s16 + $0x18] sm:$0xff] %vm68_vm1, %v1038_v58  ;;  %v1033_v41 = vmul.f32 %v1477_v35, %v1014_v39 }
 0x4da   :  { %v1016_v38 = vpop.xlane.xlu1 %1015 }
 0x4db   :  { %v1039_v46 = vmul.f32 %v1033_v41, %v1730_v43  ;;  %v1034_v48 = vmul.f32 %v1479_v21, %v1016_v38 }
 0x4dd   :  { %1045 = vst.msk [vmem:[%s1985_s16 + $0x20] sm:$0xff] %vm68_vm1, %v1039_v46  ;;  %v1040_v42 = vmul.f32 %v1034_v48, %v1735_v44 }
 0x4df   :  { %1046 = vst.msk [vmem:[%s1985_s16 + $0x28] sm:$0xff] %vm68_vm1, %v1040_v42 }
 0x4e0   :  { %1502 = dma.done.wait [#allocation4], 384  }
 0x4e1   :  { %1503 = vsyncadd [#allocation4], 4294966912 }
 0x4e2   :  { %1066 = vsyncpa [#allocation4], 1 }

</bundles_post_ra>
